<compile_context>
chip_gen: v6e
topology: v6e:2x2x1
jax: 0.10.0
libtpu: 0.0.40
codegen_flags: <defaults>
</compile_context>

<pallas_src>
import functools

import numpy as np
import jax
import jax.numpy as jnp
from jax import lax
from jax.experimental import pallas as pl
from jax.experimental.pallas import tpu as pltpu

BN_EPS = 1e-5
_LANE = 128


# ------------------------------ feature probe --------------------------------

_BUF1_CACHE = []


def _single_buffer_mode():
    """Return pl.Buffered(1) if single-buffered constant operands compile and
    produce correct results on this Pallas build, else None."""
    if _BUF1_CACHE:
        return _BUF1_CACHE[0]

    def _probe(x_ref, o_ref):
        o_ref[...] = x_ref[...] + 1.0

    mode = None
    try:
        spec = pl.BlockSpec((8, _LANE), lambda i: (0, 0),
                            pipeline_mode=pl.Buffered(1))
        fn = pl.pallas_call(
            _probe,
            out_shape=jax.ShapeDtypeStruct((8, _LANE), jnp.float32),
            grid=(2,),
            in_specs=[spec],
            out_specs=pl.BlockSpec((8, _LANE), lambda i: (0, 0)),
        )
        y = jax.block_until_ready(fn(jnp.zeros((8, _LANE), jnp.float32)))
        mode = pl.Buffered(1) if np.allclose(np.asarray(y), 1.0) else None
    except Exception:
        mode = None
    _BUF1_CACHE.append(mode)
    return mode


# --------------------------------- kernel ------------------------------------

def _intermediate_kernel(x_ref, *refs, H, block_meta):
    """All ConvBlockRes blocks fused; one (NB*H, W*C) row slab per grid step.

    refs = per-block params followed by out_ref.
      shortcut block : w1b0, w1b1|shortcut, w1b2, s1, b1, w2b0, w2b1, w2b2, s2, b2, bs
      identity block : w1b0, w1b1,          w1b2, s1, b1, w2b0, w2b1, w2b2, s2, b2
    """
    out_ref = refs[-1]
    prm = refs[:-1]

    M = x_ref.shape[0]                                  # NB * H packed rows
    row = lax.broadcasted_iota(jnp.int32, (M, 1), 0)
    not_top = (row % H) != 0                            # rows with a valid y-1
    not_bot = (row % H) != (H - 1)                      # rows with a valid y+1

    def shift_dn(r):     # out[y] = r[y-1]; per-image top rows -> 0 (zero pad)
        return jnp.where(not_top, pltpu.roll(r, 1, 0), 0.0)

    def shift_up(r):     # out[y] = r[y+1]; per-image bottom rows -> 0
        return jnp.where(not_bot, pltpu.roll(r, M - 1, 0), 0.0)

    def mm(a, w_ref):
        w = w_ref[...]
        return jnp.dot(a.astype(w.dtype), w, preferred_element_type=jnp.float32)

    a = x_ref[...].astype(jnp.float32)
    i = 0
    for has_shortcut in block_meta:
        if has_shortcut:
            (w1b0, w1b1s, w1b2, s1, b1,
             w2b0, w2b1, w2b2, s2, b2, bs) = prm[i:i + 11]
            i += 11
            fused = mm(a, w1b1s)                 # [conv1 ky=1 | 1x1 shortcut]
            wc = fused.shape[1] // 2
            mid1 = fused[:, :wc]
            res = fused[:, wc:] + bs[...]
        else:
            (w1b0, w1b1, w1b2, s1, b1,
             w2b0, w2b1, w2b2, s2, b2) = prm[i:i + 10]
            i += 10
            mid1 = mm(a, w1b1)
            res = a                              # identity residual (Cin == Cout)
        c1 = shift_dn(mm(a, w1b0)) + mid1 + shift_up(mm(a, w1b2))
        h = jnp.maximum(c1 * s1[...] + b1[...], 0.0)
        c2 = shift_dn(mm(h, w2b0)) + mm(h, w2b1) + shift_up(mm(h, w2b2))
        h = jnp.maximum(c2 * s2[...] + b2[...], 0.0)
        a = h + res
    out_ref[...] = a.astype(out_ref.dtype)


# --------------------------------- wrapper -----------------------------------

def _choose_nb(N, H, target_m=256, max_m=2048):
    """Batch elements packed per grid step (matmul M = nb*H).  Smallest
    divisor of N reaching target_m keeps the grid extent >= 2 for realistic N
    (feeds both v7x TensorCores) while filling the MXU rows."""
    divs = [d for d in range(1, N + 1) if N % d == 0]
    ok = [d for d in divs if d * H <= max_m]
    if not ok:
        return 1
    hit = [d for d in ok if d * H >= target_m]
    return hit[0] if hit else ok[-1]


def intermediate_forward(x, layers):
    """Intermediate.forward (pool=None). x: (N, H, W, Cin) NHWC float32."""
    blocks = [blk for layer in layers for blk in layer]
    N, H, W, Cin = x.shape
    Cout = blocks[-1]["cout"]
    cin_p = blocks[0]["cin_pad"]
    assert Cin == blocks[0]["cin"]

    if cin_p != Cin:                      # one-time pad -> 128-lane-wide slab
        x = jnp.pad(x, ((0, 0), (0, 0), (0, 0), (0, cin_p - Cin)))
    x_rows = x.reshape(N * H, W * cin_p)  # lane-dense packed-row slab

    nb = _choose_nb(N, H)
    grid = (N // nb,)
    m_rows = nb * H

    buf_mode = _single_buffer_mode()

    def const_spec(arr):
        if buf_mode is not None:
            return pl.BlockSpec(arr.shape, lambda n: (0, 0),
                                pipeline_mode=buf_mode)
        return pl.BlockSpec(arr.shape, lambda n: (0, 0))

    args = [x_rows]
    in_specs = [pl.BlockSpec((m_rows, W * cin_p), lambda n: (n, 0))]
    meta = []
    for blk in blocks:
        meta.append(bool(blk["has_shortcut"]))
        ps = [blk["w1_b0"], blk["w1_b1"], blk["w1_b2"],
              blk["s1_row"], blk["b1_row"],
              blk["w2_b0"], blk["w2_b1"], blk["w2_b2"],
              blk["s2_row"], blk["b2_row"]]
        if blk["has_shortcut"]:
            ps.append(blk["bs_row"])
        for p_ in ps:
            args.append(p_)
            in_specs.append(const_spec(p_))

    kernel = functools.partial(_intermediate_kernel, H=H, block_meta=tuple(meta))
    out_rows = pl.pallas_call(
        kernel,
        out_shape=jax.ShapeDtypeStruct((N * H, W * Cout), jnp.float32),
        grid_spec=pltpu.PrefetchScalarGridSpec(
            num_scalar_prefetch=0,
            grid=grid,
            in_specs=in_specs,
            out_specs=pl.BlockSpec((m_rows, W * Cout), lambda n: (n, 0)),
        ),
        compiler_params=pltpu.CompilerParams(
            dimension_semantics=("parallel",)),
        # TODO(synk): set vmem_limit_bytes explicitly when scaling to real
        # RMVPE channel counts (v7x: 64 MiB physical / 32 MiB scoped default).
    )(*args)
    return out_rows.reshape(N, H, W, Cout)


# ----------------------------- parameter setup --------------------------------

def _fold_bn(gamma, beta, mean, var):
    scale = gamma / np.sqrt(var + BN_EPS)
    bias = beta - mean * scale
    return scale, bias


def _pad_cin(cin, W, lane=_LANE):
    if (W * cin) % lane == 0 or lane % W != 0:
        return cin
    return -(-(W * cin) // lane) * lane // W


def _make_bands_ky(w_hwio, W, cin_pad):
    """(3,3,Cin,Cout) conv weight -> three per-ky block-banded matrices of
    shape (W*Cin_pad, W*Cout); horizontal zero padding is implicit in the
    band structure, padded-channel rows stay zero."""
    _, _, cin, cout = w_hwio.shape
    bands = np.zeros((3, W * cin_pad, W * cout), np.float32)
    for ky in range(3):
        for xo in range(W):
            for dx in (-1, 0, 1):
                xi = xo + dx
                if 0 <= xi < W:
                    bands[ky, xi * cin_pad:xi * cin_pad + cin,
                          xo * cout:(xo + 1) * cout] = w_hwio[ky, dx + 1]
    return bands


def _make_blockdiag(ws, W, cin_pad):
    """1x1-conv weight (Cin, Cout) -> block-diagonal (W*Cin_pad, W*Cout)."""
    cin, cout = ws.shape
    m = np.zeros((W * cin_pad, W * cout), np.float32)
    for xx in range(W):
        m[xx * cin_pad:xx * cin_pad + cin, xx * cout:(xx + 1) * cout] = ws
    return m


def init_conv_block_res(key, cin, cout, W, weight_dtype=jnp.float32):
    ks = jax.random.split(key, 12)
    w1_hwio = 0.2 * jax.random.normal(ks[0], (3, 3, cin, cout), jnp.float32)
    w2_hwio = 0.2 * jax.random.normal(ks[1], (3, 3, cout, cout), jnp.float32)
    g1 = 1.0 + 0.1 * jax.random.normal(ks[2], (cout,), jnp.float32)
    be1 = 0.1 * jax.random.normal(ks[3], (cout,), jnp.float32)
    m1 = 0.1 * jax.random.normal(ks[4], (cout,), jnp.float32)
    v1 = 0.5 + jax.random.uniform(ks[5], (cout,), jnp.float32)
    g2 = 1.0 + 0.1 * jax.random.normal(ks[6], (cout,), jnp.float32)
    be2 = 0.1 * jax.random.normal(ks[7], (cout,), jnp.float32)
    m2 = 0.1 * jax.random.normal(ks[8], (cout,), jnp.float32)
    v2 = 0.5 + jax.random.uniform(ks[9], (cout,), jnp.float32)

    s1, b1 = _fold_bn(np.asarray(g1), np.asarray(be1), np.asarray(m1), np.asarray(v1))
    s2, b2 = _fold_bn(np.asarray(g2), np.asarray(be2), np.asarray(m2), np.asarray(v2))

    has_shortcut = cin != cout
    # Lane-pad the input-channel axis only when the block rewrites channels
    # anyway (shortcut); identity-residual blocks must keep Cin == Cout lanes.
    cin_pad = _pad_cin(cin, W) if has_shortcut else cin

    b1_ky = _make_bands_ky(np.asarray(w1_hwio), W, cin_pad)
    b2_ky = _make_bands_ky(np.asarray(w2_hwio), W, cout)

    blk = {
        "cin": cin, "cout": cout, "cin_pad": cin_pad,
        "has_shortcut": has_shortcut,
        "w1_b0": jnp.asarray(b1_ky[0], weight_dtype),
        "w1_b2": jnp.asarray(b1_ky[2], weight_dtype),
        "w2_b0": jnp.asarray(b2_ky[0], weight_dtype),
        "w2_b1": jnp.asarray(b2_ky[1], weight_dtype),
        "w2_b2": jnp.asarray(b2_ky[2], weight_dtype),
        "s1_row": jnp.asarray(np.tile(s1, W).reshape(1, W * cout)),
        "b1_row": jnp.asarray(np.tile(b1, W).reshape(1, W * cout)),
        "s2_row": jnp.asarray(np.tile(s2, W).reshape(1, W * cout)),
        "b2_row": jnp.asarray(np.tile(b2, W).reshape(1, W * cout)),
        # reference-path params
        "w1_hwio": w1_hwio, "w2_hwio": w2_hwio,
        "s1": jnp.asarray(s1).reshape(1, -1), "b1": jnp.asarray(b1).reshape(1, -1),
        "s2": jnp.asarray(s2).reshape(1, -1), "b2": jnp.asarray(b2).reshape(1, -1),
    }
    if has_shortcut:
        ws = 0.2 * jax.random.normal(ks[10], (cin, cout), jnp.float32)
        bs = 0.1 * jax.random.normal(ks[11], (cout,), jnp.float32)
        diag = _make_blockdiag(np.asarray(ws), W, cin_pad)
        # Fuse the 1x1 shortcut with conv1's ky=1 band: shared LHS, one matmul.
        blk["w1_b1"] = jnp.asarray(np.concatenate([b1_ky[1], diag], axis=1),
                                   weight_dtype)
        blk["bs_row"] = jnp.asarray(np.tile(np.asarray(bs), W).reshape(1, W * cout))
        blk["ws"] = ws
        blk["bs"] = bs.reshape(1, -1)
    else:
        blk["w1_b1"] = jnp.asarray(b1_ky[1], weight_dtype)
    return blk


# ------------------------------ pure-JAX reference ----------------------------

def ref_conv_block_res(x, p):
    def conv3(h, w):
        return lax.conv_general_dilated(
            h, w, window_strides=(1, 1), padding=((1, 1), (1, 1)),
            dimension_numbers=("NHWC", "HWIO", "NHWC"))
    h = jnp.maximum(conv3(x, p["w1_hwio"]) * p["s1"] + p["b1"], 0.0)
    h = jnp.maximum(conv3(h, p["w2_hwio"]) * p["s2"] + p["b2"], 0.0)
    if p["has_shortcut"]:
        x = jnp.einsum("nhwc,co->nhwo", x, p["ws"]) + p["bs"]
    return h + x


if __name__ == "__main__":
    key = jax.random.PRNGKey(0)
    N, H, W = 2, 16, 16
    in_channels, out_channels = 4, 8
    n_inters, n_blocks = 2, 2

    key, xkey = jax.random.split(key)
    # NHWC input; equivalent PyTorch NCHW shape is (2, 4, 16, 16)
    x = jax.random.normal(xkey, (N, H, W, in_channels), jnp.float32)

    layers = []
    for i in range(n_inters):
        blocks = []
        for j in range(n_blocks):
            key, sub = jax.random.split(key)
            cin = in_channels if (i == 0 and j == 0) else out_channels
            blocks.append(init_conv_block_res(sub, cin, out_channels, W))
        layers.append(blocks)

    fwd = jax.jit(lambda xx: intermediate_forward(xx, layers))
    out = jax.block_until_ready(fwd(x))

    ref = x
    for layer in layers:
        for blk in layer:
            ref = ref_conv_block_res(ref, blk)
    ref = jax.block_until_ready(ref)

    assert out.shape == (N, H, W, out_channels), out.shape
    max_err = float(jnp.max(jnp.abs(out - ref)))
    assert jnp.allclose(out, ref, rtol=2e-3, atol=2e-3), max_err
    print("KERNEL_OK")
</pallas_src>

<mosaic_0001>
module attributes {stable_mosaic.version = 11 : i64} {
  func.func @_intermediate_kernel(%arg0: i32, %arg1: memref<32x128xf32, #tpu.memory_space<vmem>>, %arg2: memref<128x128xf32, #tpu.memory_space<vmem>>, %arg3: memref<128x256xf32, #tpu.memory_space<vmem>>, %arg4: memref<128x128xf32, #tpu.memory_space<vmem>>, %arg5: memref<1x128xf32, #tpu.memory_space<vmem>>, %arg6: memref<1x128xf32, #tpu.memory_space<vmem>>, %arg7: memref<128x128xf32, #tpu.memory_space<vmem>>, %arg8: memref<128x128xf32, #tpu.memory_space<vmem>>, %arg9: memref<128x128xf32, #tpu.memory_space<vmem>>, %arg10: memref<1x128xf32, #tpu.memory_space<vmem>>, %arg11: memref<1x128xf32, #tpu.memory_space<vmem>>, %arg12: memref<1x128xf32, #tpu.memory_space<vmem>>, %arg13: memref<128x128xf32, #tpu.memory_space<vmem>>, %arg14: memref<128x128xf32, #tpu.memory_space<vmem>>, %arg15: memref<128x128xf32, #tpu.memory_space<vmem>>, %arg16: memref<1x128xf32, #tpu.memory_space<vmem>>, %arg17: memref<1x128xf32, #tpu.memory_space<vmem>>, %arg18: memref<128x128xf32, #tpu.memory_space<vmem>>, %arg19: memref<128x128xf32, #tpu.memory_space<vmem>>, %arg20: memref<128x128xf32, #tpu.memory_space<vmem>>, %arg21: memref<1x128xf32, #tpu.memory_space<vmem>>, %arg22: memref<1x128xf32, #tpu.memory_space<vmem>>, %arg23: memref<128x128xf32, #tpu.memory_space<vmem>>, %arg24: memref<128x128xf32, #tpu.memory_space<vmem>>, %arg25: memref<128x128xf32, #tpu.memory_space<vmem>>, %arg26: memref<1x128xf32, #tpu.memory_space<vmem>>, %arg27: memref<1x128xf32, #tpu.memory_space<vmem>>, %arg28: memref<128x128xf32, #tpu.memory_space<vmem>>, %arg29: memref<128x128xf32, #tpu.memory_space<vmem>>, %arg30: memref<128x128xf32, #tpu.memory_space<vmem>>, %arg31: memref<1x128xf32, #tpu.memory_space<vmem>>, %arg32: memref<1x128xf32, #tpu.memory_space<vmem>>, %arg33: memref<128x128xf32, #tpu.memory_space<vmem>>, %arg34: memref<128x128xf32, #tpu.memory_space<vmem>>, %arg35: memref<128x128xf32, #tpu.memory_space<vmem>>, %arg36: memref<1x128xf32, #tpu.memory_space<vmem>>, %arg37: memref<1x128xf32, #tpu.memory_space<vmem>>, %arg38: memref<128x128xf32, #tpu.memory_space<vmem>>, %arg39: memref<128x128xf32, #tpu.memory_space<vmem>>, %arg40: memref<128x128xf32, #tpu.memory_space<vmem>>, %arg41: memref<1x128xf32, #tpu.memory_space<vmem>>, %arg42: memref<1x128xf32, #tpu.memory_space<vmem>>, %arg43: memref<32x128xf32, #tpu.memory_space<vmem>>) attributes {dimension_semantics = [#tpu.dimension_semantics<parallel>], iteration_bounds = array<i64: 1>, scalar_prefetch = 0 : i64, scratch_operands = 0 : i64, tpu.core_type = #tpu.core_type<tc>, window_params = [{transform_indices = @transform_0, window_bounds = array<i64: 32, 128>}, {pipeline_mode = #tpu.pipeline_mode<synchronous>, transform_indices = @transform_1, window_bounds = array<i64: 128, 128>}, {pipeline_mode = #tpu.pipeline_mode<synchronous>, transform_indices = @transform_2, window_bounds = array<i64: 128, 256>}, {pipeline_mode = #tpu.pipeline_mode<synchronous>, transform_indices = @transform_3, window_bounds = array<i64: 128, 128>}, {pipeline_mode = #tpu.pipeline_mode<synchronous>, transform_indices = @transform_4, window_bounds = array<i64: 1, 128>}, {pipeline_mode = #tpu.pipeline_mode<synchronous>, transform_indices = @transform_5, window_bounds = array<i64: 1, 128>}, {pipeline_mode = #tpu.pipeline_mode<synchronous>, transform_indices = @transform_6, window_bounds = array<i64: 128, 128>}, {pipeline_mode = #tpu.pipeline_mode<synchronous>, transform_indices = @transform_7, window_bounds = array<i64: 128, 128>}, {pipeline_mode = #tpu.pipeline_mode<synchronous>, transform_indices = @transform_8, window_bounds = array<i64: 128, 128>}, {pipeline_mode = #tpu.pipeline_mode<synchronous>, transform_indices = @transform_9, window_bounds = array<i64: 1, 128>}, {pipeline_mode = #tpu.pipeline_mode<synchronous>, transform_indices = @transform_10, window_bounds = array<i64: 1, 128>}, {pipeline_mode = #tpu.pipeline_mode<synchronous>, transform_indices = @transform_11, window_bounds = array<i64: 1, 128>}, {pipeline_mode = #tpu.pipeline_mode<synchronous>, transform_indices = @transform_12, window_bounds = array<i64: 128, 128>}, {pipeline_mode = #tpu.pipeline_mode<synchronous>, transform_indices = @transform_13, window_bounds = array<i64: 128, 128>}, {pipeline_mode = #tpu.pipeline_mode<synchronous>, transform_indices = @transform_14, window_bounds = array<i64: 128, 128>}, {pipeline_mode = #tpu.pipeline_mode<synchronous>, transform_indices = @transform_15, window_bounds = array<i64: 1, 128>}, {pipeline_mode = #tpu.pipeline_mode<synchronous>, transform_indices = @transform_16, window_bounds = array<i64: 1, 128>}, {pipeline_mode = #tpu.pipeline_mode<synchronous>, transform_indices = @transform_17, window_bounds = array<i64: 128, 128>}, {pipeline_mode = #tpu.pipeline_mode<synchronous>, transform_indices = @transform_18, window_bounds = array<i64: 128, 128>}, {pipeline_mode = #tpu.pipeline_mode<synchronous>, transform_indices = @transform_19, window_bounds = array<i64: 128, 128>}, {pipeline_mode = #tpu.pipeline_mode<synchronous>, transform_indices = @transform_20, window_bounds = array<i64: 1, 128>}, {pipeline_mode = #tpu.pipeline_mode<synchronous>, transform_indices = @transform_21, window_bounds = array<i64: 1, 128>}, {pipeline_mode = #tpu.pipeline_mode<synchronous>, transform_indices = @transform_22, window_bounds = array<i64: 128, 128>}, {pipeline_mode = #tpu.pipeline_mode<synchronous>, transform_indices = @transform_23, window_bounds = array<i64: 128, 128>}, {pipeline_mode = #tpu.pipeline_mode<synchronous>, transform_indices = @transform_24, window_bounds = array<i64: 128, 128>}, {pipeline_mode = #tpu.pipeline_mode<synchronous>, transform_indices = @transform_25, window_bounds = array<i64: 1, 128>}, {pipeline_mode = #tpu.pipeline_mode<synchronous>, transform_indices = @transform_26, window_bounds = array<i64: 1, 128>}, {pipeline_mode = #tpu.pipeline_mode<synchronous>, transform_indices = @transform_27, window_bounds = array<i64: 128, 128>}, {pipeline_mode = #tpu.pipeline_mode<synchronous>, transform_indices = @transform_28, window_bounds = array<i64: 128, 128>}, {pipeline_mode = #tpu.pipeline_mode<synchronous>, transform_indices = @transform_29, window_bounds = array<i64: 128, 128>}, {pipeline_mode = #tpu.pipeline_mode<synchronous>, transform_indices = @transform_30, window_bounds = array<i64: 1, 128>}, {pipeline_mode = #tpu.pipeline_mode<synchronous>, transform_indices = @transform_31, window_bounds = array<i64: 1, 128>}, {pipeline_mode = #tpu.pipeline_mode<synchronous>, transform_indices = @transform_32, window_bounds = array<i64: 128, 128>}, {pipeline_mode = #tpu.pipeline_mode<synchronous>, transform_indices = @transform_33, window_bounds = array<i64: 128, 128>}, {pipeline_mode = #tpu.pipeline_mode<synchronous>, transform_indices = @transform_34, window_bounds = array<i64: 128, 128>}, {pipeline_mode = #tpu.pipeline_mode<synchronous>, transform_indices = @transform_35, window_bounds = array<i64: 1, 128>}, {pipeline_mode = #tpu.pipeline_mode<synchronous>, transform_indices = @transform_36, window_bounds = array<i64: 1, 128>}, {pipeline_mode = #tpu.pipeline_mode<synchronous>, transform_indices = @transform_37, window_bounds = array<i64: 128, 128>}, {pipeline_mode = #tpu.pipeline_mode<synchronous>, transform_indices = @transform_38, window_bounds = array<i64: 128, 128>}, {pipeline_mode = #tpu.pipeline_mode<synchronous>, transform_indices = @transform_39, window_bounds = array<i64: 128, 128>}, {pipeline_mode = #tpu.pipeline_mode<synchronous>, transform_indices = @transform_40, window_bounds = array<i64: 1, 128>}, {pipeline_mode = #tpu.pipeline_mode<synchronous>, transform_indices = @transform_41, window_bounds = array<i64: 1, 128>}, {transform_indices = @transform_42, window_bounds = array<i64: 32, 128>}]} {
    %0 = tpu.iota {dimensions = array<i32: 0>} : vector<32x1xi32>
    %c16_i32 = arith.constant 16 : i32
    %c0_i32 = arith.constant 0 : i32
    %1 = arith.cmpi eq, %c16_i32, %c0_i32 : i32
    %c1_i32 = arith.constant 1 : i32
    %2 = arith.select %1, %c1_i32, %c16_i32 : i32
    %3 = vector.broadcast %2 : i32 to vector<32x1xi32>
    %4 = arith.remsi %0, %3 : vector<32x1xi32>
    %c0_i32_0 = arith.constant 0 : i32
    %5 = vector.broadcast %c0_i32_0 : i32 to vector<32x1xi32>
    %6 = arith.cmpi ne, %4, %5 : vector<32x1xi32>
    %c0_i32_1 = arith.constant 0 : i32
    %7 = vector.broadcast %c0_i32_1 : i32 to vector<32x1xi32>
    %8 = arith.cmpi slt, %4, %7 : vector<32x1xi32>
    %c0_i32_2 = arith.constant 0 : i32
    %9 = arith.cmpi slt, %2, %c0_i32_2 : i32
    %10 = vector.broadcast %9 : i1 to vector<32x1xi1>
    %11 = vector.broadcast %10 : vector<32x1xi1> to vector<32x1xi1>
    %12 = arith.xori %8, %11 : vector<32x1xi1>
    %13 = arith.andi %12, %6 : vector<32x1xi1>
    %14 = vector.broadcast %2 : i32 to vector<32x1xi32>
    %15 = arith.addi %4, %14 : vector<32x1xi32>
    %16 = arith.select %13, %15, %4 : vector<32x1xi1>, vector<32x1xi32>
    %c0_i32_3 = arith.constant 0 : i32
    %17 = vector.broadcast %c0_i32_3 : i32 to vector<32x1xi32>
    %18 = arith.cmpi ne, %16, %17 : vector<32x1xi32>
    %c16_i32_4 = arith.constant 16 : i32
    %c0_i32_5 = arith.constant 0 : i32
    %19 = arith.cmpi eq, %c16_i32_4, %c0_i32_5 : i32
    %c1_i32_6 = arith.constant 1 : i32
    %20 = arith.select %19, %c1_i32_6, %c16_i32_4 : i32
    %21 = vector.broadcast %20 : i32 to vector<32x1xi32>
    %22 = arith.remsi %0, %21 : vector<32x1xi32>
    %c0_i32_7 = arith.constant 0 : i32
    %23 = vector.broadcast %c0_i32_7 : i32 to vector<32x1xi32>
    %24 = arith.cmpi ne, %22, %23 : vector<32x1xi32>
    %c0_i32_8 = arith.constant 0 : i32
    %25 = vector.broadcast %c0_i32_8 : i32 to vector<32x1xi32>
    %26 = arith.cmpi slt, %22, %25 : vector<32x1xi32>
    %c0_i32_9 = arith.constant 0 : i32
    %27 = arith.cmpi slt, %20, %c0_i32_9 : i32
    %28 = vector.broadcast %27 : i1 to vector<32x1xi1>
    %29 = vector.broadcast %28 : vector<32x1xi1> to vector<32x1xi1>
    %30 = arith.xori %26, %29 : vector<32x1xi1>
    %31 = arith.andi %30, %24 : vector<32x1xi1>
    %32 = vector.broadcast %20 : i32 to vector<32x1xi32>
    %33 = arith.addi %22, %32 : vector<32x1xi32>
    %34 = arith.select %31, %33, %22 : vector<32x1xi1>, vector<32x1xi32>
    %c15_i32 = arith.constant 15 : i32
    %35 = vector.broadcast %c15_i32 : i32 to vector<32x1xi32>
    %36 = arith.cmpi ne, %34, %35 : vector<32x1xi32>
    %c0 = arith.constant 0 : index
    %c0_10 = arith.constant 0 : index
    %37 = vector.load %arg1[%c0, %c0_10] : memref<32x128xf32, #tpu.memory_space<vmem>>, vector<32x128xf32>
    %c0_11 = arith.constant 0 : index
    %c0_12 = arith.constant 0 : index
    %38 = vector.load %arg3[%c0_11, %c0_12] : memref<128x256xf32, #tpu.memory_space<vmem>>, vector<128x256xf32>
    %cst = arith.constant dense<0.000000e+00> : vector<32x256xf32>
    %39 = tpu.matmul %37, %38, %cst {dimension_numbers = #tpu.dot_dimension_numbers<[1], [0], [0], [1], [0, 0, 1, 1], [], []>} : vector<32x128xf32>, vector<128x256xf32>, vector<32x256xf32> -> vector<32x256xf32>
    %40 = vector.extract_strided_slice %39 {offsets = [0, 0], sizes = [32, 128], strides = [1, 1]} : vector<32x256xf32> to vector<32x128xf32>
    %41 = vector.extract_strided_slice %39 {offsets = [0, 128], sizes = [32, 128], strides = [1, 1]} : vector<32x256xf32> to vector<32x128xf32>
    %c0_13 = arith.constant 0 : index
    %c0_14 = arith.constant 0 : index
    %42 = vector.load %arg12[%c0_13, %c0_14] : memref<1x128xf32, #tpu.memory_space<vmem>>, vector<1x128xf32>
    %43 = vector.broadcast %42 : vector<1x128xf32> to vector<32x128xf32>
    %44 = arith.addf %41, %43 : vector<32x128xf32>
    %c0_15 = arith.constant 0 : index
    %c0_16 = arith.constant 0 : index
    %45 = vector.load %arg2[%c0_15, %c0_16] : memref<128x128xf32, #tpu.memory_space<vmem>>, vector<128x128xf32>
    %cst_17 = arith.constant dense<0.000000e+00> : vector<32x128xf32>
    %46 = tpu.matmul %37, %45, %cst_17 {dimension_numbers = #tpu.dot_dimension_numbers<[1], [0], [0], [1], [0, 0, 1, 1], [], []>} : vector<32x128xf32>, vector<128x128xf32>, vector<32x128xf32> -> vector<32x128xf32>
    %c1_i32_18 = arith.constant 1 : i32
    %47 = tpu.dynamic_rotate %46 by %c1_i32_18 dim 0 : vector<32x128xf32>, i32 -> vector<32x128xf32>
    %cst_19 = arith.constant 0.000000e+00 : f32
    %48 = vector.shape_cast %18 : vector<32x1xi1> to vector<32x1xi1>
    %49 = vector.broadcast %48 : vector<32x1xi1> to vector<32x128xi1>
    %50 = vector.broadcast %cst_19 : f32 to vector<32x128xf32>
    %51 = arith.select %49, %47, %50 : vector<32x128xi1>, vector<32x128xf32>
    %52 = arith.addf %51, %40 : vector<32x128xf32>
    %c0_20 = arith.constant 0 : index
    %c0_21 = arith.constant 0 : index
    %53 = vector.load %arg4[%c0_20, %c0_21] : memref<128x128xf32, #tpu.memory_space<vmem>>, vector<128x128xf32>
    %cst_22 = arith.constant dense<0.000000e+00> : vector<32x128xf32>
    %54 = tpu.matmul %37, %53, %cst_22 {dimension_numbers = #tpu.dot_dimension_numbers<[1], [0], [0], [1], [0, 0, 1, 1], [], []>} : vector<32x128xf32>, vector<128x128xf32>, vector<32x128xf32> -> vector<32x128xf32>
    %c31_i32 = arith.constant 31 : i32
    %55 = tpu.dynamic_rotate %54 by %c31_i32 dim 0 : vector<32x128xf32>, i32 -> vector<32x128xf32>
    %cst_23 = arith.constant 0.000000e+00 : f32
    %56 = vector.shape_cast %36 : vector<32x1xi1> to vector<32x1xi1>
    %57 = vector.broadcast %56 : vector<32x1xi1> to vector<32x128xi1>
    %58 = vector.broadcast %cst_23 : f32 to vector<32x128xf32>
    %59 = arith.select %57, %55, %58 : vector<32x128xi1>, vector<32x128xf32>
    %60 = arith.addf %52, %59 : vector<32x128xf32>
    %c0_24 = arith.constant 0 : index
    %c0_25 = arith.constant 0 : index
    %61 = vector.load %arg5[%c0_24, %c0_25] : memref<1x128xf32, #tpu.memory_space<vmem>>, vector<1x128xf32>
    %62 = vector.broadcast %61 : vector<1x128xf32> to vector<32x128xf32>
    %63 = arith.mulf %60, %62 : vector<32x128xf32>
    %c0_26 = arith.constant 0 : index
    %c0_27 = arith.constant 0 : index
    %64 = vector.load %arg6[%c0_26, %c0_27] : memref<1x128xf32, #tpu.memory_space<vmem>>, vector<1x128xf32>
    %65 = vector.broadcast %64 : vector<1x128xf32> to vector<32x128xf32>
    %66 = arith.addf %63, %65 : vector<32x128xf32>
    %cst_28 = arith.constant 0.000000e+00 : f32
    %67 = vector.broadcast %cst_28 : f32 to vector<32x128xf32>
    %68 = arith.maximumf %66, %67 : vector<32x128xf32>
    %c0_29 = arith.constant 0 : index
    %c0_30 = arith.constant 0 : index
    %69 = vector.load %arg7[%c0_29, %c0_30] : memref<128x128xf32, #tpu.memory_space<vmem>>, vector<128x128xf32>
    %cst_31 = arith.constant dense<0.000000e+00> : vector<32x128xf32>
    %70 = tpu.matmul %68, %69, %cst_31 {dimension_numbers = #tpu.dot_dimension_numbers<[1], [0], [0], [1], [0, 0, 1, 1], [], []>} : vector<32x128xf32>, vector<128x128xf32>, vector<32x128xf32> -> vector<32x128xf32>
    %c1_i32_32 = arith.constant 1 : i32
    %71 = tpu.dynamic_rotate %70 by %c1_i32_32 dim 0 : vector<32x128xf32>, i32 -> vector<32x128xf32>
    %cst_33 = arith.constant 0.000000e+00 : f32
    %72 = vector.shape_cast %18 : vector<32x1xi1> to vector<32x1xi1>
    %73 = vector.broadcast %72 : vector<32x1xi1> to vector<32x128xi1>
    %74 = vector.broadcast %cst_33 : f32 to vector<32x128xf32>
    %75 = arith.select %73, %71, %74 : vector<32x128xi1>, vector<32x128xf32>
    %c0_34 = arith.constant 0 : index
    %c0_35 = arith.constant 0 : index
    %76 = vector.load %arg8[%c0_34, %c0_35] : memref<128x128xf32, #tpu.memory_space<vmem>>, vector<128x128xf32>
    %cst_36 = arith.constant dense<0.000000e+00> : vector<32x128xf32>
    %77 = tpu.matmul %68, %76, %cst_36 {dimension_numbers = #tpu.dot_dimension_numbers<[1], [0], [0], [1], [0, 0, 1, 1], [], []>} : vector<32x128xf32>, vector<128x128xf32>, vector<32x128xf32> -> vector<32x128xf32>
    %78 = arith.addf %75, %77 : vector<32x128xf32>
    %c0_37 = arith.constant 0 : index
    %c0_38 = arith.constant 0 : index
    %79 = vector.load %arg9[%c0_37, %c0_38] : memref<128x128xf32, #tpu.memory_space<vmem>>, vector<128x128xf32>
    %cst_39 = arith.constant dense<0.000000e+00> : vector<32x128xf32>
    %80 = tpu.matmul %68, %79, %cst_39 {dimension_numbers = #tpu.dot_dimension_numbers<[1], [0], [0], [1], [0, 0, 1, 1], [], []>} : vector<32x128xf32>, vector<128x128xf32>, vector<32x128xf32> -> vector<32x128xf32>
    %c31_i32_40 = arith.constant 31 : i32
    %81 = tpu.dynamic_rotate %80 by %c31_i32_40 dim 0 : vector<32x128xf32>, i32 -> vector<32x128xf32>
    %cst_41 = arith.constant 0.000000e+00 : f32
    %82 = vector.shape_cast %36 : vector<32x1xi1> to vector<32x1xi1>
    %83 = vector.broadcast %82 : vector<32x1xi1> to vector<32x128xi1>
    %84 = vector.broadcast %cst_41 : f32 to vector<32x128xf32>
    %85 = arith.select %83, %81, %84 : vector<32x128xi1>, vector<32x128xf32>
    %86 = arith.addf %78, %85 : vector<32x128xf32>
    %c0_42 = arith.constant 0 : index
    %c0_43 = arith.constant 0 : index
    %87 = vector.load %arg10[%c0_42, %c0_43] : memref<1x128xf32, #tpu.memory_space<vmem>>, vector<1x128xf32>
    %88 = vector.broadcast %87 : vector<1x128xf32> to vector<32x128xf32>
    %89 = arith.mulf %86, %88 : vector<32x128xf32>
    %c0_44 = arith.constant 0 : index
    %c0_45 = arith.constant 0 : index
    %90 = vector.load %arg11[%c0_44, %c0_45] : memref<1x128xf32, #tpu.memory_space<vmem>>, vector<1x128xf32>
    %91 = vector.broadcast %90 : vector<1x128xf32> to vector<32x128xf32>
    %92 = arith.addf %89, %91 : vector<32x128xf32>
    %cst_46 = arith.constant 0.000000e+00 : f32
    %93 = vector.broadcast %cst_46 : f32 to vector<32x128xf32>
    %94 = arith.maximumf %92, %93 : vector<32x128xf32>
    %95 = arith.addf %94, %44 : vector<32x128xf32>
    %c0_47 = arith.constant 0 : index
    %c0_48 = arith.constant 0 : index
    %96 = vector.load %arg14[%c0_47, %c0_48] : memref<128x128xf32, #tpu.memory_space<vmem>>, vector<128x128xf32>
    %cst_49 = arith.constant dense<0.000000e+00> : vector<32x128xf32>
    %97 = tpu.matmul %95, %96, %cst_49 {dimension_numbers = #tpu.dot_dimension_numbers<[1], [0], [0], [1], [0, 0, 1, 1], [], []>} : vector<32x128xf32>, vector<128x128xf32>, vector<32x128xf32> -> vector<32x128xf32>
    %c0_50 = arith.constant 0 : index
    %c0_51 = arith.constant 0 : index
    %98 = vector.load %arg13[%c0_50, %c0_51] : memref<128x128xf32, #tpu.memory_space<vmem>>, vector<128x128xf32>
    %cst_52 = arith.constant dense<0.000000e+00> : vector<32x128xf32>
    %99 = tpu.matmul %95, %98, %cst_52 {dimension_numbers = #tpu.dot_dimension_numbers<[1], [0], [0], [1], [0, 0, 1, 1], [], []>} : vector<32x128xf32>, vector<128x128xf32>, vector<32x128xf32> -> vector<32x128xf32>
    %c1_i32_53 = arith.constant 1 : i32
    %100 = tpu.dynamic_rotate %99 by %c1_i32_53 dim 0 : vector<32x128xf32>, i32 -> vector<32x128xf32>
    %cst_54 = arith.constant 0.000000e+00 : f32
    %101 = vector.shape_cast %18 : vector<32x1xi1> to vector<32x1xi1>
    %102 = vector.broadcast %101 : vector<32x1xi1> to vector<32x128xi1>
    %103 = vector.broadcast %cst_54 : f32 to vector<32x128xf32>
    %104 = arith.select %102, %100, %103 : vector<32x128xi1>, vector<32x128xf32>
    %105 = arith.addf %104, %97 : vector<32x128xf32>
    %c0_55 = arith.constant 0 : index
    %c0_56 = arith.constant 0 : index
    %106 = vector.load %arg15[%c0_55, %c0_56] : memref<128x128xf32, #tpu.memory_space<vmem>>, vector<128x128xf32>
    %cst_57 = arith.constant dense<0.000000e+00> : vector<32x128xf32>
    %107 = tpu.matmul %95, %106, %cst_57 {dimension_numbers = #tpu.dot_dimension_numbers<[1], [0], [0], [1], [0, 0, 1, 1], [], []>} : vector<32x128xf32>, vector<128x128xf32>, vector<32x128xf32> -> vector<32x128xf32>
    %c31_i32_58 = arith.constant 31 : i32
    %108 = tpu.dynamic_rotate %107 by %c31_i32_58 dim 0 : vector<32x128xf32>, i32 -> vector<32x128xf32>
    %cst_59 = arith.constant 0.000000e+00 : f32
    %109 = vector.shape_cast %36 : vector<32x1xi1> to vector<32x1xi1>
    %110 = vector.broadcast %109 : vector<32x1xi1> to vector<32x128xi1>
    %111 = vector.broadcast %cst_59 : f32 to vector<32x128xf32>
    %112 = arith.select %110, %108, %111 : vector<32x128xi1>, vector<32x128xf32>
    %113 = arith.addf %105, %112 : vector<32x128xf32>
    %c0_60 = arith.constant 0 : index
    %c0_61 = arith.constant 0 : index
    %114 = vector.load %arg16[%c0_60, %c0_61] : memref<1x128xf32, #tpu.memory_space<vmem>>, vector<1x128xf32>
    %115 = vector.broadcast %114 : vector<1x128xf32> to vector<32x128xf32>
    %116 = arith.mulf %113, %115 : vector<32x128xf32>
    %c0_62 = arith.constant 0 : index
    %c0_63 = arith.constant 0 : index
    %117 = vector.load %arg17[%c0_62, %c0_63] : memref<1x128xf32, #tpu.memory_space<vmem>>, vector<1x128xf32>
    %118 = vector.broadcast %117 : vector<1x128xf32> to vector<32x128xf32>
    %119 = arith.addf %116, %118 : vector<32x128xf32>
    %cst_64 = arith.constant 0.000000e+00 : f32
    %120 = vector.broadcast %cst_64 : f32 to vector<32x128xf32>
    %121 = arith.maximumf %119, %120 : vector<32x128xf32>
    %c0_65 = arith.constant 0 : index
    %c0_66 = arith.constant 0 : index
    %122 = vector.load %arg18[%c0_65, %c0_66] : memref<128x128xf32, #tpu.memory_space<vmem>>, vector<128x128xf32>
    %cst_67 = arith.constant dense<0.000000e+00> : vector<32x128xf32>
    %123 = tpu.matmul %121, %122, %cst_67 {dimension_numbers = #tpu.dot_dimension_numbers<[1], [0], [0], [1], [0, 0, 1, 1], [], []>} : vector<32x128xf32>, vector<128x128xf32>, vector<32x128xf32> -> vector<32x128xf32>
    %c1_i32_68 = arith.constant 1 : i32
    %124 = tpu.dynamic_rotate %123 by %c1_i32_68 dim 0 : vector<32x128xf32>, i32 -> vector<32x128xf32>
    %cst_69 = arith.constant 0.000000e+00 : f32
    %125 = vector.shape_cast %18 : vector<32x1xi1> to vector<32x1xi1>
    %126 = vector.broadcast %125 : vector<32x1xi1> to vector<32x128xi1>
    %127 = vector.broadcast %cst_69 : f32 to vector<32x128xf32>
    %128 = arith.select %126, %124, %127 : vector<32x128xi1>, vector<32x128xf32>
    %c0_70 = arith.constant 0 : index
    %c0_71 = arith.constant 0 : index
    %129 = vector.load %arg19[%c0_70, %c0_71] : memref<128x128xf32, #tpu.memory_space<vmem>>, vector<128x128xf32>
    %cst_72 = arith.constant dense<0.000000e+00> : vector<32x128xf32>
    %130 = tpu.matmul %121, %129, %cst_72 {dimension_numbers = #tpu.dot_dimension_numbers<[1], [0], [0], [1], [0, 0, 1, 1], [], []>} : vector<32x128xf32>, vector<128x128xf32>, vector<32x128xf32> -> vector<32x128xf32>
    %131 = arith.addf %128, %130 : vector<32x128xf32>
    %c0_73 = arith.constant 0 : index
    %c0_74 = arith.constant 0 : index
    %132 = vector.load %arg20[%c0_73, %c0_74] : memref<128x128xf32, #tpu.memory_space<vmem>>, vector<128x128xf32>
    %cst_75 = arith.constant dense<0.000000e+00> : vector<32x128xf32>
    %133 = tpu.matmul %121, %132, %cst_75 {dimension_numbers = #tpu.dot_dimension_numbers<[1], [0], [0], [1], [0, 0, 1, 1], [], []>} : vector<32x128xf32>, vector<128x128xf32>, vector<32x128xf32> -> vector<32x128xf32>
    %c31_i32_76 = arith.constant 31 : i32
    %134 = tpu.dynamic_rotate %133 by %c31_i32_76 dim 0 : vector<32x128xf32>, i32 -> vector<32x128xf32>
    %cst_77 = arith.constant 0.000000e+00 : f32
    %135 = vector.shape_cast %36 : vector<32x1xi1> to vector<32x1xi1>
    %136 = vector.broadcast %135 : vector<32x1xi1> to vector<32x128xi1>
    %137 = vector.broadcast %cst_77 : f32 to vector<32x128xf32>
    %138 = arith.select %136, %134, %137 : vector<32x128xi1>, vector<32x128xf32>
    %139 = arith.addf %131, %138 : vector<32x128xf32>
    %c0_78 = arith.constant 0 : index
    %c0_79 = arith.constant 0 : index
    %140 = vector.load %arg21[%c0_78, %c0_79] : memref<1x128xf32, #tpu.memory_space<vmem>>, vector<1x128xf32>
    %141 = vector.broadcast %140 : vector<1x128xf32> to vector<32x128xf32>
    %142 = arith.mulf %139, %141 : vector<32x128xf32>
    %c0_80 = arith.constant 0 : index
    %c0_81 = arith.constant 0 : index
    %143 = vector.load %arg22[%c0_80, %c0_81] : memref<1x128xf32, #tpu.memory_space<vmem>>, vector<1x128xf32>
    %144 = vector.broadcast %143 : vector<1x128xf32> to vector<32x128xf32>
    %145 = arith.addf %142, %144 : vector<32x128xf32>
    %cst_82 = arith.constant 0.000000e+00 : f32
    %146 = vector.broadcast %cst_82 : f32 to vector<32x128xf32>
    %147 = arith.maximumf %145, %146 : vector<32x128xf32>
    %148 = arith.addf %147, %95 : vector<32x128xf32>
    %c0_83 = arith.constant 0 : index
    %c0_84 = arith.constant 0 : index
    %149 = vector.load %arg24[%c0_83, %c0_84] : memref<128x128xf32, #tpu.memory_space<vmem>>, vector<128x128xf32>
    %cst_85 = arith.constant dense<0.000000e+00> : vector<32x128xf32>
    %150 = tpu.matmul %148, %149, %cst_85 {dimension_numbers = #tpu.dot_dimension_numbers<[1], [0], [0], [1], [0, 0, 1, 1], [], []>} : vector<32x128xf32>, vector<128x128xf32>, vector<32x128xf32> -> vector<32x128xf32>
    %c0_86 = arith.constant 0 : index
    %c0_87 = arith.constant 0 : index
    %151 = vector.load %arg23[%c0_86, %c0_87] : memref<128x128xf32, #tpu.memory_space<vmem>>, vector<128x128xf32>
    %cst_88 = arith.constant dense<0.000000e+00> : vector<32x128xf32>
    %152 = tpu.matmul %148, %151, %cst_88 {dimension_numbers = #tpu.dot_dimension_numbers<[1], [0], [0], [1], [0, 0, 1, 1], [], []>} : vector<32x128xf32>, vector<128x128xf32>, vector<32x128xf32> -> vector<32x128xf32>
    %c1_i32_89 = arith.constant 1 : i32
    %153 = tpu.dynamic_rotate %152 by %c1_i32_89 dim 0 : vector<32x128xf32>, i32 -> vector<32x128xf32>
    %cst_90 = arith.constant 0.000000e+00 : f32
    %154 = vector.shape_cast %18 : vector<32x1xi1> to vector<32x1xi1>
    %155 = vector.broadcast %154 : vector<32x1xi1> to vector<32x128xi1>
    %156 = vector.broadcast %cst_90 : f32 to vector<32x128xf32>
    %157 = arith.select %155, %153, %156 : vector<32x128xi1>, vector<32x128xf32>
    %158 = arith.addf %157, %150 : vector<32x128xf32>
    %c0_91 = arith.constant 0 : index
    %c0_92 = arith.constant 0 : index
    %159 = vector.load %arg25[%c0_91, %c0_92] : memref<128x128xf32, #tpu.memory_space<vmem>>, vector<128x128xf32>
    %cst_93 = arith.constant dense<0.000000e+00> : vector<32x128xf32>
    %160 = tpu.matmul %148, %159, %cst_93 {dimension_numbers = #tpu.dot_dimension_numbers<[1], [0], [0], [1], [0, 0, 1, 1], [], []>} : vector<32x128xf32>, vector<128x128xf32>, vector<32x128xf32> -> vector<32x128xf32>
    %c31_i32_94 = arith.constant 31 : i32
    %161 = tpu.dynamic_rotate %160 by %c31_i32_94 dim 0 : vector<32x128xf32>, i32 -> vector<32x128xf32>
    %cst_95 = arith.constant 0.000000e+00 : f32
    %162 = vector.shape_cast %36 : vector<32x1xi1> to vector<32x1xi1>
    %163 = vector.broadcast %162 : vector<32x1xi1> to vector<32x128xi1>
    %164 = vector.broadcast %cst_95 : f32 to vector<32x128xf32>
    %165 = arith.select %163, %161, %164 : vector<32x128xi1>, vector<32x128xf32>
    %166 = arith.addf %158, %165 : vector<32x128xf32>
    %c0_96 = arith.constant 0 : index
    %c0_97 = arith.constant 0 : index
    %167 = vector.load %arg26[%c0_96, %c0_97] : memref<1x128xf32, #tpu.memory_space<vmem>>, vector<1x128xf32>
    %168 = vector.broadcast %167 : vector<1x128xf32> to vector<32x128xf32>
    %169 = arith.mulf %166, %168 : vector<32x128xf32>
    %c0_98 = arith.constant 0 : index
    %c0_99 = arith.constant 0 : index
    %170 = vector.load %arg27[%c0_98, %c0_99] : memref<1x128xf32, #tpu.memory_space<vmem>>, vector<1x128xf32>
    %171 = vector.broadcast %170 : vector<1x128xf32> to vector<32x128xf32>
    %172 = arith.addf %169, %171 : vector<32x128xf32>
    %cst_100 = arith.constant 0.000000e+00 : f32
    %173 = vector.broadcast %cst_100 : f32 to vector<32x128xf32>
    %174 = arith.maximumf %172, %173 : vector<32x128xf32>
    %c0_101 = arith.constant 0 : index
    %c0_102 = arith.constant 0 : index
    %175 = vector.load %arg28[%c0_101, %c0_102] : memref<128x128xf32, #tpu.memory_space<vmem>>, vector<128x128xf32>
    %cst_103 = arith.constant dense<0.000000e+00> : vector<32x128xf32>
    %176 = tpu.matmul %174, %175, %cst_103 {dimension_numbers = #tpu.dot_dimension_numbers<[1], [0], [0], [1], [0, 0, 1, 1], [], []>} : vector<32x128xf32>, vector<128x128xf32>, vector<32x128xf32> -> vector<32x128xf32>
    %c1_i32_104 = arith.constant 1 : i32
    %177 = tpu.dynamic_rotate %176 by %c1_i32_104 dim 0 : vector<32x128xf32>, i32 -> vector<32x128xf32>
    %cst_105 = arith.constant 0.000000e+00 : f32
    %178 = vector.shape_cast %18 : vector<32x1xi1> to vector<32x1xi1>
    %179 = vector.broadcast %178 : vector<32x1xi1> to vector<32x128xi1>
    %180 = vector.broadcast %cst_105 : f32 to vector<32x128xf32>
    %181 = arith.select %179, %177, %180 : vector<32x128xi1>, vector<32x128xf32>
    %c0_106 = arith.constant 0 : index
    %c0_107 = arith.constant 0 : index
    %182 = vector.load %arg29[%c0_106, %c0_107] : memref<128x128xf32, #tpu.memory_space<vmem>>, vector<128x128xf32>
    %cst_108 = arith.constant dense<0.000000e+00> : vector<32x128xf32>
    %183 = tpu.matmul %174, %182, %cst_108 {dimension_numbers = #tpu.dot_dimension_numbers<[1], [0], [0], [1], [0, 0, 1, 1], [], []>} : vector<32x128xf32>, vector<128x128xf32>, vector<32x128xf32> -> vector<32x128xf32>
    %184 = arith.addf %181, %183 : vector<32x128xf32>
    %c0_109 = arith.constant 0 : index
    %c0_110 = arith.constant 0 : index
    %185 = vector.load %arg30[%c0_109, %c0_110] : memref<128x128xf32, #tpu.memory_space<vmem>>, vector<128x128xf32>
    %cst_111 = arith.constant dense<0.000000e+00> : vector<32x128xf32>
    %186 = tpu.matmul %174, %185, %cst_111 {dimension_numbers = #tpu.dot_dimension_numbers<[1], [0], [0], [1], [0, 0, 1, 1], [], []>} : vector<32x128xf32>, vector<128x128xf32>, vector<32x128xf32> -> vector<32x128xf32>
    %c31_i32_112 = arith.constant 31 : i32
    %187 = tpu.dynamic_rotate %186 by %c31_i32_112 dim 0 : vector<32x128xf32>, i32 -> vector<32x128xf32>
    %cst_113 = arith.constant 0.000000e+00 : f32
    %188 = vector.shape_cast %36 : vector<32x1xi1> to vector<32x1xi1>
    %189 = vector.broadcast %188 : vector<32x1xi1> to vector<32x128xi1>
    %190 = vector.broadcast %cst_113 : f32 to vector<32x128xf32>
    %191 = arith.select %189, %187, %190 : vector<32x128xi1>, vector<32x128xf32>
    %192 = arith.addf %184, %191 : vector<32x128xf32>
    %c0_114 = arith.constant 0 : index
    %c0_115 = arith.constant 0 : index
    %193 = vector.load %arg31[%c0_114, %c0_115] : memref<1x128xf32, #tpu.memory_space<vmem>>, vector<1x128xf32>
    %194 = vector.broadcast %193 : vector<1x128xf32> to vector<32x128xf32>
    %195 = arith.mulf %192, %194 : vector<32x128xf32>
    %c0_116 = arith.constant 0 : index
    %c0_117 = arith.constant 0 : index
    %196 = vector.load %arg32[%c0_116, %c0_117] : memref<1x128xf32, #tpu.memory_space<vmem>>, vector<1x128xf32>
    %197 = vector.broadcast %196 : vector<1x128xf32> to vector<32x128xf32>
    %198 = arith.addf %195, %197 : vector<32x128xf32>
    %cst_118 = arith.constant 0.000000e+00 : f32
    %199 = vector.broadcast %cst_118 : f32 to vector<32x128xf32>
    %200 = arith.maximumf %198, %199 : vector<32x128xf32>
    %201 = arith.addf %200, %148 : vector<32x128xf32>
    %c0_119 = arith.constant 0 : index
    %c0_120 = arith.constant 0 : index
    %202 = vector.load %arg34[%c0_119, %c0_120] : memref<128x128xf32, #tpu.memory_space<vmem>>, vector<128x128xf32>
    %cst_121 = arith.constant dense<0.000000e+00> : vector<32x128xf32>
    %203 = tpu.matmul %201, %202, %cst_121 {dimension_numbers = #tpu.dot_dimension_numbers<[1], [0], [0], [1], [0, 0, 1, 1], [], []>} : vector<32x128xf32>, vector<128x128xf32>, vector<32x128xf32> -> vector<32x128xf32>
    %c0_122 = arith.constant 0 : index
    %c0_123 = arith.constant 0 : index
    %204 = vector.load %arg33[%c0_122, %c0_123] : memref<128x128xf32, #tpu.memory_space<vmem>>, vector<128x128xf32>
    %cst_124 = arith.constant dense<0.000000e+00> : vector<32x128xf32>
    %205 = tpu.matmul %201, %204, %cst_124 {dimension_numbers = #tpu.dot_dimension_numbers<[1], [0], [0], [1], [0, 0, 1, 1], [], []>} : vector<32x128xf32>, vector<128x128xf32>, vector<32x128xf32> -> vector<32x128xf32>
    %c1_i32_125 = arith.constant 1 : i32
    %206 = tpu.dynamic_rotate %205 by %c1_i32_125 dim 0 : vector<32x128xf32>, i32 -> vector<32x128xf32>
    %cst_126 = arith.constant 0.000000e+00 : f32
    %207 = vector.shape_cast %18 : vector<32x1xi1> to vector<32x1xi1>
    %208 = vector.broadcast %207 : vector<32x1xi1> to vector<32x128xi1>
    %209 = vector.broadcast %cst_126 : f32 to vector<32x128xf32>
    %210 = arith.select %208, %206, %209 : vector<32x128xi1>, vector<32x128xf32>
    %211 = arith.addf %210, %203 : vector<32x128xf32>
    %c0_127 = arith.constant 0 : index
    %c0_128 = arith.constant 0 : index
    %212 = vector.load %arg35[%c0_127, %c0_128] : memref<128x128xf32, #tpu.memory_space<vmem>>, vector<128x128xf32>
    %cst_129 = arith.constant dense<0.000000e+00> : vector<32x128xf32>
    %213 = tpu.matmul %201, %212, %cst_129 {dimension_numbers = #tpu.dot_dimension_numbers<[1], [0], [0], [1], [0, 0, 1, 1], [], []>} : vector<32x128xf32>, vector<128x128xf32>, vector<32x128xf32> -> vector<32x128xf32>
    %c31_i32_130 = arith.constant 31 : i32
    %214 = tpu.dynamic_rotate %213 by %c31_i32_130 dim 0 : vector<32x128xf32>, i32 -> vector<32x128xf32>
    %cst_131 = arith.constant 0.000000e+00 : f32
    %215 = vector.shape_cast %36 : vector<32x1xi1> to vector<32x1xi1>
    %216 = vector.broadcast %215 : vector<32x1xi1> to vector<32x128xi1>
    %217 = vector.broadcast %cst_131 : f32 to vector<32x128xf32>
    %218 = arith.select %216, %214, %217 : vector<32x128xi1>, vector<32x128xf32>
    %219 = arith.addf %211, %218 : vector<32x128xf32>
    %c0_132 = arith.constant 0 : index
    %c0_133 = arith.constant 0 : index
    %220 = vector.load %arg36[%c0_132, %c0_133] : memref<1x128xf32, #tpu.memory_space<vmem>>, vector<1x128xf32>
    %221 = vector.broadcast %220 : vector<1x128xf32> to vector<32x128xf32>
    %222 = arith.mulf %219, %221 : vector<32x128xf32>
    %c0_134 = arith.constant 0 : index
    %c0_135 = arith.constant 0 : index
    %223 = vector.load %arg37[%c0_134, %c0_135] : memref<1x128xf32, #tpu.memory_space<vmem>>, vector<1x128xf32>
    %224 = vector.broadcast %223 : vector<1x128xf32> to vector<32x128xf32>
    %225 = arith.addf %222, %224 : vector<32x128xf32>
    %cst_136 = arith.constant 0.000000e+00 : f32
    %226 = vector.broadcast %cst_136 : f32 to vector<32x128xf32>
    %227 = arith.maximumf %225, %226 : vector<32x128xf32>
    %c0_137 = arith.constant 0 : index
    %c0_138 = arith.constant 0 : index
    %228 = vector.load %arg38[%c0_137, %c0_138] : memref<128x128xf32, #tpu.memory_space<vmem>>, vector<128x128xf32>
    %cst_139 = arith.constant dense<0.000000e+00> : vector<32x128xf32>
    %229 = tpu.matmul %227, %228, %cst_139 {dimension_numbers = #tpu.dot_dimension_numbers<[1], [0], [0], [1], [0, 0, 1, 1], [], []>} : vector<32x128xf32>, vector<128x128xf32>, vector<32x128xf32> -> vector<32x128xf32>
    %c1_i32_140 = arith.constant 1 : i32
    %230 = tpu.dynamic_rotate %229 by %c1_i32_140 dim 0 : vector<32x128xf32>, i32 -> vector<32x128xf32>
    %cst_141 = arith.constant 0.000000e+00 : f32
    %231 = vector.shape_cast %18 : vector<32x1xi1> to vector<32x1xi1>
    %232 = vector.broadcast %231 : vector<32x1xi1> to vector<32x128xi1>
    %233 = vector.broadcast %cst_141 : f32 to vector<32x128xf32>
    %234 = arith.select %232, %230, %233 : vector<32x128xi1>, vector<32x128xf32>
    %c0_142 = arith.constant 0 : index
    %c0_143 = arith.constant 0 : index
    %235 = vector.load %arg39[%c0_142, %c0_143] : memref<128x128xf32, #tpu.memory_space<vmem>>, vector<128x128xf32>
    %cst_144 = arith.constant dense<0.000000e+00> : vector<32x128xf32>
    %236 = tpu.matmul %227, %235, %cst_144 {dimension_numbers = #tpu.dot_dimension_numbers<[1], [0], [0], [1], [0, 0, 1, 1], [], []>} : vector<32x128xf32>, vector<128x128xf32>, vector<32x128xf32> -> vector<32x128xf32>
    %237 = arith.addf %234, %236 : vector<32x128xf32>
    %c0_145 = arith.constant 0 : index
    %c0_146 = arith.constant 0 : index
    %238 = vector.load %arg40[%c0_145, %c0_146] : memref<128x128xf32, #tpu.memory_space<vmem>>, vector<128x128xf32>
    %cst_147 = arith.constant dense<0.000000e+00> : vector<32x128xf32>
    %239 = tpu.matmul %227, %238, %cst_147 {dimension_numbers = #tpu.dot_dimension_numbers<[1], [0], [0], [1], [0, 0, 1, 1], [], []>} : vector<32x128xf32>, vector<128x128xf32>, vector<32x128xf32> -> vector<32x128xf32>
    %c31_i32_148 = arith.constant 31 : i32
    %240 = tpu.dynamic_rotate %239 by %c31_i32_148 dim 0 : vector<32x128xf32>, i32 -> vector<32x128xf32>
    %cst_149 = arith.constant 0.000000e+00 : f32
    %241 = vector.shape_cast %36 : vector<32x1xi1> to vector<32x1xi1>
    %242 = vector.broadcast %241 : vector<32x1xi1> to vector<32x128xi1>
    %243 = vector.broadcast %cst_149 : f32 to vector<32x128xf32>
    %244 = arith.select %242, %240, %243 : vector<32x128xi1>, vector<32x128xf32>
    %245 = arith.addf %237, %244 : vector<32x128xf32>
    %c0_150 = arith.constant 0 : index
    %c0_151 = arith.constant 0 : index
    %246 = vector.load %arg41[%c0_150, %c0_151] : memref<1x128xf32, #tpu.memory_space<vmem>>, vector<1x128xf32>
    %247 = vector.broadcast %246 : vector<1x128xf32> to vector<32x128xf32>
    %248 = arith.mulf %245, %247 : vector<32x128xf32>
    %c0_152 = arith.constant 0 : index
    %c0_153 = arith.constant 0 : index
    %249 = vector.load %arg42[%c0_152, %c0_153] : memref<1x128xf32, #tpu.memory_space<vmem>>, vector<1x128xf32>
    %250 = vector.broadcast %249 : vector<1x128xf32> to vector<32x128xf32>
    %251 = arith.addf %248, %250 : vector<32x128xf32>
    %cst_154 = arith.constant 0.000000e+00 : f32
    %252 = vector.broadcast %cst_154 : f32 to vector<32x128xf32>
    %253 = arith.maximumf %251, %252 : vector<32x128xf32>
    %254 = arith.addf %253, %201 : vector<32x128xf32>
    %c0_155 = arith.constant 0 : index
    %c0_156 = arith.constant 0 : index
    %255 = vector.load %arg43[%c0_155, %c0_156] : memref<32x128xf32, #tpu.memory_space<vmem>>, vector<32x128xf32>
    tpu.vector_store %arg43[%c0_155, %c0_156], %254 {strides = array<i32>} : memref<32x128xf32, #tpu.memory_space<vmem>>, vector<32x128xf32>,
    return
  }
  func.func @transform_0(%arg0: i32) -> (i32, i32) {
    %c0_i32 = arith.constant 0 : i32
    %c0_i32_0 = arith.constant 0 : i32
    return %arg0, %c0_i32 : i32, i32
  }
  func.func @transform_1(%arg0: i32) -> (i32, i32) {
    %c0_i32 = arith.constant 0 : i32
    %c0_i32_0 = arith.constant 0 : i32
    %c0_i32_1 = arith.constant 0 : i32
    return %c0_i32, %c0_i32_0 : i32, i32
  }
  func.func @transform_2(%arg0: i32) -> (i32, i32) {
    %c0_i32 = arith.constant 0 : i32
    %c0_i32_0 = arith.constant 0 : i32
    %c0_i32_1 = arith.constant 0 : i32
    return %c0_i32, %c0_i32_0 : i32, i32
  }
  func.func @transform_3(%arg0: i32) -> (i32, i32) {
    %c0_i32 = arith.constant 0 : i32
    %c0_i32_0 = arith.constant 0 : i32
    %c0_i32_1 = arith.constant 0 : i32
    return %c0_i32, %c0_i32_0 : i32, i32
  }
  func.func @transform_4(%arg0: i32) -> (i32, i32) {
    %c0_i32 = arith.constant 0 : i32
    %c0_i32_0 = arith.constant 0 : i32
    %c0_i32_1 = arith.constant 0 : i32
    return %c0_i32, %c0_i32_0 : i32, i32
  }
  func.func @transform_5(%arg0: i32) -> (i32, i32) {
    %c0_i32 = arith.constant 0 : i32
    %c0_i32_0 = arith.constant 0 : i32
    %c0_i32_1 = arith.constant 0 : i32
    return %c0_i32, %c0_i32_0 : i32, i32
  }
  func.func @transform_6(%arg0: i32) -> (i32, i32) {
    %c0_i32 = arith.constant 0 : i32
    %c0_i32_0 = arith.constant 0 : i32
    %c0_i32_1 = arith.constant 0 : i32
    return %c0_i32, %c0_i32_0 : i32, i32
  }
  func.func @transform_7(%arg0: i32) -> (i32, i32) {
    %c0_i32 = arith.constant 0 : i32
    %c0_i32_0 = arith.constant 0 : i32
    %c0_i32_1 = arith.constant 0 : i32
    return %c0_i32, %c0_i32_0 : i32, i32
  }
  func.func @transform_8(%arg0: i32) -> (i32, i32) {
    %c0_i32 = arith.constant 0 : i32
    %c0_i32_0 = arith.constant 0 : i32
    %c0_i32_1 = arith.constant 0 : i32
    return %c0_i32, %c0_i32_0 : i32, i32
  }
  func.func @transform_9(%arg0: i32) -> (i32, i32) {
    %c0_i32 = arith.constant 0 : i32
    %c0_i32_0 = arith.constant 0 : i32
    %c0_i32_1 = arith.constant 0 : i32
    return %c0_i32, %c0_i32_0 : i32, i32
  }
  func.func @transform_10(%arg0: i32) -> (i32, i32) {
    %c0_i32 = arith.constant 0 : i32
    %c0_i32_0 = arith.constant 0 : i32
    %c0_i32_1 = arith.constant 0 : i32
    return %c0_i32, %c0_i32_0 : i32, i32
  }
  func.func @transform_11(%arg0: i32) -> (i32, i32) {
    %c0_i32 = arith.constant 0 : i32
    %c0_i32_0 = arith.constant 0 : i32
    %c0_i32_1 = arith.constant 0 : i32
    return %c0_i32, %c0_i32_0 : i32, i32
  }
  func.func @transform_12(%arg0: i32) -> (i32, i32) {
    %c0_i32 = arith.constant 0 : i32
    %c0_i32_0 = arith.constant 0 : i32
    %c0_i32_1 = arith.constant 0 : i32
    return %c0_i32, %c0_i32_0 : i32, i32
  }
  func.func @transform_13(%arg0: i32) -> (i32, i32) {
    %c0_i32 = arith.constant 0 : i32
    %c0_i32_0 = arith.constant 0 : i32
    %c0_i32_1 = arith.constant 0 : i32
    return %c0_i32, %c0_i32_0 : i32, i32
  }
  func.func @transform_14(%arg0: i32) -> (i32, i32) {
    %c0_i32 = arith.constant 0 : i32
    %c0_i32_0 = arith.constant 0 : i32
    %c0_i32_1 = arith.constant 0 : i32
    return %c0_i32, %c0_i32_0 : i32, i32
  }
  func.func @transform_15(%arg0: i32) -> (i32, i32) {
    %c0_i32 = arith.constant 0 : i32
    %c0_i32_0 = arith.constant 0 : i32
    %c0_i32_1 = arith.constant 0 : i32
    return %c0_i32, %c0_i32_0 : i32, i32
  }
  func.func @transform_16(%arg0: i32) -> (i32, i32) {
    %c0_i32 = arith.constant 0 : i32
    %c0_i32_0 = arith.constant 0 : i32
    %c0_i32_1 = arith.constant 0 : i32
    return %c0_i32, %c0_i32_0 : i32, i32
  }
  func.func @transform_17(%arg0: i32) -> (i32, i32) {
    %c0_i32 = arith.constant 0 : i32
    %c0_i32_0 = arith.constant 0 : i32
    %c0_i32_1 = arith.constant 0 : i32
    return %c0_i32, %c0_i32_0 : i32, i32
  }
  func.func @transform_18(%arg0: i32) -> (i32, i32) {
    %c0_i32 = arith.constant 0 : i32
    %c0_i32_0 = arith.constant 0 : i32
    %c0_i32_1 = arith.constant 0 : i32
    return %c0_i32, %c0_i32_0 : i32, i32
  }
  func.func @transform_19(%arg0: i32) -> (i32, i32) {
    %c0_i32 = arith.constant 0 : i32
    %c0_i32_0 = arith.constant 0 : i32
    %c0_i32_1 = arith.constant 0 : i32
    return %c0_i32, %c0_i32_0 : i32, i32
  }
  func.func @transform_20(%arg0: i32) -> (i32, i32) {
    %c0_i32 = arith.constant 0 : i32
    %c0_i32_0 = arith.constant 0 : i32
    %c0_i32_1 = arith.constant 0 : i32
    return %c0_i32, %c0_i32_0 : i32, i32
  }
  func.func @transform_21(%arg0: i32) -> (i32, i32) {
    %c0_i32 = arith.constant 0 : i32
    %c0_i32_0 = arith.constant 0 : i32
    %c0_i32_1 = arith.constant 0 : i32
    return %c0_i32, %c0_i32_0 : i32, i32
  }
  func.func @transform_22(%arg0: i32) -> (i32, i32) {
    %c0_i32 = arith.constant 0 : i32
    %c0_i32_0 = arith.constant 0 : i32
    %c0_i32_1 = arith.constant 0 : i32
    return %c0_i32, %c0_i32_0 : i32, i32
  }
  func.func @transform_23(%arg0: i32) -> (i32, i32) {
    %c0_i32 = arith.constant 0 : i32
    %c0_i32_0 = arith.constant 0 : i32
    %c0_i32_1 = arith.constant 0 : i32
    return %c0_i32, %c0_i32_0 : i32, i32
  }
  func.func @transform_24(%arg0: i32) -> (i32, i32) {
    %c0_i32 = arith.constant 0 : i32
    %c0_i32_0 = arith.constant 0 : i32
    %c0_i32_1 = arith.constant 0 : i32
    return %c0_i32, %c0_i32_0 : i32, i32
  }
  func.func @transform_25(%arg0: i32) -> (i32, i32) {
    %c0_i32 = arith.constant 0 : i32
    %c0_i32_0 = arith.constant 0 : i32
    %c0_i32_1 = arith.constant 0 : i32
    return %c0_i32, %c0_i32_0 : i32, i32
  }
  func.func @transform_26(%arg0: i32) -> (i32, i32) {
    %c0_i32 = arith.constant 0 : i32
    %c0_i32_0 = arith.constant 0 : i32
    %c0_i32_1 = arith.constant 0 : i32
    return %c0_i32, %c0_i32_0 : i32, i32
  }
  func.func @transform_27(%arg0: i32) -> (i32, i32) {
    %c0_i32 = arith.constant 0 : i32
    %c0_i32_0 = arith.constant 0 : i32
    %c0_i32_1 = arith.constant 0 : i32
    return %c0_i32, %c0_i32_0 : i32, i32
  }
  func.func @transform_28(%arg0: i32) -> (i32, i32) {
    %c0_i32 = arith.constant 0 : i32
    %c0_i32_0 = arith.constant 0 : i32
    %c0_i32_1 = arith.constant 0 : i32
    return %c0_i32, %c0_i32_0 : i32, i32
  }
  func.func @transform_29(%arg0: i32) -> (i32, i32) {
    %c0_i32 = arith.constant 0 : i32
    %c0_i32_0 = arith.constant 0 : i32
    %c0_i32_1 = arith.constant 0 : i32
    return %c0_i32, %c0_i32_0 : i32, i32
  }
  func.func @transform_30(%arg0: i32) -> (i32, i32) {
    %c0_i32 = arith.constant 0 : i32
    %c0_i32_0 = arith.constant 0 : i32
    %c0_i32_1 = arith.constant 0 : i32
    return %c0_i32, %c0_i32_0 : i32, i32
  }
  func.func @transform_31(%arg0: i32) -> (i32, i32) {
    %c0_i32 = arith.constant 0 : i32
    %c0_i32_0 = arith.constant 0 : i32
    %c0_i32_1 = arith.constant 0 : i32
    return %c0_i32, %c0_i32_0 : i32, i32
  }
  func.func @transform_32(%arg0: i32) -> (i32, i32) {
    %c0_i32 = arith.constant 0 : i32
    %c0_i32_0 = arith.constant 0 : i32
    %c0_i32_1 = arith.constant 0 : i32
    return %c0_i32, %c0_i32_0 : i32, i32
  }
  func.func @transform_33(%arg0: i32) -> (i32, i32) {
    %c0_i32 = arith.constant 0 : i32
    %c0_i32_0 = arith.constant 0 : i32
    %c0_i32_1 = arith.constant 0 : i32
    return %c0_i32, %c0_i32_0 : i32, i32
  }
  func.func @transform_34(%arg0: i32) -> (i32, i32) {
    %c0_i32 = arith.constant 0 : i32
    %c0_i32_0 = arith.constant 0 : i32
    %c0_i32_1 = arith.constant 0 : i32
    return %c0_i32, %c0_i32_0 : i32, i32
  }
  func.func @transform_35(%arg0: i32) -> (i32, i32) {
    %c0_i32 = arith.constant 0 : i32
    %c0_i32_0 = arith.constant 0 : i32
    %c0_i32_1 = arith.constant 0 : i32
    return %c0_i32, %c0_i32_0 : i32, i32
  }
  func.func @transform_36(%arg0: i32) -> (i32, i32) {
    %c0_i32 = arith.constant 0 : i32
    %c0_i32_0 = arith.constant 0 : i32
    %c0_i32_1 = arith.constant 0 : i32
    return %c0_i32, %c0_i32_0 : i32, i32
  }
  func.func @transform_37(%arg0: i32) -> (i32, i32) {
    %c0_i32 = arith.constant 0 : i32
    %c0_i32_0 = arith.constant 0 : i32
    %c0_i32_1 = arith.constant 0 : i32
    return %c0_i32, %c0_i32_0 : i32, i32
  }
  func.func @transform_38(%arg0: i32) -> (i32, i32) {
    %c0_i32 = arith.constant 0 : i32
    %c0_i32_0 = arith.constant 0 : i32
    %c0_i32_1 = arith.constant 0 : i32
    return %c0_i32, %c0_i32_0 : i32, i32
  }
  func.func @transform_39(%arg0: i32) -> (i32, i32) {
    %c0_i32 = arith.constant 0 : i32
    %c0_i32_0 = arith.constant 0 : i32
    %c0_i32_1 = arith.constant 0 : i32
    return %c0_i32, %c0_i32_0 : i32, i32
  }
  func.func @transform_40(%arg0: i32) -> (i32, i32) {
    %c0_i32 = arith.constant 0 : i32
    %c0_i32_0 = arith.constant 0 : i32
    %c0_i32_1 = arith.constant 0 : i32
    return %c0_i32, %c0_i32_0 : i32, i32
  }
  func.func @transform_41(%arg0: i32) -> (i32, i32) {
    %c0_i32 = arith.constant 0 : i32
    %c0_i32_0 = arith.constant 0 : i32
    %c0_i32_1 = arith.constant 0 : i32
    return %c0_i32, %c0_i32_0 : i32, i32
  }
  func.func @transform_42(%arg0: i32) -> (i32, i32) {
    %c0_i32 = arith.constant 0 : i32
    %c0_i32_0 = arith.constant 0 : i32
    return %arg0, %c0_i32 : i32, i32
  }
}

</mosaic_0001>

<bundles_post_ra>
// kernel: _lambda_.1
= control target key start
LH: loop header
LB: loop body
LE: loop exit
PB: predicated region body
PF: predicated region fallthrough
CT: control target
= control target key end

     0   :  { %s5218_s6 = smov 1   ;;  %s5219_s10 = smov 2   ;;  %s6069_s0 = inlined_call_operand.smem [shape: u32[43], index: -1, kind: input, shape index: {}] }
   0x1   :  { %s5287_s5 = sld [smem:[%s6069_s0]]   ;;  %s5220_s14 = smov 3  }
   0x2   :  { %s5292_s9 = sld [smem:[%s6069_s0 + %s5218_s6]]   ;;  %s5221_s18 = smov 4  }
   0x3   :  { %s5297_s13 = sld [smem:[%s6069_s0 + %s5219_s10]]   ;;  %s5222_s22 = smov 5  }
   0x4   :  { %s5302_s17 = sld [smem:[%s6069_s0 + %s5220_s14]]   ;;  %s5223_s26 = smov 6  }
   0x5   :  { %s5307_s21 = sld [smem:[%s6069_s0 + %s5221_s18]]   ;;  %s5224_s30 = smov 7  }
   0x6   :  { %s5312_s25 = sld [smem:[%s6069_s0 + %s5222_s22]]   ;;  %s5225_s4 = smov 8  }
   0x7   :  { %6078 = sst [smem:[#allocation36_spill]] %s5287_s5  ;;  %s5226_s10 = smov 9  }
   0x8   :  { %s5317_s29 = sld [smem:[%s6069_s0 + %s5223_s26]]   ;;  %s5227_s15 = smov 10  }
   0x9   :  { %6079 = sst [smem:[#allocation37_spill]] %s5297_s13  ;;  %s5228_s20 = smov 11  }
   0xa   :  { %s5322_s3 = sld [smem:[%s6069_s0 + %s5224_s30]]   ;;  %s5229_s26 = smov 12  }
   0xb   :  { %6080 = sst [smem:[#allocation38_spill]] %s5307_s21  ;;  %s5230_s1 = smov 13  }
   0xc   :  { %6081 = sst [smem:[#allocation39_spill]] %s5312_s25  ;;  %s5231_s7 = smov 14  }
   0xd   :  { %s5327_s8 = sld [smem:[%s6069_s0 + %s5225_s4]]   ;;  %s5233_s22 = smov 16  }
   0xe   :  { %s5332_s14 = sld [smem:[%s6069_s0 + %s5226_s10]]   ;;  %s5234_s28 = smov 17  }
   0xf   :  { %s5337_s19 = sld [smem:[%s6069_s0 + %s5227_s15]]   ;;  %s5232_s15 = smov 15  }
  0x10   :  { %s5342_s24 = sld [smem:[%s6069_s0 + %s5228_s20]]  }
  0x11   :  { %s5347_s30 = sld [smem:[%s6069_s0 + %s5229_s26]]  }
  0x12   :  { %s5352_s6 = sld [smem:[%s6069_s0 + %s5230_s1]]  }
  0x13   :  { %s5357_s12 = sld [smem:[%s6069_s0 + %s5231_s7]]   ;;  %s5235_s7 = smov 18  }
  0x14   :  { %6082 = sst [smem:[#allocation40_spill]] %s5332_s14 }
  0x15   :  { %6083 = sst [smem:[#allocation41_spill]] %s5337_s19 }
  0x16   :  { %6084 = sst [smem:[#allocation42_spill]] %s5342_s24 }
  0x17   :  { %s5362_s20 = sld [smem:[%s6069_s0 + %s5232_s15]]   ;;  %s5236_s15 = smov 19  }
  0x18   :  { %s5367_s27 = sld [smem:[%s6069_s0 + %s5233_s22]]   ;;  %s5237_s22 = smov 20  }
  0x19   :  { %s5372_s4 = sld [smem:[%s6069_s0 + %s5234_s28]]   ;;  %s5238_s28 = smov 21  }
  0x1a   :  { %s5377_s24 = sld [smem:[%s6069_s0 + %s5235_s7]]   ;;  %s5239_s7 = smov 22  }
  0x1b   :  { %s5392_s19 = sld [smem:[%s6069_s0 + %s5238_s28]]   ;;  %s5242_s28 = smov 25  }
  0x1c   :  { %s5397_s14 = sld [smem:[%s6069_s0 + %s5239_s7]]   ;;  %s5243_s7 = smov 26  }
  0x1d   :  { %6085 = sst [smem:[#allocation43_spill]] %s5362_s20 }
  0x1e   :  { %6086 = sst [smem:[#allocation44_spill]] %s5367_s27 }
  0x1f   :  { %s5382_s20 = sld [smem:[%s6069_s0 + %s5236_s15]]   ;;  %s5240_s15 = smov 23  }
  0x20   :  { %s5387_s27 = sld [smem:[%s6069_s0 + %s5237_s22]]   ;;  %s5241_s22 = smov 24  }
  0x21   :  { %6088 = sst [smem:[#allocation46_spill]] %s5392_s19 }
  0x22   :  { %s5402_s25 = sld [smem:[%s6069_s0 + %s5240_s15]]   ;;  %s5244_s15 = smov 27  }
  0x23   :  { %s5412_s19 = sld [smem:[%s6069_s0 + %s5242_s28]]   ;;  %s5246_s28 = smov 29  }
  0x24   :  { %s5417_s21 = sld [smem:[%s6069_s0 + %s5243_s7]]   ;;  %s5247_s7 = smov 30  }
  0x25   :  { %s5422_s5 = sld [smem:[%s6069_s0 + %s5244_s15]]   ;;  %s5248_s15 = smov 31  }
  0x26   :  { %6087 = sst [smem:[#allocation45_spill]] %s5387_s27 }
  0x27   :  { %s5407_s27 = sld [smem:[%s6069_s0 + %s5241_s22]]   ;;  %s5245_s22 = smov 28  }
  0x28   :  { %s5427_s13 = sld [smem:[%s6069_s0 + %s5245_s22]]   ;;  %s5249_s22 = smov 32  }
  0x29   :  { %6089 = sst [smem:[#allocation47_spill]] %s5412_s19 }
  0x2a   :  { %6090 = sst [smem:[#allocation48_spill]] %s5417_s21 }
  0x2b   :  { %6091 = sst [smem:[#allocation49_spill]] %s5422_s5 }
  0x2c   :  { %s5432_s19 = sld [smem:[%s6069_s0 + %s5246_s28]]   ;;  %s5250_s28 = smov 33  }
  0x2d   :  { %s5437_s21 = sld [smem:[%s6069_s0 + %s5247_s7]]   ;;  %s5251_s7 = smov 34  }
  0x2e   :  { %6092 = sst [smem:[#allocation50_spill]] %s5427_s13 }
  0x2f   :  { %s5442_s5 = sld [smem:[%s6069_s0 + %s5248_s15]]   ;;  %s5252_s15 = smov 35  }
  0x30   :  { %s5447_s13 = sld [smem:[%s6069_s0 + %s5249_s22]]   ;;  %s5253_s22 = smov 36  }
  0x32   :  { %6093 = sst [smem:[#allocation51_spill]] %s5432_s19 }
  0x33   :  { %6094 = sst [smem:[#allocation52_spill]] %s5437_s21 }
  0x34   :  { %s5452_s19 = sld [smem:[%s6069_s0 + %s5250_s28]]   ;;  %s5254_s28 = smov 37  }
  0x35   :  { %6095 = sst [smem:[#allocation53_spill]] %s5442_s5 }
  0x36   :  { %6096 = sst [smem:[#allocation54_spill]] %s5447_s13 }
  0x37   :  { %s5457_s21 = sld [smem:[%s6069_s0 + %s5251_s7]]   ;;  %s5255_s7 = smov 38  }
  0x38   :  { %s5462_s5 = sld [smem:[%s6069_s0 + %s5252_s15]]   ;;  %s5256_s15 = smov 39  }
  0x39   :  { %s5467_s13 = sld [smem:[%s6069_s0 + %s5253_s22]]   ;;  %s5257_s22 = smov 40  }
  0x3a   :  { %6097 = sst [smem:[#allocation55_spill]] %s5452_s19 }
  0x3b   :  { %s5472_s19 = sld [smem:[%s6069_s0 + %s5254_s28]]   ;;  %s5258_s28 = smov 41  }
  0x3d   :  { %6098 = sst [smem:[#allocation56_spill]] %s5457_s21 }
  0x3e   :  { %6099 = sst [smem:[#allocation57_spill]] %s5462_s5 }
  0x3f   :  { %6100 = sst [smem:[#allocation58_spill]] %s5467_s13 }
  0x40   :  { %s5477_s21 = sld [smem:[%s6069_s0 + %s5255_s7]]   ;;  %s5259_s7 = smov 42  }
  0x41   :  { %6101 = sst [smem:[#allocation59_spill]] %s5472_s19 }
  0x42   :  { %s5482_s5 = sld [smem:[%s6069_s0 + %s5256_s15]]  }
  0x43   :  { %s5487_s13 = sld [smem:[%s6069_s0 + %s5257_s22]]  }
  0x44   :  { %s5492_s19 = sld [smem:[%s6069_s0 + %s5258_s28]]  }
  0x46   :  { %6102 = sst [smem:[#allocation60_spill]] %s5477_s21 }
  0x47   :  { %s5497_s21 = sld [smem:[%s6069_s0 + %s5259_s7]]  }
  0x48   :  { %90 = vsyncpa [#allocation3], 0 }
  0x49   :  { %91 = vsyncpa [#allocation5], 0 }
  0x4a   :  { %92 = vsyncpa [#allocation8], 0 }
  0x4b   :  { %93 = vsyncpa [#allocation11], 0 }
  0x4c   :  { %94 = vsyncpa [#allocation14], 0 }
  0x4d   :  { %95 = vsyncpa [#allocation17], 0 }
  0x4e   :  { %96 = vsyncpa [#allocation20], 0 }
  0x4f   :  { %97 = vsyncpa [#allocation23], 0 }
  0x50   :  { %98 = vsyncpa [#allocation26], 0  ;;  %s5260_s15 = smov [#allocation4]   ;;  %s5261_s18 = smov [#allocation7]  }
  0x51   :  { %s120_s16 = sshll.u32 %s5260_s15, 4  ;;  %s148_s22 = sshll.u32 %s5261_s18, 4  ;;  %s121_s16 = int_to_ptr.vmem [resolvable:$true] %s120_s16  ;;  %s149_s22 = int_to_ptr.vmem [resolvable:$true] %s148_s22 }
  0x52   :  { %s4888_s23 = scalar_lea.vmem %s121_s16, 2048  ;;  %p4893_p1 = scmp.lt.s32.totalorder %s121_s16, %s121_s16 }
  0x53   :  { %p4889_p0 = scmp.ne.s32.totalorder %s121_s16, %s4888_s23  ;;  %p4894_p2 = scmp.lt.s32.totalorder %s4888_s23, %s4888_s23 }
  0x55   :  { %p4895_p3 = por %p4894_p2, %p4893_p1 }
  0x57   :  { %p4896_p4 = pnand %p4895_p3, %p4889_p0 }
  0x59   :  { %4899 = shalt.err (!%p4896_p4)
}
  0x5a   :  { %s5262_s0 = smov 128   ;;  %s5263_s26 = smov 8  }
  0x5b   :  { %126 = dma.hbm_to_vmem [thread:$0]  %s5302_s17, 2048, %s121_s16, [#allocation5], %s5262_s0, %s5262_s0, %s5263_s26  }
  0x5c   :  { %s4908_s28 = scalar_lea.vmem %s149_s22, 2048  ;;  %p4913_p6 = scmp.lt.s32.totalorder %s149_s22, %s149_s22 }
  0x5d   :  { %p4909_p5 = scmp.ne.s32.totalorder %s149_s22, %s4908_s28  ;;  %p4914_p7 = scmp.lt.s32.totalorder %s4908_s28, %s4908_s28 }
  0x5f   :  { %p4915_p8 = por %p4914_p7, %p4913_p6 }
  0x61   :  { %p4916_p9 = pnand %p4915_p8, %p4909_p5 }
  0x63   :  { %4919 = shalt.err (!%p4916_p9)
}
  0x64   :  { %154 = dma.hbm_to_vmem [thread:$0]  %s5322_s3, 2048, %s149_s22, [#allocation8], %s5262_s0, %s5262_s0, %s5263_s26  }
  0x65   :  { %s5264_s1 = smov [#allocation10]   ;;  %s5265_s7 = smov [#allocation13]  }
  0x66   :  { %s178_s2 = sshll.u32 %s5264_s1, 4  ;;  %s202_s10 = sshll.u32 %s5265_s7, 4  ;;  %s179_s2 = int_to_ptr.vmem [resolvable:$true] %s178_s2  ;;  %s203_s10 = int_to_ptr.vmem [resolvable:$true] %s202_s10 }
  0x67   :  { %s4928_s11 = scalar_lea.vmem %s179_s2, 2048  ;;  %p4933_p11 = scmp.lt.s32.totalorder %s179_s2, %s179_s2 }
  0x68   :  { %p4929_p10 = scmp.ne.s32.totalorder %s179_s2, %s4928_s11  ;;  %p4934_p12 = scmp.lt.s32.totalorder %s4928_s11, %s4928_s11 }
  0x6a   :  { %p4935_p13 = por %p4934_p12, %p4933_p11 }
  0x6c   :  { %p4936_p0 = pnand %p4935_p13, %p4929_p10 }
  0x6e   :  { %4939 = shalt.err (!%p4936_p0)
}
  0x6f   :  { %184 = dma.hbm_to_vmem [thread:$0]  %s5347_s30, 2048, %s179_s2, [#allocation11], %s5262_s0, %s5262_s0, %s5263_s26  }
  0x70   :  { %s4948_s17 = scalar_lea.vmem %s203_s10, 2048  ;;  %p4953_p2 = scmp.lt.s32.totalorder %s203_s10, %s203_s10 }
  0x71   :  { %p4949_p1 = scmp.ne.s32.totalorder %s203_s10, %s4948_s17  ;;  %p4954_p3 = scmp.lt.s32.totalorder %s4948_s17, %s4948_s17 }
  0x73   :  { %p4955_p4 = por %p4954_p3, %p4953_p2 }
  0x75   :  { %p4956_p5 = pnand %p4955_p4, %p4949_p1 }
  0x77   :  { %4959 = shalt.err (!%p4956_p5)
}
  0x78   :  { %208 = dma.hbm_to_vmem [thread:$0]  %s5357_s12, 2048, %s203_s10, [#allocation14], %s5262_s0, %s5262_s0, %s5263_s26  }
  0x79   :  { %s5266_s3 = smov [#allocation16]   ;;  %s5267_s16 = smov [#allocation19]  }
  0x7a   :  { %s230_s15 = sshll.u32 %s5266_s3, 4  ;;  %s258_s18 = sshll.u32 %s5267_s16, 4  ;;  %s231_s15 = int_to_ptr.vmem [resolvable:$true] %s230_s15  ;;  %s259_s18 = int_to_ptr.vmem [resolvable:$true] %s258_s18 }
  0x7b   :  { %s4968_s22 = scalar_lea.vmem %s231_s15, 2048  ;;  %p4973_p7 = scmp.lt.s32.totalorder %s231_s15, %s231_s15 }
  0x7c   :  { %p4969_p6 = scmp.ne.s32.totalorder %s231_s15, %s4968_s22  ;;  %p4974_p8 = scmp.lt.s32.totalorder %s4968_s22, %s4968_s22 }
  0x7e   :  { %p4975_p9 = por %p4974_p8, %p4973_p7 }
  0x80   :  { %p4976_p10 = pnand %p4975_p9, %p4969_p6 }
  0x82   :  { %4979 = shalt.err (!%p4976_p10)
}
  0x83   :  { %236 = dma.hbm_to_vmem [thread:$0]  %s5377_s24, 2048, %s231_s15, [#allocation17], %s5262_s0, %s5262_s0, %s5263_s26  }
  0x84   :  { %s4988_s30 = scalar_lea.vmem %s259_s18, 2048  ;;  %p4993_p12 = scmp.lt.s32.totalorder %s259_s18, %s259_s18 }
  0x85   :  { %p4989_p11 = scmp.ne.s32.totalorder %s259_s18, %s4988_s30  ;;  %p4994_p13 = scmp.lt.s32.totalorder %s4988_s30, %s4988_s30 }
  0x87   :  { %p4995_p0 = por %p4994_p13, %p4993_p12 }
  0x89   :  { %p4996_p1 = pnand %p4995_p0, %p4989_p11 }
  0x8b   :  { %4999 = shalt.err (!%p4996_p1)
}
  0x8c   :  { %264 = dma.hbm_to_vmem [thread:$0]  %s5397_s14, 2048, %s259_s18, [#allocation20], %s5262_s0, %s5262_s0, %s5263_s26  }
  0x8d   :  { %s5268_s12 = smov [#allocation22]   ;;  %s5269_s28 = smov [#allocation2]  }
  0x8e   :  { %s282_s23 = sshll.u32 %s5268_s12, 4  ;;  %s106_s1 = sshll.u32 %s5269_s28, 4  ;;  %s283_s23 = int_to_ptr.vmem [resolvable:$true] %s282_s23  ;;  %s107_s1 = int_to_ptr.vmem [resolvable:$true] %s106_s1 }
  0x8f   :  { %s5008_s2 = scalar_lea.vmem %s283_s23, 2048  ;;  %p5013_p3 = scmp.lt.s32.totalorder %s283_s23, %s283_s23 }
  0x90   :  { %p5009_p2 = scmp.ne.s32.totalorder %s283_s23, %s5008_s2  ;;  %p5014_p4 = scmp.lt.s32.totalorder %s5008_s2, %s5008_s2 }
  0x92   :  { %p5015_p5 = por %p5014_p4, %p5013_p3 }
  0x94   :  { %p5016_p6 = pnand %p5015_p5, %p5009_p2 }
  0x96   :  { %5019 = shalt.err (!%p5016_p6)
}
  0x97   :  { %288 = dma.hbm_to_vmem [thread:$0]  %s5407_s27, 2048, %s283_s23, [#allocation23], %s5262_s0, %s5262_s0, %s5263_s26  }
  0x98   :  { %s5028_s24 = scalar_lea.vmem %s107_s1, 2048  ;;  %p5033_p8 = scmp.lt.s32.totalorder %s107_s1, %s107_s1 }
  0x99   :  { %p5029_p7 = scmp.ne.s32.totalorder %s107_s1, %s5028_s24  ;;  %p5034_p9 = scmp.lt.s32.totalorder %s5028_s24, %s5028_s24 }
  0x9b   :  { %p5035_p10 = por %p5034_p9, %p5033_p8 }
  0x9d   :  { %p5036_p11 = pnand %p5035_p10, %p5029_p7 }
  0x9f   :  { %5039 = shalt.err (!%p5036_p11)
}
  0xa0   :  { %112 = dma.hbm_to_vmem [thread:$0]  %s5292_s9, 2048, %s107_s1, [#allocation3], %s5262_s0, %s5262_s0, %s5263_s26  }
  0xa1   :  { %s5270_s14 = smov [#allocation6]   ;;  %s5271_s10 = smov [#allocation9]  }
  0xa2   :  { %s136_s7 = sshll.u32 %s5270_s14, 4  ;;  %s160_s11 = sshll.u32 %s5271_s10, 4  ;;  %s137_s7 = int_to_ptr.vmem [resolvable:$true] %s136_s7  ;;  %s161_s11 = int_to_ptr.vmem [resolvable:$true] %s160_s11 }
  0xa3   :  { %s5048_s17 = scalar_lea.vmem %s137_s7, 2048  ;;  %p5053_p13 = scmp.lt.s32.totalorder %s137_s7, %s137_s7 }
  0xa4   :  { %p5049_p12 = scmp.ne.s32.totalorder %s137_s7, %s5048_s17  ;;  %p5054_p0 = scmp.lt.s32.totalorder %s5048_s17, %s5048_s17 }
  0xa6   :  { %p5055_p1 = por %p5054_p0, %p5053_p13 }
  0xa8   :  { %p5056_p2 = pnand %p5055_p1, %p5049_p12 }
  0xaa   :  { %5059 = shalt.err (!%p5056_p2)
}
  0xab   :  { %142 = dma.hbm_to_vmem [thread:$0]  %s5317_s29, 2048, %s137_s7, [#allocation5], %s5262_s0, %s5262_s0, %s5263_s26  }
  0xac   :  { %s5068_s27 = scalar_lea.vmem %s161_s11, 2048  ;;  %p5073_p4 = scmp.lt.s32.totalorder %s161_s11, %s161_s11 }
  0xad   :  { %p5069_p3 = scmp.ne.s32.totalorder %s161_s11, %s5068_s27  ;;  %p5074_p5 = scmp.lt.s32.totalorder %s5068_s27, %s5068_s27 }
  0xaf   :  { %p5075_p6 = por %p5074_p5, %p5073_p4 }
  0xb1   :  { %p5076_p7 = pnand %p5075_p6, %p5069_p3 }
  0xb3   :  { %5079 = shalt.err (!%p5076_p7)
}
  0xb4   :  { %166 = dma.hbm_to_vmem [thread:$0]  %s5327_s8, 2048, %s161_s11, [#allocation8], %s5262_s0, %s5262_s0, %s5263_s26  }
  0xb5   :  { %s5272_s9 = smov [#allocation12]   ;;  %s5273_s15 = smov [#allocation15]  }
  0xb6   :  { %s190_s3 = sshll.u32 %s5272_s9, 4  ;;  %s218_s16 = sshll.u32 %s5273_s15, 4  ;;  %s191_s3 = int_to_ptr.vmem [resolvable:$true] %s190_s3  ;;  %s219_s16 = int_to_ptr.vmem [resolvable:$true] %s218_s16 }
  0xb7   :  { %s5088_s18 = scalar_lea.vmem %s191_s3, 2048  ;;  %p5093_p9 = scmp.lt.s32.totalorder %s191_s3, %s191_s3 }
  0xb8   :  { %p5089_p8 = scmp.ne.s32.totalorder %s191_s3, %s5088_s18  ;;  %p5094_p10 = scmp.lt.s32.totalorder %s5088_s18, %s5088_s18 }
  0xba   :  { %p5095_p11 = por %p5094_p10, %p5093_p9 }
  0xbc   :  { %p5096_p12 = pnand %p5095_p11, %p5089_p8 }
  0xbe   :  { %5099 = shalt.err (!%p5096_p12)
}
  0xbf   :  { %196 = dma.hbm_to_vmem [thread:$0]  %s5352_s6, 2048, %s191_s3, [#allocation11], %s5262_s0, %s5262_s0, %s5263_s26  }
  0xc0   :  { %s5108_s29 = scalar_lea.vmem %s219_s16, 2048  ;;  %p5113_p0 = scmp.lt.s32.totalorder %s219_s16, %s219_s16 }
  0xc1   :  { %p5109_p13 = scmp.ne.s32.totalorder %s219_s16, %s5108_s29  ;;  %p5114_p1 = scmp.lt.s32.totalorder %s5108_s29, %s5108_s29 }
  0xc3   :  { %p5115_p2 = por %p5114_p1, %p5113_p0 }
  0xc5   :  { %p5116_p3 = pnand %p5115_p2, %p5109_p13 }
  0xc7   :  { %5119 = shalt.err (!%p5116_p3)
}
  0xc8   :  { %224 = dma.hbm_to_vmem [thread:$0]  %s5372_s4, 2048, %s219_s16, [#allocation14], %s5262_s0, %s5262_s0, %s5263_s26  }
  0xc9   :  { %s5274_s8 = smov [#allocation18]   ;;  %s5275_s30 = smov [#allocation21]  }
  0xca   :  { %s242_s22 = sshll.u32 %s5274_s8, 4  ;;  %s270_s12 = sshll.u32 %s5275_s30, 4  ;;  %s243_s22 = int_to_ptr.vmem [resolvable:$true] %s242_s22  ;;  %s271_s12 = int_to_ptr.vmem [resolvable:$true] %s270_s12 }
  0xcb   :  { %s5128_s23 = scalar_lea.vmem %s243_s22, 2048  ;;  %p5133_p5 = scmp.lt.s32.totalorder %s243_s22, %s243_s22 }
  0xcc   :  { %p5129_p4 = scmp.ne.s32.totalorder %s243_s22, %s5128_s23  ;;  %p5134_p6 = scmp.lt.s32.totalorder %s5128_s23, %s5128_s23 }
  0xce   :  { %p5135_p7 = por %p5134_p6, %p5133_p5 }
  0xd0   :  { %p5136_p8 = pnand %p5135_p7, %p5129_p4 }
  0xd2   :  { %5139 = shalt.err (!%p5136_p8)
}
  0xd3   :  { %248 = dma.hbm_to_vmem [thread:$0]  %s5382_s20, 2048, %s243_s22, [#allocation17], %s5262_s0, %s5262_s0, %s5263_s26  }
  0xd4   :  { %s5148_s6 = scalar_lea.vmem %s271_s12, 2048  ;;  %p5153_p10 = scmp.lt.s32.totalorder %s271_s12, %s271_s12 }
  0xd5   :  { %p5149_p9 = scmp.ne.s32.totalorder %s271_s12, %s5148_s6  ;;  %p5154_p11 = scmp.lt.s32.totalorder %s5148_s6, %s5148_s6 }
  0xd7   :  { %p5155_p12 = por %p5154_p11, %p5153_p10 }
  0xd9   :  { %p5156_p13 = pnand %p5155_p12, %p5149_p9 }
  0xdb   :  { %5159 = shalt.err (!%p5156_p13)
}
  0xdc   :  { %276 = dma.hbm_to_vmem [thread:$0]  %s5402_s25, 2048, %s271_s12, [#allocation20], %s5262_s0, %s5262_s0, %s5263_s26  }
  0xdd   :  { %s5276_s4 = smov [#allocation24]   ;;  %s5277_s1 = smov [#allocation25]  }
  0xde   :  { %s298_s28 = sshll.u32 %s5276_s4, 4  ;;  %s310_s2 = sshll.u32 %s5277_s1, 4  ;;  %s299_s28 = int_to_ptr.vmem [resolvable:$true] %s298_s28  ;;  %s311_s2 = int_to_ptr.vmem [resolvable:$true] %s310_s2 }
  0xdf   :  { %s5168_s24 = scalar_lea.vmem %s299_s28, 2048  ;;  %p5173_p1 = scmp.lt.s32.totalorder %s299_s28, %s299_s28 }
  0xe0   :  { %p5169_p0 = scmp.ne.s32.totalorder %s299_s28, %s5168_s24  ;;  %p5174_p2 = scmp.lt.s32.totalorder %s5168_s24, %s5168_s24 }
  0xe2   :  { %p5175_p3 = por %p5174_p2, %p5173_p1 }
  0xe4   :  { %p5176_p4 = pnand %p5175_p3, %p5169_p0 }
  0xe6   :  { %5179 = shalt.err (!%p5176_p4)
}
  0xe7   :  { %s6103_s20 = sld [smem:[#allocation49_spill]]  ;;  %s5188_s14 = scalar_lea.vmem %s311_s2, 2048 }
  0xe8   :  { %p5189_p5 = scmp.ne.s32.totalorder %s311_s2, %s5188_s14  ;;  %p5193_p6 = scmp.lt.s32.totalorder %s311_s2, %s311_s2 }
  0xe9   :  { %p5194_p7 = scmp.lt.s32.totalorder %s5188_s14, %s5188_s14 }
  0xeb   :  { %p5195_p8 = por %p5194_p7, %p5193_p6 }
  0xed   :  { %304 = dma.hbm_to_vmem [thread:$0]  %s6103_s20, 2048, %s299_s28, [#allocation23], %s5262_s0, %s5262_s0, %s5263_s26  }
  0xee   :  { %p5196_p9 = pnand %p5195_p8, %p5189_p5 }
  0xf0   :  { %5199 = shalt.err (!%p5196_p9)
}
  0xf1   :  { %s6104_s25 = sld [smem:[#allocation50_spill]] }
  0xf7   :  { %316 = dma.hbm_to_vmem [thread:$0]  %s6104_s25, 2048, %s311_s2, [#allocation26], %s5262_s0, %s5262_s0, %s5263_s26  }
  0xf8   :  { %5200 = dma.done.wait [#allocation3], 2048  }
  0xf9   :  { %5201 = vsyncadd [#allocation3], 4294965248 }
  0xfa   :  { %5202 = dma.done.wait [#allocation5], 4096  }
  0xfb   :  { %5203 = vsyncadd [#allocation5], 4294963200 }
  0xfc   :  { %5204 = dma.done.wait [#allocation8], 4096  }
  0xfd   :  { %5205 = vsyncadd [#allocation8], 4294963200 }
  0xfe   :  { %5206 = dma.done.wait [#allocation11], 4096  }
  0xff   :  { %5207 = vsyncadd [#allocation11], 4294963200 }
 0x100   :  { %5208 = dma.done.wait [#allocation14], 4096  }
 0x101   :  { %5209 = vsyncadd [#allocation14], 4294963200 }
 0x102   :  { %5210 = dma.done.wait [#allocation17], 4096  }
 0x103   :  { %5211 = vsyncadd [#allocation17], 4294963200 }
 0x104   :  { %5212 = dma.done.wait [#allocation20], 4096  }
 0x105   :  { %5213 = vsyncadd [#allocation20], 4294963200 }
 0x106   :  { %5214 = dma.done.wait [#allocation23], 4096  }
 0x107   :  { %5215 = vsyncadd [#allocation23], 4294963200 }
 0x108   :  { %5216 = dma.done.wait [#allocation26], 2048  }
 0x109   :  { %5217 = vsyncadd [#allocation26], 4294965248  ;;  %s6105_s7 = sld [smem:[#allocation37_spill]]  ;;  %v5278_v0 = vmov 0.0   ;;  %v603_v2 = vld [vmem:[#allocation2 + $0x78] sm:$0xff]  ;;  %v602_v5 = vld [vmem:[#allocation2 + $0x70] sm:$0xff] }
 0x10a   :  { %552 = vmatprep.mubr.f32.mxu0 %v5278_v0  ;;  %3945 = vmatprep.subr.mxu1 %v603_v2  ;;  %v601_v8 = vld [vmem:[#allocation2 + $0x68] sm:$0xff]  ;;  %v600_v11 = vld [vmem:[#allocation2 + $0x60] sm:$0xff]  ;;  %v599_v14 = vld [vmem:[#allocation2 + $0x58] sm:$0xff]  ;;  %s6106_s0 = sld [smem:[#allocation36_spill]] }
 0x10b   :  { %3946 = vmatpush3.msra.mxu1 %v603_v2  ;;  %v598_v17 = vld [vmem:[#allocation2 + $0x50] sm:$0xff]  ;;  %v597_v20 = vld [vmem:[#allocation2 + $0x48] sm:$0xff]  ;;  %v596_v23 = vld [vmem:[#allocation2 + $0x40] sm:$0xff]  ;;  %s6109_s26 = sld [smem:[#allocation38_spill]] }
 0x10c   :  { %3947 = vmatprep.subr.mxu1 %v602_v5  ;;  %v595_v26 = vld [vmem:[#allocation2 + $0x38] sm:$0xff]  ;;  %v594_v29 = vld [vmem:[#allocation2 + $0x30] sm:$0xff]  ;;  %v593_v32 = vld [vmem:[#allocation2 + $0x28] sm:$0xff]  ;;  %s6112_s10 = sld [smem:[#allocation39_spill]] }
 0x10d   :  { %3948 = vmatpush3.msra.mxu1 %v602_v5  ;;  %v592_v35 = vld [vmem:[#allocation2 + $0x20] sm:$0xff]  ;;  %v591_v38 = vld [vmem:[#allocation2 + $0x18] sm:$0xff]  ;;  %v590_v41 = vld [vmem:[#allocation2 + $0x10] sm:$0xff]  ;;  %s6117_s11 = sld [smem:[#allocation40_spill]] }
 0x10e   :  { %3949 = vmatprep.subr.mxu1 %v601_v8  ;;  %v589_v44 = vld [vmem:[#allocation2 + $0x8] sm:$0xff]  ;;  %v588_v47 = vld [vmem:[#allocation2] sm:$0xff]  ;;  %v729_v51 = vld [vmem:[#allocation4 + $0x78] sm:$0xff]  ;;  %s6118_s17 = sld [smem:[#allocation41_spill]] }
 0x10f   :  { %v487_v1 = vld [vmem:[%s6105_s7 + $0xf8] sm:$0xff]  ;;  %v486_v3 = vld [vmem:[%s6105_s7 + $0xf0] sm:$0xff]  ;;  %v485_v4 = vld [vmem:[%s6105_s7 + $0xe8] sm:$0xff]  ;;  %3950 = vmatpush3.msra.mxu1 %v601_v8  ;;  %s6119_s27 = sld [smem:[#allocation42_spill]] }
 0x110   :  { %488 = vmatprep.subr.mxu0 %v487_v1  ;;  %v484_v6 = vld [vmem:[%s6105_s7 + $0xe0] sm:$0xff]  ;;  %v483_v7 = vld [vmem:[%s6105_s7 + $0xd8] sm:$0xff]  ;;  %v482_v9 = vld [vmem:[%s6105_s7 + $0xd0] sm:$0xff]  ;;  %3951 = vmatprep.subr.mxu1 %v600_v11  ;;  %s6120_s9 = sld [smem:[#allocation43_spill]] }
 0x111   :  { %489 = vmatpush1.msra.mxu0 %v486_v3  ;;  %v481_v10 = vld [vmem:[%s6105_s7 + $0xc8] sm:$0xff]  ;;  %v480_v12 = vld [vmem:[%s6105_s7 + $0xc0] sm:$0xff]  ;;  %v479_v13 = vld [vmem:[%s6105_s7 + $0xb8] sm:$0xff]  ;;  %3952 = vmatpush3.msra.mxu1 %v600_v11  ;;  %s6121_s3 = sld [smem:[#allocation44_spill]] }
 0x112   :  { %490 = vmatprep.subr.mxu0 %v485_v4  ;;  %v478_v15 = vld [vmem:[%s6105_s7 + $0xb0] sm:$0xff]  ;;  %v477_v16 = vld [vmem:[%s6105_s7 + $0xa8] sm:$0xff]  ;;  %3953 = vmatprep.subr.mxu1 %v599_v14  ;;  %v476_v18 = vld [vmem:[%s6105_s7 + $0xa0] sm:$0xff]  ;;  %s6122_s15 = sld [smem:[#allocation45_spill]] }
 0x113   :  { %491 = vmatpush1.msra.mxu0 %v484_v6  ;;  %3954 = vmatpush3.msra.mxu1 %v599_v14  ;;  %v475_v19 = vld [vmem:[%s6105_s7 + $0x98] sm:$0xff]  ;;  %v474_v21 = vld [vmem:[%s6105_s7 + $0x90] sm:$0xff]  ;;  %v473_v22 = vld [vmem:[%s6105_s7 + $0x88] sm:$0xff]  ;;  %s6123_s16 = sld [smem:[#allocation46_spill]] }
 0x114   :  { %492 = vmatprep.subr.mxu0 %v483_v7  ;;  %3955 = vmatprep.subr.mxu1 %v598_v17  ;;  %v472_v24 = vld [vmem:[%s6105_s7 + $0x80] sm:$0xff]  ;;  %v471_v25 = vld [vmem:[%s6105_s7 + $0x78] sm:$0xff]  ;;  %v470_v27 = vld [vmem:[%s6105_s7 + $0x70] sm:$0xff]  ;;  %s6124_s18 = sld [smem:[#allocation51_spill]] }
 0x115   :  { %493 = vmatpush1.msra.mxu0 %v482_v9  ;;  %3956 = vmatpush3.msra.mxu1 %v598_v17  ;;  %v469_v28 = vld [vmem:[%s6105_s7 + $0x68] sm:$0xff]  ;;  %v468_v30 = vld [vmem:[%s6105_s7 + $0x60] sm:$0xff]  ;;  %v467_v31 = vld [vmem:[%s6105_s7 + $0x58] sm:$0xff]  ;;  %s6125_s29 = sld [smem:[#allocation47_spill]] }
 0x116   :  { %494 = vmatprep.subr.mxu0 %v481_v10  ;;  %3957 = vmatprep.subr.mxu1 %v597_v20  ;;  %v466_v33 = vld [vmem:[%s6105_s7 + $0x50] sm:$0xff]  ;;  %v465_v34 = vld [vmem:[%s6105_s7 + $0x48] sm:$0xff]  ;;  %v464_v36 = vld [vmem:[%s6105_s7 + $0x40] sm:$0xff]  ;;  %s6126_s8 = sld [smem:[#allocation48_spill]] }
 0x117   :  { %495 = vmatpush1.msra.mxu0 %v480_v12  ;;  %3958 = vmatpush3.msra.mxu1 %v597_v20  ;;  %v463_v37 = vld [vmem:[%s6105_s7 + $0x38] sm:$0xff]  ;;  %v462_v39 = vld [vmem:[%s6105_s7 + $0x30] sm:$0xff]  ;;  %v461_v40 = vld [vmem:[%s6105_s7 + $0x28] sm:$0xff]  ;;  %s6127_s22 = sld [smem:[#allocation55_spill]] }
 0x118   :  { %496 = vmatprep.subr.mxu0 %v479_v13  ;;  %3959 = vmatprep.subr.mxu1 %v596_v23  ;;  %v460_v42 = vld [vmem:[%s6105_s7 + $0x20] sm:$0xff]  ;;  %v459_v43 = vld [vmem:[%s6105_s7 + $0x18] sm:$0xff]  ;;  %v458_v45 = vld [vmem:[%s6105_s7 + $0x10] sm:$0xff]  ;;  %s6128_s30 = sld [smem:[#allocation54_spill]] }
 0x119   :  { %497 = vmatpush1.msra.mxu0 %v478_v15  ;;  %3960 = vmatpush3.msra.mxu1 %v596_v23  ;;  %v457_v46 = vld [vmem:[%s6105_s7 + $0x8] sm:$0xff]  ;;  %v456_v48 = vld [vmem:[%s6105_s7] sm:$0xff]  ;;  %v454_v52 = vld [vmem:[%s6106_s0 + $0x10] sm:$0xff]  ;;  %s6129_s12 = sld [smem:[#allocation56_spill]] }
 0x11a   :  { %498 = vmatprep.subr.mxu0 %v477_v16  ;;  %3961 = vmatprep.subr.mxu1 %v595_v26  ;;  %v452_v49 = vld [vmem:[%s6106_s0] sm:$0xff]  ;;  %v5598_v50 = vld [vmem:[%s6106_s0 + $0x8] sm:$0xff]  ;;  %v728_v53 = vld [vmem:[#allocation4 + $0x70] sm:$0xff]  ;;  %s6130_s23 = sld [smem:[#allocation52_spill]] }
 0x11b   :  { %499 = vmatpush1.msra.mxu0 %v476_v18  ;;  %3962 = vmatpush3.msra.mxu1 %v595_v26  ;;  %v455_v54 = vld [vmem:[%s6106_s0 + $0x18] sm:$0xff]  ;;  %v727_v55 = vld [vmem:[#allocation4 + $0x68] sm:$0xff]  ;;  %v726_v56 = vld [vmem:[#allocation4 + $0x60] sm:$0xff]  ;;  %s6131_s6 = sld [smem:[#allocation53_spill]] }
 0x11c   :  { %500 = vmatprep.subr.mxu0 %v475_v19  ;;  %3963 = vmatprep.subr.mxu1 %v594_v29  ;;  %v725_v57 = vld [vmem:[#allocation4 + $0x58] sm:$0xff]  ;;  %v724_v58 = vld [vmem:[#allocation4 + $0x50] sm:$0xff]  ;;  %v723_v59 = vld [vmem:[#allocation4 + $0x48] sm:$0xff]  ;;  %s6132_s4 = sld [smem:[#allocation59_spill]] }
 0x11d   :  { %501 = vmatpush1.msra.mxu0 %v474_v21  ;;  %3964 = vmatpush3.msra.mxu1 %v594_v29  ;;  %v722_v60 = vld [vmem:[#allocation4 + $0x40] sm:$0xff]  ;;  %v721_v61 = vld [vmem:[#allocation4 + $0x38] sm:$0xff]  ;;  %v720_v62 = vld [vmem:[#allocation4 + $0x30] sm:$0xff]  ;;  %s6133_s28 = sld [smem:[#allocation60_spill]] }
 0x11e   :  { %502 = vmatprep.subr.mxu0 %v473_v22  ;;  %3965 = vmatprep.subr.mxu1 %v593_v32  ;;  %v719_v63 = vld [vmem:[#allocation4 + $0x28] sm:$0xff]  ;;  %v718_v1 = vld [vmem:[#allocation4 + $0x20] sm:$0xff]  ;;  %v717_v2 = vld [vmem:[#allocation4 + $0x18] sm:$0xff]  ;;  %s6134_s1 = sld [smem:[#allocation57_spill]] }
 0x11f   :  { %503 = vmatpush1.msra.mxu0 %v472_v24  ;;  %3966 = vmatpush3.msra.mxu1 %v593_v32  ;;  %v715_v3 = vld [vmem:[#allocation4 + $0x8] sm:$0xff]  ;;  %v714_v4 = vld [vmem:[#allocation4] sm:$0xff]  ;;  %v881_v5 = vld [vmem:[#allocation6 + $0x78] sm:$0xff]  ;;  %s6135_s2 = sld [smem:[#allocation58_spill]] }
 0x120   :  { %504 = vmatprep.subr.mxu0 %v471_v25  ;;  %3967 = vmatprep.subr.mxu1 %v592_v35  ;;  %v994_v6 = vld [vmem:[#allocation7 + $0x78] sm:$0xff]  ;;  %v880_v7 = vld [vmem:[#allocation6 + $0x70] sm:$0xff]  ;;  %v879_v9 = vld [vmem:[#allocation6 + $0x68] sm:$0xff] }
 0x121   :  { %505 = vmatpush1.msra.mxu0 %v470_v27  ;;  %3968 = vmatpush3.msra.mxu1 %v592_v35  ;;  %v993_v8 = vld [vmem:[#allocation7 + $0x70] sm:$0xff]  ;;  %v992_v10 = vld [vmem:[#allocation7 + $0x68] sm:$0xff]  ;;  %v878_v11 = vld [vmem:[#allocation6 + $0x60] sm:$0xff] }
 0x122   :  { %506 = vmatprep.subr.mxu0 %v469_v28  ;;  %3969 = vmatprep.subr.mxu1 %v591_v38  ;;  %v991_v12 = vld [vmem:[#allocation7 + $0x60] sm:$0xff]  ;;  %v877_v13 = vld [vmem:[#allocation6 + $0x58] sm:$0xff]  ;;  %v876_v15 = vld [vmem:[#allocation6 + $0x50] sm:$0xff] }
 0x123   :  { %507 = vmatpush1.msra.mxu0 %v468_v30  ;;  %3970 = vmatpush3.msra.mxu1 %v591_v38  ;;  %v990_v14 = vld [vmem:[#allocation7 + $0x58] sm:$0xff]  ;;  %v989_v16 = vld [vmem:[#allocation7 + $0x50] sm:$0xff]  ;;  %v875_v17 = vld [vmem:[#allocation6 + $0x48] sm:$0xff] }
 0x124   :  { %508 = vmatprep.subr.mxu0 %v467_v31  ;;  %3971 = vmatprep.subr.mxu1 %v590_v41  ;;  %v988_v18 = vld [vmem:[#allocation7 + $0x48] sm:$0xff]  ;;  %v874_v19 = vld [vmem:[#allocation6 + $0x40] sm:$0xff]  ;;  %v873_v21 = vld [vmem:[#allocation6 + $0x38] sm:$0xff] }
 0x125   :  { %509 = vmatpush1.msra.mxu0 %v466_v33  ;;  %3972 = vmatpush3.msra.mxu1 %v590_v41  ;;  %v987_v20 = vld [vmem:[#allocation7 + $0x40] sm:$0xff]  ;;  %v986_v22 = vld [vmem:[#allocation7 + $0x38] sm:$0xff]  ;;  %v872_v23 = vld [vmem:[#allocation6 + $0x30] sm:$0xff] }
 0x126   :  { %510 = vmatprep.subr.mxu0 %v465_v34  ;;  %3973 = vmatprep.subr.mxu1 %v589_v44  ;;  %v985_v24 = vld [vmem:[#allocation7 + $0x30] sm:$0xff]  ;;  %v871_v25 = vld [vmem:[#allocation6 + $0x28] sm:$0xff]  ;;  %v870_v27 = vld [vmem:[#allocation6 + $0x20] sm:$0xff] }
 0x127   :  { %511 = vmatpush1.msra.mxu0 %v464_v36  ;;  %3974 = vmatpush3.msra.mxu1 %v589_v44  ;;  %v984_v26 = vld [vmem:[#allocation7 + $0x28] sm:$0xff]  ;;  %v983_v28 = vld [vmem:[#allocation7 + $0x20] sm:$0xff]  ;;  %v869_v29 = vld [vmem:[#allocation6 + $0x18] sm:$0xff] }
 0x128   :  { %512 = vmatprep.subr.mxu0 %v463_v37  ;;  %3975 = vmatprep.subr.mxu1 %v588_v47  ;;  %v982_v30 = vld [vmem:[#allocation7 + $0x18] sm:$0xff]  ;;  %v868_v31 = vld [vmem:[#allocation6 + $0x10] sm:$0xff]  ;;  %v867_v33 = vld [vmem:[#allocation6 + $0x8] sm:$0xff] }
 0x129   :  { %513 = vmatpush1.msra.mxu0 %v462_v39  ;;  %3976 = vmatpush3.msra.mxu1 %v588_v47  ;;  %v981_v32 = vld [vmem:[#allocation7 + $0x10] sm:$0xff]  ;;  %v980_v34 = vld [vmem:[#allocation7 + $0x8] sm:$0xff]  ;;  %v866_v35 = vld [vmem:[#allocation6] sm:$0xff] }
 0x12a   :  { %514 = vmatprep.subr.mxu0 %v461_v40  ;;  %3977 = vmatprep.mubr.f32.mxu1 %v452_v49  ;;  %v979_v36 = vld [vmem:[#allocation7] sm:$0xff]  ;;  %v5608_v37 = vld [vmem:[#allocation9 + $0x78] sm:$0xff] }
 0x12b   :  { %515 = vmatpush1.msra.mxu0 %v460_v42  ;;  %3978 = vmatmul.mubr.f32.vlgmr.msra.gmra.mxu1 %v5598_v50 }
 0x12c   :  { %516 = vmatprep.subr.mxu0 %v459_v43  ;;  %3980 = vmatprep.mubr.f32.mxu1 %v454_v52  ;;  %v391_v43 = vlaneseq }
 0x12d   :  { %517 = vmatpush1.msra.mxu0 %v458_v45  ;;  %4021 = vmatprep.subr.mxu1 %v881_v5 }
 0x12e   :  { %518 = vmatprep.subr.mxu0 %v457_v46  ;;  %4022 = vmatpush3.msra.mxu1 %v881_v5  ;;  %v5615_v46 = vshrl.u32 %v391_v43, 7 }
 0x12f   :  { %519 = vmatpush1.msra.mxu0 %v456_v48  ;;  %3981 = vmatmul.mubr.f32.gmra.mxu1 %v455_v54 }
 0x130   :  { %553 = vmatmul.mubr.f32.vlgmr.msra.gmra.mxu0 %v452_v49  ;;  %3983 = vmatprep.subr.mxu0 %v729_v51  ;;  %vm693_vm0 = vcmp.lt.s32.totalorder %v5615_v46, 1  ;;  %vm819_vm2 = vcmp.lt.s32.totalorder %v5615_v46, 7 }
 0x131   :  { %3984 = vmatpush3.msra.mxu0 %v729_v51  ;;  %558 = vmatprep.mubr.f32.mxu0 %v5278_v0 }
 0x132   :  { %3985 = vmatprep.subr.mxu0 %v728_v53  ;;  %4023 = vmatprep.subr.mxu1 %v880_v7 }
 0x133   :  { %3986 = vmatpush3.msra.mxu0 %v728_v53  ;;  %4024 = vmatpush3.msra.mxu1 %v880_v7 }
 0x134   :  { %3987 = vmatprep.subr.mxu0 %v727_v55  ;;  %559 = vmatmul.mubr.f32.gmra.mxu0 %v5598_v50 }
 0x135   :  { %3988 = vmatpush3.msra.mxu0 %v727_v55  ;;  %564 = vmatprep.mubr.f32.mxu0 %v5278_v0  ;;  %v395_v55 = vadd.s32 24, %v5615_v46 }
 0x136   :  { %3989 = vmatprep.subr.mxu0 %v726_v56  ;;  %4025 = vmatprep.subr.mxu1 %v879_v9 }
 0x137   :  { %3990 = vmatpush3.msra.mxu0 %v726_v56  ;;  %4026 = vmatpush3.msra.mxu1 %v879_v9 }
 0x138   :  { %3991 = vmatprep.subr.mxu0 %v725_v57  ;;  %565 = vmatmul.mubr.f32.gmra.mxu0 %v454_v52 }
 0x139   :  { %3992 = vmatpush3.msra.mxu0 %v725_v57  ;;  %570 = vmatprep.mubr.f32.mxu0 %v5278_v0  ;;  %v716_v0 = vld [vmem:[#allocation4 + $0x10] sm:$0xff] }
 0x13a   :  { %3993 = vmatprep.subr.mxu0 %v724_v58  ;;  %4027 = vmatprep.subr.mxu1 %v878_v11 }
 0x13b   :  { %3994 = vmatpush3.msra.mxu0 %v724_v58  ;;  %4028 = vmatpush3.msra.mxu1 %v878_v11 }
 0x13c   :  { %3995 = vmatprep.subr.mxu0 %v723_v59  ;;  %571 = vmatmul.mubr.f32.gmra.mxu0 %v455_v54 }
 0x13d   :  { %3996 = vmatpush3.msra.mxu0 %v723_v59  ;;  %4015 = vmatprep.mubr.f32.mxu0 %v452_v49 }
 0x13e   :  { %3997 = vmatprep.subr.mxu0 %v722_v60  ;;  %4029 = vmatprep.subr.mxu1 %v877_v13 }
 0x13f   :  { %3998 = vmatpush3.msra.mxu0 %v722_v60  ;;  %4030 = vmatpush3.msra.mxu1 %v877_v13 }
 0x140   :  { %3999 = vmatprep.subr.mxu0 %v721_v61  ;;  %4031 = vmatprep.subr.mxu1 %v876_v15 }
 0x141   :  { %4000 = vmatpush3.msra.mxu0 %v721_v61  ;;  %4032 = vmatpush3.msra.mxu1 %v876_v15  ;;  %v393_v61 = vadd.s32 8, %v5615_v46  ;;  %v3469_v15 = vld [vmem:[%s6109_s26] ss:$0 sm:$0xff] }
 0x142   :  { %4001 = vmatprep.subr.mxu0 %v720_v62  ;;  %4033 = vmatprep.subr.mxu1 %v875_v17 }
 0x143   :  { %4002 = vmatpush3.msra.mxu0 %v720_v62  ;;  %4034 = vmatpush3.msra.mxu1 %v875_v17  ;;  %v407_v7 = vand.u32 15, %v393_v61  ;;  %v1088_v61 = vld [vmem:[#allocation9 + $0x20] sm:$0xff] }
 0x144   :  { %4003 = vmatprep.subr.mxu0 %v719_v63  ;;  %4035 = vmatprep.subr.mxu1 %v874_v19 }
 0x145   :  { %4004 = vmatpush3.msra.mxu0 %v719_v63  ;;  %4036 = vmatpush3.msra.mxu1 %v874_v19  ;;  %vm5656_vm5 = vcmp.ne.s32.totalorder %v407_v7, 15  ;;  %v1244_v7 = vld [vmem:[#allocation12 + $0x68] sm:$0xff] }
 0x146   :  { %4005 = vmatprep.subr.mxu0 %v718_v1  ;;  %4037 = vmatprep.subr.mxu1 %v873_v21 }
 0x147   :  { %4006 = vmatpush3.msra.mxu0 %v718_v1  ;;  %4038 = vmatpush3.msra.mxu1 %v873_v21 }
 0x148   :  { %4007 = vmatprep.subr.mxu0 %v717_v2  ;;  %4039 = vmatprep.subr.mxu1 %v872_v23 }
 0x149   :  { %4008 = vmatpush3.msra.mxu0 %v717_v2  ;;  %4040 = vmatpush3.msra.mxu1 %v872_v23  ;;  %v421_v2 = vand.u32 15, %v395_v55  ;;  %v3470_v23 = vld [vmem:[%s6112_s10] ss:$0 sm:$0xff]  ;;  %v1093_v55 = vld [vmem:[#allocation9 + $0x48] sm:$0xff] }
 0x14a   :  { %4009 = vmatprep.subr.mxu0 %v716_v0  ;;  %4041 = vmatprep.subr.mxu1 %v871_v25 }
 0x14b   :  { %4010 = vmatpush3.msra.mxu0 %v716_v0  ;;  %4042 = vmatpush3.msra.mxu1 %v871_v25  ;;  %vm5647_vm4 = vcmp.ne.s32.totalorder %v421_v2, 15  ;;  %v1084_v2 = vld [vmem:[#allocation9] sm:$0xff] }
 0x14c   :  { %4011 = vmatprep.subr.mxu0 %v715_v3  ;;  %4043 = vmatprep.subr.mxu1 %v870_v27 }
 0x14d   :  { %4012 = vmatpush3.msra.mxu0 %v715_v3  ;;  %4044 = vmatpush3.msra.mxu1 %v870_v27 }
 0x14e   :  { %4013 = vmatprep.subr.mxu0 %v714_v4  ;;  %4045 = vmatprep.subr.mxu1 %v869_v29 }
 0x14f   :  { %4014 = vmatpush3.msra.mxu0 %v714_v4  ;;  %4046 = vmatpush3.msra.mxu1 %v869_v29 }
 0x150   :  { %4016 = vmatmul.mubr.f32.vlgmr.msra.gmra.mxu0 %v5598_v50  ;;  %4059 = vmatprep.subr.mxu0 %v994_v6  ;;  %v400_v50 = vand.u32 15, %v5615_v46 }
 0x151   :  { %4018 = vmatprep.mubr.f32.mxu0 %v454_v52  ;;  %4060 = vmatpush3.msra.mxu0 %v994_v6  ;;  %v394_v52 = vadd.s32 16, %v5615_v46 }
 0x152   :  { %4061 = vmatprep.subr.mxu0 %v993_v8  ;;  %4047 = vmatprep.subr.mxu1 %v868_v31  ;;  %vm5623_vm1 = vcmp.ne.s32.totalorder %v400_v50, 0  ;;  %v1097_v50 = vld [vmem:[#allocation9 + $0x68] sm:$0xff] }
 0x153   :  { %4062 = vmatpush3.msra.mxu0 %v993_v8  ;;  %4048 = vmatpush3.msra.mxu1 %v868_v31  ;;  %v414_v59 = vand.u32 15, %v394_v52  ;;  %v1096_v52 = vld [vmem:[#allocation9 + $0x60] sm:$0xff] }
 0x154   :  { %4019 = vmatmul.mubr.f32.gmra.mxu0 %v455_v54  ;;  %4063 = vmatprep.subr.mxu0 %v992_v10 }
 0x155   :  { %4064 = vmatpush3.msra.mxu0 %v992_v10  ;;  %4049 = vmatprep.subr.mxu1 %v867_v33  ;;  %vm5635_vm3 = vcmp.ne.s32.totalorder %v414_v59, 0  ;;  %v1089_v59 = vld [vmem:[#allocation9 + $0x28] sm:$0xff] }
 0x156   :  { %4065 = vmatprep.subr.mxu0 %v991_v12  ;;  %4050 = vmatpush3.msra.mxu1 %v867_v33 }
 0x157   :  { %4066 = vmatpush3.msra.mxu0 %v991_v12  ;;  %4051 = vmatprep.subr.mxu1 %v866_v35 }
 0x158   :  { %4067 = vmatprep.subr.mxu0 %v990_v14  ;;  %4052 = vmatpush3.msra.mxu1 %v866_v35 }
 0x159   :  { %4068 = vmatpush3.msra.mxu0 %v990_v14  ;;  %4097 = vmatprep.subr.mxu1 %v5608_v37 }
 0x15a   :  { %4069 = vmatprep.subr.mxu0 %v989_v16 }
 0x15b   :  { %4070 = vmatpush3.msra.mxu0 %v989_v16 }
 0x15c   :  { %4071 = vmatprep.subr.mxu0 %v988_v18 }
 0x15d   :  { %4072 = vmatpush3.msra.mxu0 %v988_v18 }
 0x15e   :  { %4073 = vmatprep.subr.mxu0 %v987_v20 }
 0x15f   :  { %4074 = vmatpush3.msra.mxu0 %v987_v20 }
 0x160   :  { %4075 = vmatprep.subr.mxu0 %v986_v22 }
 0x161   :  { %4076 = vmatpush3.msra.mxu0 %v986_v22 }
 0x162   :  { %4077 = vmatprep.subr.mxu0 %v985_v24 }
 0x163   :  { %4078 = vmatpush3.msra.mxu0 %v985_v24 }
 0x164   :  { %4079 = vmatprep.subr.mxu0 %v984_v26 }
 0x165   :  { %4080 = vmatpush3.msra.mxu0 %v984_v26 }
 0x166   :  { %4081 = vmatprep.subr.mxu0 %v983_v28 }
 0x167   :  { %4082 = vmatpush3.msra.mxu0 %v983_v28 }
 0x168   :  { %4083 = vmatprep.subr.mxu0 %v982_v30 }
 0x169   :  { %4084 = vmatpush3.msra.mxu0 %v982_v30 }
 0x16a   :  { %4085 = vmatprep.subr.mxu0 %v981_v32 }
 0x16b   :  { %4086 = vmatpush3.msra.mxu0 %v981_v32 }
 0x16c   :  { %4087 = vmatprep.subr.mxu0 %v980_v34 }
 0x16d   :  { %4088 = vmatpush3.msra.mxu0 %v980_v34 }
 0x16e   :  { %4089 = vmatprep.subr.mxu0 %v979_v36 }
 0x16f   :  { %4090 = vmatpush3.msra.mxu0 %v979_v36 }
 0x1eb   :  { %v3979_v42 = vpop.f32.mrf.mxu1 }
 0x1ec   :  { %v690_v62 = vrot.slane %v3979_v42, 7 }
 0x1ed   :  { %v670_v45 = vpop.f32.mrf.mxu1 }
 0x1ee   :  { %v689_v49 = vrot.slane %v670_v45, 7 }
 0x1ef   :  { %v3982_v48 = vpop.f32.mrf.mxu1 }
 0x1f0   :  { %v554_v38 = vpop.f32.mrf.mxu0  ;;  %v692_v51 = vrot.slane %v3982_v48, 7  ;;  %v696_v16 = vsel %vm693_vm0, %v689_v49, %v690_v62 }
 0x1f1   :  { %v680_v54 = vpop.f32.mrf.mxu1 }
 0x1f2   :  { %v5611_v39 = vpop.f32.mrf.mxu0  ;;  %v697_v57 = vsel %vm693_vm0, %v692_v51, %v689_v49  ;;  %v691_v58 = vrot.slane %v680_v54, 7  ;;  %v1098_v49 = vld [vmem:[#allocation9 + $0x70] sm:$0xff] }
 0x1f3   :  { %v706_v1 = vsel %vm5623_vm1, %v697_v57, 0.0  ;;  %v1094_v54 = vld [vmem:[#allocation9 + $0x50] sm:$0xff]  ;;  %v1091_v57 = vld [vmem:[#allocation9 + $0x38] sm:$0xff] }
 0x1f4   :  { %v560_v40 = vpop.f32.mrf.mxu0  ;;  %v695_v3 = vsel %vm693_vm0, %v690_v62, %v691_v58  ;;  %v710_v8 = vadd.f32 %v706_v1, %v554_v38  ;;  %v694_v9 = vsel %vm693_vm0, %v691_v58, %v692_v51  ;;  %v1090_v58 = vld [vmem:[#allocation9 + $0x30] sm:$0xff]  ;;  %v1087_v62 = vld [vmem:[#allocation9 + $0x18] sm:$0xff]  ;;  %v1085_v1 = vld [vmem:[#allocation9 + $0x8] sm:$0xff] }
 0x1f5   :  { %v708_v11 = vsel %vm5635_vm3, %v695_v3, 0.0  ;;  %v711_v27 = vadd.f32 %v696_v16, %v560_v40  ;;  %v1246_v3 = vld [vmem:[#allocation12 + $0x78] sm:$0xff]  ;;  %v1240_v16 = vld [vmem:[#allocation12 + $0x48] sm:$0xff] }
 0x1f6   :  { %v5613_v41 = vpop.f32.mrf.mxu0  ;;  %4135 = vmatprep.subr.mxu0 %v1246_v3 }
 0x1f8   :  { %v566_v44 = vpop.f32.mrf.mxu0 }
 0x1f9   :  { %v712_v24 = vadd.f32 %v708_v11, %v566_v44  ;;  %v1242_v11 = vld [vmem:[#allocation12 + $0x58] sm:$0xff] }
 0x1fa   :  { %v5617_v47 = vpop.f32.mrf.mxu0 }
 0x1fc   :  { %v572_v53 = vpop.f32.mrf.mxu0 }
 0x1fd   :  { %v713_v19 = vadd.f32 %v694_v9, %v572_v53  ;;  %v1095_v53 = vld [vmem:[#allocation9 + $0x58] sm:$0xff]  ;;  %v1243_v9 = vld [vmem:[#allocation12 + $0x60] sm:$0xff] }
 0x1fe   :  { %v5629_v60 = vpop.f32.mrf.mxu0 }
 0x210   :  { %v4017_v63 = vpop.f32.mrf.mxu0 }
 0x211   :  { %v816_v5 = vrot.slane %v4017_v63, 1  ;;  %v1086_v63 = vld [vmem:[#allocation9 + $0x10] sm:$0xff] }
 0x212   :  { %v796_v4 = vpop.f32.mrf.mxu0 }
 0x213   :  { %v815_v6 = vrot.slane %v796_v4, 1  ;;  %v1347_v4 = vld [vmem:[#allocation10 + $0x78] sm:$0xff] }
 0x214   :  { %v4020_v10 = vpop.f32.mrf.mxu0 }
 0x215   :  { %v822_v12 = vsel %vm819_vm2, %v815_v6, %v816_v5  ;;  %v818_v14 = vrot.slane %v4020_v10, 1  ;;  %v1344_v10 = vld [vmem:[#allocation10 + $0x60] sm:$0xff] }
 0x216   :  { %v836_v17 = vadd.f32 %v822_v12, %v710_v8  ;;  %v806_v18 = vpop.f32.mrf.mxu0  ;;  %v1345_v8 = vld [vmem:[#allocation10 + $0x68] sm:$0xff]  ;;  %v1343_v12 = vld [vmem:[#allocation10 + $0x58] sm:$0xff] }
 0x217   :  { %v823_v20 = vsel %vm819_vm2, %v818_v14, %v815_v6  ;;  %v817_v22 = vrot.slane %v806_v18, 1  ;;  %v1346_v6 = vld [vmem:[#allocation10 + $0x70] sm:$0xff]  ;;  %v1239_v18 = vld [vmem:[#allocation12 + $0x40] sm:$0xff] }
 0x218   :  { %v835_v25 = vsel %vm5647_vm4, %v823_v20, 0.0  ;;  %v847_v26 = vmul.f32 %v3469_v15, %v836_v17  ;;  %v1341_v17 = vld [vmem:[#allocation10 + $0x48] sm:$0xff]  ;;  %v1238_v20 = vld [vmem:[#allocation12 + $0x38] sm:$0xff] }
 0x219   :  { %v839_v28 = vadd.f32 %v835_v25, %v713_v19  ;;  %v820_v29 = vsel %vm819_vm2, %v817_v22, %v818_v14  ;;  %v821_v30 = vsel %vm819_vm2, %v816_v5, %v817_v22  ;;  %v1245_v5 = vld [vmem:[#allocation12 + $0x70] sm:$0xff]  ;;  %v1340_v19 = vld [vmem:[#allocation10 + $0x40] sm:$0xff]  ;;  %v1339_v22 = vld [vmem:[#allocation10 + $0x38] sm:$0xff] }
 0x21a   :  { %v833_v31 = vsel %vm5656_vm5, %v821_v30, 0.0  ;;  %v838_v32 = vadd.f32 %v820_v29, %v712_v24  ;;  %v858_v33 = vadd.f32 %v3470_v23, %v847_v26  ;;  %v1241_v14 = vld [vmem:[#allocation12 + $0x50] sm:$0xff]  ;;  %v1236_v25 = vld [vmem:[#allocation12 + $0x28] sm:$0xff]  ;;  %v1234_v29 = vld [vmem:[#allocation12 + $0x18] sm:$0xff] }
 0x21b   :  { %v837_v34 = vadd.f32 %v833_v31, %v711_v27  ;;  %v850_v42 = vmul.f32 %v3469_v15, %v839_v28  ;;  %v1338_v24 = vld [vmem:[#allocation10 + $0x30] sm:$0xff]  ;;  %v1337_v26 = vld [vmem:[#allocation10 + $0x28] sm:$0xff]  ;;  %v1235_v27 = vld [vmem:[#allocation12 + $0x20] sm:$0xff] }
 0x21c   :  { %v862_v35 = vmax.f32 %v858_v33, 0.0  ;;  %v849_v36 = vmul.f32 %v3469_v15, %v838_v32  ;;  %v1336_v28 = vld [vmem:[#allocation10 + $0x20] sm:$0xff]  ;;  %v1335_v30 = vld [vmem:[#allocation10 + $0x18] sm:$0xff]  ;;  %v1233_v31 = vld [vmem:[#allocation12 + $0x10] sm:$0xff] }
 0x21d   :  { %v848_v38 = vmul.f32 %v3469_v15, %v837_v34  ;;  %v861_v45 = vadd.f32 %v3470_v23, %v850_v42  ;;  %v1342_v15 = vld [vmem:[#allocation10 + $0x50] sm:$0xff]  ;;  %v1232_v33 = vld [vmem:[#allocation12 + $0x8] sm:$0xff] }
 0x21e   :  { %4053 = vmatprep.mubr.f32.mxu1 %v862_v35  ;;  %4091 = vmatprep.mubr.f32.mxu0 %v862_v35  ;;  %v860_v40 = vadd.f32 %v3470_v23, %v849_v36  ;;  %v1334_v32 = vld [vmem:[#allocation10 + $0x10] sm:$0xff]  ;;  %v1333_v34 = vld [vmem:[#allocation10 + $0x8] sm:$0xff]  ;;  %v1332_v36 = vld [vmem:[#allocation10] sm:$0xff] }
 0x21f   :  { %v859_v43 = vadd.f32 %v3470_v23, %v848_v38  ;;  %v865_v51 = vmax.f32 %v861_v45, 0.0  ;;  %v1237_v23 = vld [vmem:[#allocation12 + $0x30] sm:$0xff]  ;;  %v5670_v38 = vld [vmem:[#allocation13 + $0x78] sm:$0xff] }
 0x220   :  { %v864_v48 = vmax.f32 %v860_v40, 0.0 }
 0x221   :  { %v863_v44 = vmax.f32 %v859_v43, 0.0 }
 0x223   :  { %4054 = vmatmul.mubr.f32.vlgmr.msra.gmra.mxu1 %v863_v44  ;;  %4092 = vmatmul.mubr.f32.vlgmr.msra.gmra.mxu0 %v863_v44 }
 0x224   :  { %4098 = vmatpush3.msra.mxu1 %v5608_v37  ;;  %4056 = vmatprep.mubr.f32.mxu1 %v864_v48  ;;  %v1092_v37 = vld [vmem:[#allocation9 + $0x40] sm:$0xff] }
 0x225   :  { %4094 = vmatprep.mubr.f32.mxu0 %v864_v48  ;;  %4099 = vmatprep.subr.mxu1 %v1098_v49 }
 0x226   :  { %4100 = vmatpush3.msra.mxu1 %v1098_v49  ;;  %4136 = vmatpush3.msra.mxu0 %v1246_v3 }
 0x227   :  { %4101 = vmatprep.subr.mxu1 %v1097_v50  ;;  %4057 = vmatmul.mubr.f32.gmra.mxu1 %v865_v51 }
 0x228   :  { %4095 = vmatmul.mubr.f32.gmra.mxu0 %v865_v51  ;;  %4102 = vmatpush3.msra.mxu1 %v1097_v50 }
 0x229   :  { %4103 = vmatprep.subr.mxu1 %v1096_v52  ;;  %4129 = vmatprep.mubr.f32.mxu1 %v862_v35  ;;  %v1231_v35 = vld [vmem:[#allocation12] sm:$0xff] }
 0x22a   :  { %4104 = vmatpush3.msra.mxu1 %v1096_v52  ;;  %4137 = vmatprep.subr.mxu0 %v1245_v5 }
 0x22b   :  { %4105 = vmatprep.subr.mxu1 %v1095_v53  ;;  %4138 = vmatpush3.msra.mxu0 %v1245_v5 }
 0x22c   :  { %4106 = vmatpush3.msra.mxu1 %v1095_v53  ;;  %4139 = vmatprep.subr.mxu0 %v1244_v7 }
 0x22d   :  { %4107 = vmatprep.subr.mxu1 %v1094_v54  ;;  %4140 = vmatpush3.msra.mxu0 %v1244_v7 }
 0x22e   :  { %4108 = vmatpush3.msra.mxu1 %v1094_v54  ;;  %4141 = vmatprep.subr.mxu0 %v1243_v9 }
 0x22f   :  { %4109 = vmatprep.subr.mxu1 %v1093_v55  ;;  %4142 = vmatpush3.msra.mxu0 %v1243_v9 }
 0x230   :  { %4110 = vmatpush3.msra.mxu1 %v1093_v55  ;;  %4143 = vmatprep.subr.mxu0 %v1242_v11 }
 0x231   :  { %4111 = vmatprep.subr.mxu1 %v1092_v37  ;;  %4144 = vmatpush3.msra.mxu0 %v1242_v11 }
 0x232   :  { %4112 = vmatpush3.msra.mxu1 %v1092_v37  ;;  %4145 = vmatprep.subr.mxu0 %v1241_v14 }
 0x233   :  { %4113 = vmatprep.subr.mxu1 %v1091_v57  ;;  %4146 = vmatpush3.msra.mxu0 %v1241_v14  ;;  %v3472_v14 = vld [vmem:[%s6118_s17] ss:$0 sm:$0xff] }
 0x234   :  { %4114 = vmatpush3.msra.mxu1 %v1091_v57  ;;  %4147 = vmatprep.subr.mxu0 %v1240_v16 }
 0x235   :  { %4115 = vmatprep.subr.mxu1 %v1090_v58  ;;  %4148 = vmatpush3.msra.mxu0 %v1240_v16 }
 0x236   :  { %4116 = vmatpush3.msra.mxu1 %v1090_v58  ;;  %4149 = vmatprep.subr.mxu0 %v1239_v18 }
 0x237   :  { %4117 = vmatprep.subr.mxu1 %v1089_v59  ;;  %4150 = vmatpush3.msra.mxu0 %v1239_v18  ;;  %v3468_v18 = vld [vmem:[%s6119_s27] ss:$0 sm:$0xff] }
 0x238   :  { %4118 = vmatpush3.msra.mxu1 %v1089_v59  ;;  %4151 = vmatprep.subr.mxu0 %v1238_v20 }
 0x239   :  { %4119 = vmatprep.subr.mxu1 %v1088_v61  ;;  %4152 = vmatpush3.msra.mxu0 %v1238_v20 }
 0x23a   :  { %4120 = vmatpush3.msra.mxu1 %v1088_v61  ;;  %4153 = vmatprep.subr.mxu0 %v1237_v23 }
 0x23b   :  { %4121 = vmatprep.subr.mxu1 %v1087_v62  ;;  %4154 = vmatpush3.msra.mxu0 %v1237_v23 }
 0x23c   :  { %4122 = vmatpush3.msra.mxu1 %v1087_v62  ;;  %4155 = vmatprep.subr.mxu0 %v1236_v25 }
 0x23d   :  { %4123 = vmatprep.subr.mxu1 %v1086_v63  ;;  %4156 = vmatpush3.msra.mxu0 %v1236_v25 }
 0x23e   :  { %4124 = vmatpush3.msra.mxu1 %v1086_v63  ;;  %4157 = vmatprep.subr.mxu0 %v1235_v27 }
 0x23f   :  { %4125 = vmatprep.subr.mxu1 %v1085_v1  ;;  %4158 = vmatpush3.msra.mxu0 %v1235_v27 }
 0x240   :  { %4126 = vmatpush3.msra.mxu1 %v1085_v1  ;;  %4159 = vmatprep.subr.mxu0 %v1234_v29 }
 0x241   :  { %4127 = vmatprep.subr.mxu1 %v1084_v2  ;;  %4160 = vmatpush3.msra.mxu0 %v1234_v29  ;;  %v584_v29 = vadd.f32 %v3468_v18, %v5611_v39 }
 0x242   :  { %4128 = vmatpush3.msra.mxu1 %v1084_v2  ;;  %4161 = vmatprep.subr.mxu0 %v1233_v31 }
 0x243   :  { %4130 = vmatmul.mubr.f32.vlgmr.msra.gmra.mxu1 %v863_v44  ;;  %4173 = vmatprep.subr.mxu1 %v1347_v4 }
 0x244   :  { %4132 = vmatprep.mubr.f32.mxu1 %v864_v48  ;;  %4174 = vmatpush3.msra.mxu1 %v1347_v4  ;;  %v3471_v4 = vld [vmem:[%s6117_s11] ss:$0 sm:$0xff] }
 0x245   :  { %4175 = vmatprep.subr.mxu1 %v1346_v6  ;;  %4162 = vmatpush3.msra.mxu0 %v1233_v31 }
 0x246   :  { %4176 = vmatpush3.msra.mxu1 %v1346_v6  ;;  %4163 = vmatprep.subr.mxu0 %v1232_v33 }
 0x247   :  { %4133 = vmatmul.mubr.f32.gmra.mxu1 %v865_v51  ;;  %4177 = vmatprep.subr.mxu1 %v1345_v8 }
 0x248   :  { %4178 = vmatpush3.msra.mxu1 %v1345_v8  ;;  %4164 = vmatpush3.msra.mxu0 %v1232_v33 }
 0x249   :  { %4179 = vmatprep.subr.mxu1 %v1344_v10  ;;  %4165 = vmatprep.subr.mxu0 %v1231_v35 }
 0x24a   :  { %4180 = vmatpush3.msra.mxu1 %v1344_v10  ;;  %4166 = vmatpush3.msra.mxu0 %v1231_v35 }
 0x24b   :  { %4181 = vmatprep.subr.mxu1 %v1343_v12  ;;  %4211 = vmatprep.subr.mxu0 %v5670_v38 }
 0x24c   :  { %4182 = vmatpush3.msra.mxu1 %v1343_v12 }
 0x24d   :  { %4183 = vmatprep.subr.mxu1 %v1342_v15 }
 0x24e   :  { %4184 = vmatpush3.msra.mxu1 %v1342_v15 }
 0x24f   :  { %4185 = vmatprep.subr.mxu1 %v1341_v17 }
 0x250   :  { %4186 = vmatpush3.msra.mxu1 %v1341_v17 }
 0x251   :  { %4187 = vmatprep.subr.mxu1 %v1340_v19 }
 0x252   :  { %4188 = vmatpush3.msra.mxu1 %v1340_v19 }
 0x253   :  { %4189 = vmatprep.subr.mxu1 %v1339_v22 }
 0x254   :  { %4190 = vmatpush3.msra.mxu1 %v1339_v22 }
 0x255   :  { %4191 = vmatprep.subr.mxu1 %v1338_v24 }
 0x256   :  { %4192 = vmatpush3.msra.mxu1 %v1338_v24 }
 0x257   :  { %4193 = vmatprep.subr.mxu1 %v1337_v26 }
 0x258   :  { %4194 = vmatpush3.msra.mxu1 %v1337_v26 }
 0x259   :  { %4195 = vmatprep.subr.mxu1 %v1336_v28 }
 0x25a   :  { %4196 = vmatpush3.msra.mxu1 %v1336_v28 }
 0x25b   :  { %4197 = vmatprep.subr.mxu1 %v1335_v30 }
 0x25c   :  { %4198 = vmatpush3.msra.mxu1 %v1335_v30 }
 0x25d   :  { %4199 = vmatprep.subr.mxu1 %v1334_v32 }
 0x25e   :  { %4200 = vmatpush3.msra.mxu1 %v1334_v32 }
 0x25f   :  { %4201 = vmatprep.subr.mxu1 %v1333_v34 }
 0x260   :  { %4202 = vmatpush3.msra.mxu1 %v1333_v34 }
 0x261   :  { %4203 = vmatprep.subr.mxu1 %v1332_v36 }
 0x262   :  { %4204 = vmatpush3.msra.mxu1 %v1332_v36 }
 0x2e3   :  { %v4055_v42 = vpop.f32.mrf.mxu1  ;;  %v4093_v45 = vpop.f32.mrf.mxu0 }
 0x2e4   :  { %v968_v53 = vrot.slane %v4055_v42, 7 }
 0x2e5   :  { %v948_v40 = vpop.f32.mrf.mxu1  ;;  %v1061_v52 = vpop.f32.mrf.mxu0 }
 0x2e6   :  { %v967_v49 = vrot.slane %v948_v40, 7  ;;  %v585_v40 = vadd.f32 %v3468_v18, %v5613_v41  ;;  %v1462_v41 = vld [vmem:[#allocation13 + $0x68] sm:$0xff] }
 0x2e7   :  { %v4058_v43 = vpop.f32.mrf.mxu1 }
 0x2e8   :  { %v970_v44 = vrot.slane %v4058_v43, 7  ;;  %v4096_v58 = vpop.f32.mrf.mxu0  ;;  %v973_v6 = vsel %vm693_vm0, %v967_v49, %v968_v53 }
 0x2e9   :  { %v958_v48 = vpop.f32.mrf.mxu1  ;;  %v1081_v19 = vadd.f32 %v4093_v45, %v973_v6  ;;  %v1604_v6 = vld [vmem:[#allocation15 + $0x60] sm:$0xff] }
 0x2ea   :  { %v974_v50 = vsel %vm693_vm0, %v970_v44, %v967_v49  ;;  %v969_v51 = vrot.slane %v958_v48, 7  ;;  %v1071_v10 = vpop.f32.mrf.mxu0  ;;  %v1463_v49 = vld [vmem:[#allocation13 + $0x70] sm:$0xff] }
 0x2eb   :  { %v975_v55 = vsel %vm5623_vm1, %v974_v50, 0.0  ;;  %v587_v50 = vadd.f32 %v3468_v18, %v5629_v60  ;;  %v1460_v60 = vld [vmem:[#allocation13 + $0x58] sm:$0xff] }
 0x2ec   :  { %v972_v37 = vsel %vm693_vm0, %v968_v53, %v969_v51  ;;  %v1080_v62 = vadd.f32 %v1061_v52, %v975_v55  ;;  %v971_v63 = vsel %vm693_vm0, %v969_v51, %v970_v44  ;;  %v586_v44 = vadd.f32 %v3468_v18, %v5617_v47  ;;  %v1461_v51 = vld [vmem:[#allocation13 + $0x60] sm:$0xff]  ;;  %v1458_v52 = vld [vmem:[#allocation13 + $0x48] sm:$0xff]  ;;  %v1455_v55 = vld [vmem:[#allocation13 + $0x30] sm:$0xff] }
 0x2ed   :  { %v977_v2 = vsel %vm5635_vm3, %v972_v37, 0.0  ;;  %v1083_v9 = vadd.f32 %v4096_v58, %v971_v63  ;;  %v1457_v53 = vld [vmem:[#allocation13 + $0x40] sm:$0xff]  ;;  %v1454_v37 = vld [vmem:[#allocation13 + $0x28] sm:$0xff]  ;;  %v1452_v58 = vld [vmem:[#allocation13 + $0x18] sm:$0xff] }
 0x2ee   :  { %v1082_v15 = vadd.f32 %v1071_v10, %v977_v2  ;;  %v1607_v63 = vld [vmem:[#allocation15 + $0x78] sm:$0xff]  ;;  %v1606_v2 = vld [vmem:[#allocation15 + $0x70] sm:$0xff] }
 0x2ef   :  { %4249 = vmatprep.subr.mxu1 %v1607_v63  ;;  %v1602_v10 = vld [vmem:[#allocation15 + $0x50] sm:$0xff]  ;;  %v1712_v18 = vld [vmem:[#allocation16 + $0x38] sm:$0xff] }
 0x303   :  { %v4131_v54 = vpop.f32.mrf.mxu1 }
 0x304   :  { %v1186_v59 = vrot.slane %v4131_v54, 1  ;;  %v1456_v54 = vld [vmem:[#allocation13 + $0x38] sm:$0xff] }
 0x305   :  { %v1166_v57 = vpop.f32.mrf.mxu1 }
 0x306   :  { %v1185_v61 = vrot.slane %v1166_v57, 1  ;;  %v1453_v57 = vld [vmem:[#allocation13 + $0x20] sm:$0xff] }
 0x307   :  { %v4134_v1 = vpop.f32.mrf.mxu1 }
 0x308   :  { %v1191_v3 = vsel %vm819_vm2, %v1185_v61, %v1186_v59  ;;  %v1188_v5 = vrot.slane %v4134_v1, 1  ;;  %v1720_v1 = vld [vmem:[#allocation16 + $0x78] sm:$0xff] }
 0x309   :  { %v1197_v7 = vadd.f32 %v1191_v3, %v1080_v62  ;;  %v1176_v8 = vpop.f32.mrf.mxu1  ;;  %v1449_v62 = vld [vmem:[#allocation13] sm:$0xff]  ;;  %v1719_v3 = vld [vmem:[#allocation16 + $0x70] sm:$0xff] }
 0x30a   :  { %v1192_v11 = vsel %vm819_vm2, %v1188_v5, %v1185_v61  ;;  %v1187_v12 = vrot.slane %v1176_v8, 1  ;;  %v1450_v61 = vld [vmem:[#allocation13 + $0x8] sm:$0xff]  ;;  %v1603_v8 = vld [vmem:[#allocation15 + $0x58] sm:$0xff] }
 0x30b   :  { %v1208_v16 = vmul.f32 %v3471_v4, %v1197_v7  ;;  %v1196_v17 = vsel %vm5647_vm4, %v1192_v11, 0.0  ;;  %v1717_v7 = vld [vmem:[#allocation16 + $0x60] sm:$0xff]  ;;  %v1715_v11 = vld [vmem:[#allocation16 + $0x50] sm:$0xff] }
 0x30c   :  { %v1200_v20 = vadd.f32 %v1196_v17, %v1083_v9  ;;  %v1189_v22 = vsel %vm819_vm2, %v1187_v12, %v1188_v5  ;;  %v1190_v23 = vsel %vm819_vm2, %v1186_v59, %v1187_v12  ;;  %v1451_v59 = vld [vmem:[#allocation13 + $0x10] sm:$0xff]  ;;  %v1718_v5 = vld [vmem:[#allocation16 + $0x68] sm:$0xff]  ;;  %v1716_v9 = vld [vmem:[#allocation16 + $0x58] sm:$0xff] }
 0x30d   :  { %v1194_v24 = vsel %vm5656_vm5, %v1190_v23, 0.0  ;;  %v1199_v25 = vadd.f32 %v1189_v22, %v1082_v15  ;;  %v1219_v26 = vadd.f32 %v3472_v14, %v1208_v16  ;;  %v1601_v12 = vld [vmem:[#allocation15 + $0x48] sm:$0xff]  ;;  %v1600_v15 = vld [vmem:[#allocation15 + $0x40] sm:$0xff]  ;;  %v1599_v17 = vld [vmem:[#allocation15 + $0x38] sm:$0xff] }
 0x30e   :  { %v1211_v27 = vmul.f32 %v3471_v4, %v1200_v20  ;;  %v1198_v28 = vadd.f32 %v1194_v24, %v1081_v19  ;;  %v1713_v16 = vld [vmem:[#allocation16 + $0x40] sm:$0xff]  ;;  %v1598_v19 = vld [vmem:[#allocation15 + $0x30] sm:$0xff]  ;;  %v1597_v22 = vld [vmem:[#allocation15 + $0x28] sm:$0xff] }
 0x30f   :  { %v1210_v30 = vmul.f32 %v3471_v4, %v1199_v25  ;;  %v1223_v31 = vmax.f32 %v1219_v26, 0.0  ;;  %v1711_v20 = vld [vmem:[#allocation16 + $0x30] sm:$0xff]  ;;  %v1710_v23 = vld [vmem:[#allocation16 + $0x28] sm:$0xff]  ;;  %v1596_v24 = vld [vmem:[#allocation15 + $0x20] sm:$0xff] }
 0x310   :  { %v1209_v32 = vmul.f32 %v3471_v4, %v1198_v28  ;;  %v1222_v36 = vadd.f32 %v3472_v14, %v1211_v27  ;;  %v1605_v4 = vld [vmem:[#allocation15 + $0x68] sm:$0xff]  ;;  %v1709_v25 = vld [vmem:[#allocation16 + $0x20] sm:$0xff]  ;;  %v1595_v26 = vld [vmem:[#allocation15 + $0x18] sm:$0xff] }
 0x311   :  { %v5701_v33 = vadd.f32 %v1223_v31, %v584_v29  ;;  %v1221_v34 = vadd.f32 %v3472_v14, %v1210_v30  ;;  %v1708_v27 = vld [vmem:[#allocation16 + $0x18] sm:$0xff]  ;;  %v1594_v28 = vld [vmem:[#allocation15 + $0x10] sm:$0xff]  ;;  %v1593_v30 = vld [vmem:[#allocation15 + $0x8] sm:$0xff] }
 0x312   :  { %v1220_v35 = vadd.f32 %v3472_v14, %v1209_v32  ;;  %v1226_v39 = vmax.f32 %v1222_v36, 0.0  ;;  %v1714_v14 = vld [vmem:[#allocation16 + $0x48] sm:$0xff]  ;;  %v1707_v29 = vld [vmem:[#allocation16 + $0x10] sm:$0xff]  ;;  %v1592_v32 = vld [vmem:[#allocation15] sm:$0xff] }
 0x313   :  { %4167 = vmatprep.mubr.f32.mxu0 %v5701_v33  ;;  %4205 = vmatprep.mubr.f32.mxu1 %v5701_v33  ;;  %v1225_v42 = vmax.f32 %v1221_v34, 0.0  ;;  %v1706_v31 = vld [vmem:[#allocation16 + $0x8] sm:$0xff]  ;;  %v1705_v34 = vld [vmem:[#allocation16] sm:$0xff] }
 0x314   :  { %v1224_v43 = vmax.f32 %v1220_v35, 0.0  ;;  %v5717_v47 = vadd.f32 %v1226_v39, %v587_v50  ;;  %v5725_v35 = vld [vmem:[#allocation18 + $0x78] sm:$0xff] }
 0x315   :  { %v5709_v48 = vadd.f32 %v1225_v42, %v586_v44 }
 0x316   :  { %v5707_v45 = vadd.f32 %v1224_v43, %v585_v40 }
 0x318   :  { %4168 = vmatmul.mubr.f32.vlgmr.msra.gmra.mxu0 %v5707_v45  ;;  %4206 = vmatmul.mubr.f32.vlgmr.msra.gmra.mxu1 %v5707_v45 }
 0x319   :  { %4212 = vmatpush3.msra.mxu0 %v5670_v38  ;;  %4170 = vmatprep.mubr.f32.mxu0 %v5709_v48  ;;  %v1459_v38 = vld [vmem:[#allocation13 + $0x50] sm:$0xff] }
 0x31a   :  { %4208 = vmatprep.mubr.f32.mxu1 %v5709_v48  ;;  %4213 = vmatprep.subr.mxu0 %v1463_v49 }
 0x31b   :  { %4214 = vmatpush3.msra.mxu0 %v1463_v49  ;;  %4250 = vmatpush3.msra.mxu1 %v1607_v63 }
 0x31c   :  { %4215 = vmatprep.subr.mxu0 %v1462_v41  ;;  %4171 = vmatmul.mubr.f32.gmra.mxu0 %v5717_v47 }
 0x31d   :  { %4209 = vmatmul.mubr.f32.gmra.mxu1 %v5717_v47  ;;  %4216 = vmatpush3.msra.mxu0 %v1462_v41 }
 0x31e   :  { %4217 = vmatprep.subr.mxu0 %v1461_v51  ;;  %4243 = vmatprep.mubr.f32.mxu0 %v5701_v33 }
 0x31f   :  { %4218 = vmatpush3.msra.mxu0 %v1461_v51  ;;  %4251 = vmatprep.subr.mxu1 %v1606_v2 }
 0x320   :  { %4219 = vmatprep.subr.mxu0 %v1460_v60  ;;  %4252 = vmatpush3.msra.mxu1 %v1606_v2 }
 0x321   :  { %4220 = vmatpush3.msra.mxu0 %v1460_v60  ;;  %4253 = vmatprep.subr.mxu1 %v1605_v4 }
 0x322   :  { %4221 = vmatprep.subr.mxu0 %v1459_v38  ;;  %4254 = vmatpush3.msra.mxu1 %v1605_v4 }
 0x323   :  { %4222 = vmatpush3.msra.mxu0 %v1459_v38  ;;  %4255 = vmatprep.subr.mxu1 %v1604_v6 }
 0x324   :  { %4223 = vmatprep.subr.mxu0 %v1458_v52  ;;  %4256 = vmatpush3.msra.mxu1 %v1604_v6 }
 0x325   :  { %4224 = vmatpush3.msra.mxu0 %v1458_v52  ;;  %4257 = vmatprep.subr.mxu1 %v1603_v8 }
 0x326   :  { %4225 = vmatprep.subr.mxu0 %v1457_v53  ;;  %4258 = vmatpush3.msra.mxu1 %v1603_v8 }
 0x327   :  { %4226 = vmatpush3.msra.mxu0 %v1457_v53  ;;  %4259 = vmatprep.subr.mxu1 %v1602_v10 }
 0x328   :  { %4227 = vmatprep.subr.mxu0 %v1456_v54  ;;  %4260 = vmatpush3.msra.mxu1 %v1602_v10  ;;  %v3474_v10 = vld [vmem:[%s6121_s3] ss:$0 sm:$0xff] }
 0x329   :  { %4228 = vmatpush3.msra.mxu0 %v1456_v54  ;;  %4261 = vmatprep.subr.mxu1 %v1601_v12 }
 0x32a   :  { %4229 = vmatprep.subr.mxu0 %v1455_v55  ;;  %4262 = vmatpush3.msra.mxu1 %v1601_v12 }
 0x32b   :  { %4230 = vmatpush3.msra.mxu0 %v1455_v55  ;;  %4263 = vmatprep.subr.mxu1 %v1600_v15 }
 0x32c   :  { %4231 = vmatprep.subr.mxu0 %v1454_v37  ;;  %4264 = vmatpush3.msra.mxu1 %v1600_v15 }
 0x32d   :  { %4232 = vmatpush3.msra.mxu0 %v1454_v37  ;;  %4265 = vmatprep.subr.mxu1 %v1599_v17 }
 0x32e   :  { %4233 = vmatprep.subr.mxu0 %v1453_v57  ;;  %4266 = vmatpush3.msra.mxu1 %v1599_v17 }
 0x32f   :  { %4234 = vmatpush3.msra.mxu0 %v1453_v57  ;;  %4267 = vmatprep.subr.mxu1 %v1598_v19 }
 0x330   :  { %4235 = vmatprep.subr.mxu0 %v1452_v58  ;;  %4268 = vmatpush3.msra.mxu1 %v1598_v19 }
 0x331   :  { %4236 = vmatpush3.msra.mxu0 %v1452_v58  ;;  %4269 = vmatprep.subr.mxu1 %v1597_v22 }
 0x332   :  { %4237 = vmatprep.subr.mxu0 %v1451_v59  ;;  %4270 = vmatpush3.msra.mxu1 %v1597_v22 }
 0x333   :  { %4238 = vmatpush3.msra.mxu0 %v1451_v59  ;;  %4271 = vmatprep.subr.mxu1 %v1596_v24 }
 0x334   :  { %4239 = vmatprep.subr.mxu0 %v1450_v61  ;;  %4272 = vmatpush3.msra.mxu1 %v1596_v24 }
 0x335   :  { %4240 = vmatpush3.msra.mxu0 %v1450_v61  ;;  %4273 = vmatprep.subr.mxu1 %v1595_v26 }
 0x336   :  { %4241 = vmatprep.subr.mxu0 %v1449_v62  ;;  %4274 = vmatpush3.msra.mxu1 %v1595_v26 }
 0x337   :  { %4242 = vmatpush3.msra.mxu0 %v1449_v62  ;;  %4275 = vmatprep.subr.mxu1 %v1594_v28 }
 0x338   :  { %4244 = vmatmul.mubr.f32.vlgmr.msra.gmra.mxu0 %v5707_v45  ;;  %4287 = vmatprep.subr.mxu0 %v1720_v1 }
 0x339   :  { %4246 = vmatprep.mubr.f32.mxu0 %v5709_v48  ;;  %4288 = vmatpush3.msra.mxu0 %v1720_v1 }
 0x33a   :  { %4289 = vmatprep.subr.mxu0 %v1719_v3  ;;  %4276 = vmatpush3.msra.mxu1 %v1594_v28 }
 0x33b   :  { %4290 = vmatpush3.msra.mxu0 %v1719_v3  ;;  %4277 = vmatprep.subr.mxu1 %v1593_v30  ;;  %v3473_v3 = vld [vmem:[%s6120_s9] ss:$0 sm:$0xff] }
 0x33c   :  { %4247 = vmatmul.mubr.f32.gmra.mxu0 %v5717_v47  ;;  %4291 = vmatprep.subr.mxu0 %v1718_v5 }
 0x33d   :  { %4292 = vmatpush3.msra.mxu0 %v1718_v5  ;;  %4278 = vmatpush3.msra.mxu1 %v1593_v30 }
 0x33e   :  { %4293 = vmatprep.subr.mxu0 %v1717_v7  ;;  %4279 = vmatprep.subr.mxu1 %v1592_v32 }
 0x33f   :  { %4294 = vmatpush3.msra.mxu0 %v1717_v7  ;;  %4280 = vmatpush3.msra.mxu1 %v1592_v32 }
 0x340   :  { %4295 = vmatprep.subr.mxu0 %v1716_v9  ;;  %4325 = vmatprep.subr.mxu1 %v5725_v35 }
 0x341   :  { %4296 = vmatpush3.msra.mxu0 %v1716_v9 }
 0x342   :  { %4297 = vmatprep.subr.mxu0 %v1715_v11 }
 0x343   :  { %4298 = vmatpush3.msra.mxu0 %v1715_v11 }
 0x344   :  { %4299 = vmatprep.subr.mxu0 %v1714_v14 }
 0x345   :  { %4300 = vmatpush3.msra.mxu0 %v1714_v14 }
 0x346   :  { %4301 = vmatprep.subr.mxu0 %v1713_v16 }
 0x347   :  { %4302 = vmatpush3.msra.mxu0 %v1713_v16 }
 0x348   :  { %4303 = vmatprep.subr.mxu0 %v1712_v18 }
 0x349   :  { %4304 = vmatpush3.msra.mxu0 %v1712_v18 }
 0x34a   :  { %4305 = vmatprep.subr.mxu0 %v1711_v20 }
 0x34b   :  { %4306 = vmatpush3.msra.mxu0 %v1711_v20 }
 0x34c   :  { %4307 = vmatprep.subr.mxu0 %v1710_v23 }
 0x34d   :  { %4308 = vmatpush3.msra.mxu0 %v1710_v23 }
 0x34e   :  { %4309 = vmatprep.subr.mxu0 %v1709_v25 }
 0x34f   :  { %4310 = vmatpush3.msra.mxu0 %v1709_v25 }
 0x350   :  { %4311 = vmatprep.subr.mxu0 %v1708_v27 }
 0x351   :  { %4312 = vmatpush3.msra.mxu0 %v1708_v27 }
 0x352   :  { %4313 = vmatprep.subr.mxu0 %v1707_v29 }
 0x353   :  { %4314 = vmatpush3.msra.mxu0 %v1707_v29 }
 0x354   :  { %4315 = vmatprep.subr.mxu0 %v1706_v31 }
 0x355   :  { %4316 = vmatpush3.msra.mxu0 %v1706_v31 }
 0x356   :  { %4317 = vmatprep.subr.mxu0 %v1705_v34 }
 0x357   :  { %4318 = vmatpush3.msra.mxu0 %v1705_v34  ;;  %v1824_v34 = vld [vmem:[#allocation18 + $0x70] sm:$0xff] }
 0x3d8   :  { %v4207_v36 = vpop.f32.mrf.mxu1  ;;  %v4169_v42 = vpop.f32.mrf.mxu0 }
 0x3d9   :  { %v1434_v52 = vrot.slane %v4207_v36, 7  ;;  %v1823_v36 = vld [vmem:[#allocation18 + $0x68] sm:$0xff] }
 0x3da   :  { %v1414_v40 = vpop.f32.mrf.mxu1  ;;  %v1313_v43 = vpop.f32.mrf.mxu0 }
 0x3db   :  { %v1433_v41 = vrot.slane %v1414_v40, 7  ;;  %v1822_v40 = vld [vmem:[#allocation18 + $0x60] sm:$0xff] }
 0x3dc   :  { %v4172_v39 = vpop.f32.mrf.mxu0 }
 0x3dd   :  { %v4210_v44 = vpop.f32.mrf.mxu1  ;;  %v1439_v4 = vsel %vm693_vm0, %v1433_v41, %v1434_v52 }
 0x3de   :  { %v1436_v49 = vrot.slane %v4210_v44, 7  ;;  %v1323_v60 = vpop.f32.mrf.mxu0  ;;  %v1446_v15 = vadd.f32 %v4169_v42, %v1439_v4  ;;  %v1820_v44 = vld [vmem:[#allocation18 + $0x50] sm:$0xff]  ;;  %v1966_v4 = vld [vmem:[#allocation21 + $0x48] sm:$0xff] }
 0x3df   :  { %v1424_v50 = vpop.f32.mrf.mxu1 }
 0x3e0   :  { %v1440_v51 = vsel %vm693_vm0, %v1436_v49, %v1433_v41  ;;  %v1435_v38 = vrot.slane %v1424_v50, 7  ;;  %v1816_v50 = vld [vmem:[#allocation18 + $0x30] sm:$0xff]  ;;  %v1815_v41 = vld [vmem:[#allocation18 + $0x28] sm:$0xff] }
 0x3e1   :  { %v1441_v54 = vsel %vm5623_vm1, %v1440_v51, 0.0  ;;  %v1814_v51 = vld [vmem:[#allocation18 + $0x20] sm:$0xff] }
 0x3e2   :  { %v1438_v55 = vsel %vm693_vm0, %v1434_v52, %v1435_v38  ;;  %v1445_v59 = vadd.f32 %v1441_v54, %v1313_v43  ;;  %v1437_v61 = vsel %vm693_vm0, %v1435_v38, %v1436_v49  ;;  %v1821_v43 = vld [vmem:[#allocation18 + $0x58] sm:$0xff]  ;;  %v1812_v38 = vld [vmem:[#allocation18 + $0x10] sm:$0xff]  ;;  %v1811_v52 = vld [vmem:[#allocation18 + $0x8] sm:$0xff] }
 0x3e3   :  { %v1443_v63 = vsel %vm5635_vm3, %v1438_v55, 0.0  ;;  %v1448_v7 = vadd.f32 %v4172_v39, %v1437_v61  ;;  %v1819_v39 = vld [vmem:[#allocation18 + $0x48] sm:$0xff]  ;;  %v1817_v49 = vld [vmem:[#allocation18 + $0x38] sm:$0xff]  ;;  %v1969_v61 = vld [vmem:[#allocation21 + $0x60] sm:$0xff] }
 0x3e4   :  { %v1447_v11 = vadd.f32 %v1443_v63, %v1323_v60  ;;  %v1813_v60 = vld [vmem:[#allocation18 + $0x18] sm:$0xff] }
 0x3e5   :  { %v1972_v54 = vld [vmem:[#allocation21 + $0x78] sm:$0xff] }
 0x3e6   :  { %v2073_v55 = vld [vmem:[#allocation19 + $0x78] sm:$0xff]  ;;  %4363 = vmatprep.subr.mxu0 %v1972_v54 }
 0x3e7   :  { %v1968_v63 = vld [vmem:[#allocation21 + $0x58] sm:$0xff] }
 0x3f8   :  { %v4245_v53 = vpop.f32.mrf.mxu0 }
 0x3f9   :  { %v1551_v57 = vrot.slane %v4245_v53, 1  ;;  %v1810_v53 = vld [vmem:[#allocation18] sm:$0xff] }
 0x3fa   :  { %v1531_v37 = vpop.f32.mrf.mxu0 }
 0x3fb   :  { %v1550_v58 = vrot.slane %v1531_v37, 1  ;;  %v1971_v37 = vld [vmem:[#allocation21 + $0x70] sm:$0xff] }
 0x3fc   :  { %v4248_v62 = vpop.f32.mrf.mxu0 }
 0x3fd   :  { %v1556_v1 = vsel %vm819_vm2, %v1550_v58, %v1551_v57  ;;  %v1553_v2 = vrot.slane %v4248_v62, 1  ;;  %v2070_v62 = vld [vmem:[#allocation19 + $0x60] sm:$0xff] }
 0x3fe   :  { %v1562_v5 = vadd.f32 %v1556_v1, %v1445_v59  ;;  %v1541_v6 = vpop.f32.mrf.mxu0  ;;  %v2071_v59 = vld [vmem:[#allocation19 + $0x68] sm:$0xff]  ;;  %v2069_v1 = vld [vmem:[#allocation19 + $0x58] sm:$0xff] }
 0x3ff   :  { %v1557_v8 = vsel %vm819_vm2, %v1553_v2, %v1550_v58  ;;  %v1552_v9 = vrot.slane %v1541_v6, 1  ;;  %v1970_v58 = vld [vmem:[#allocation21 + $0x68] sm:$0xff]  ;;  %v1965_v6 = vld [vmem:[#allocation21 + $0x40] sm:$0xff] }
 0x400   :  { %v1561_v12 = vsel %vm5647_vm4, %v1557_v8, 0.0  ;;  %v1573_v14 = vmul.f32 %v3473_v3, %v1562_v5  ;;  %v2067_v5 = vld [vmem:[#allocation19 + $0x48] sm:$0xff]  ;;  %v1964_v8 = vld [vmem:[#allocation21 + $0x38] sm:$0xff] }
 0x401   :  { %v1565_v16 = vadd.f32 %v1561_v12, %v1448_v7  ;;  %v1554_v17 = vsel %vm819_vm2, %v1552_v9, %v1553_v2  ;;  %v1555_v18 = vsel %vm819_vm2, %v1551_v57, %v1552_v9  ;;  %v2072_v57 = vld [vmem:[#allocation19 + $0x70] sm:$0xff]  ;;  %v2066_v7 = vld [vmem:[#allocation19 + $0x40] sm:$0xff]  ;;  %v2065_v9 = vld [vmem:[#allocation19 + $0x38] sm:$0xff] }
 0x402   :  { %v1559_v19 = vsel %vm5656_vm5, %v1555_v18, 0.0  ;;  %v1564_v20 = vadd.f32 %v1554_v17, %v1447_v11  ;;  %v1584_v22 = vadd.f32 %v3474_v10, %v1573_v14  ;;  %v1967_v2 = vld [vmem:[#allocation21 + $0x50] sm:$0xff]  ;;  %v1962_v12 = vld [vmem:[#allocation21 + $0x28] sm:$0xff]  ;;  %v1960_v17 = vld [vmem:[#allocation21 + $0x18] sm:$0xff] }
 0x403   :  { %v1563_v23 = vadd.f32 %v1559_v19, %v1446_v15  ;;  %v1576_v27 = vmul.f32 %v3473_v3, %v1565_v16  ;;  %v2064_v11 = vld [vmem:[#allocation19 + $0x30] sm:$0xff]  ;;  %v2063_v14 = vld [vmem:[#allocation19 + $0x28] sm:$0xff]  ;;  %v1961_v15 = vld [vmem:[#allocation21 + $0x20] sm:$0xff] }
 0x404   :  { %v1588_v24 = vmax.f32 %v1584_v22, 0.0  ;;  %v1575_v25 = vmul.f32 %v3473_v3, %v1564_v20  ;;  %v2062_v16 = vld [vmem:[#allocation19 + $0x20] sm:$0xff]  ;;  %v2061_v18 = vld [vmem:[#allocation19 + $0x18] sm:$0xff]  ;;  %v1959_v19 = vld [vmem:[#allocation21 + $0x10] sm:$0xff] }
 0x405   :  { %v1574_v26 = vmul.f32 %v3473_v3, %v1563_v23  ;;  %v1587_v31 = vadd.f32 %v3474_v10, %v1576_v27  ;;  %v2068_v3 = vld [vmem:[#allocation19 + $0x50] sm:$0xff]  ;;  %v1958_v22 = vld [vmem:[#allocation21 + $0x8] sm:$0xff] }
 0x406   :  { %4281 = vmatprep.mubr.f32.mxu1 %v1588_v24  ;;  %4319 = vmatprep.mubr.f32.mxu0 %v1588_v24  ;;  %v1586_v28 = vadd.f32 %v3474_v10, %v1575_v25  ;;  %v2060_v20 = vld [vmem:[#allocation19 + $0x10] sm:$0xff]  ;;  %v2059_v23 = vld [vmem:[#allocation19 + $0x8] sm:$0xff]  ;;  %v2058_v25 = vld [vmem:[#allocation19] sm:$0xff] }
 0x407   :  { %v1585_v29 = vadd.f32 %v3474_v10, %v1574_v26  ;;  %v1591_v42 = vmax.f32 %v1587_v31, 0.0  ;;  %v1963_v10 = vld [vmem:[#allocation21 + $0x30] sm:$0xff]  ;;  %v5755_v26 = vld [vmem:[#allocation22 + $0x78] sm:$0xff] }
 0x408   :  { %v1590_v32 = vmax.f32 %v1586_v28, 0.0 }
 0x409   :  { %v1589_v30 = vmax.f32 %v1585_v29, 0.0 }
 0x40b   :  { %4282 = vmatmul.mubr.f32.vlgmr.msra.gmra.mxu1 %v1589_v30  ;;  %4320 = vmatmul.mubr.f32.vlgmr.msra.gmra.mxu0 %v1589_v30 }
 0x40c   :  { %4326 = vmatpush3.msra.mxu1 %v5725_v35  ;;  %4284 = vmatprep.mubr.f32.mxu1 %v1590_v32  ;;  %v1818_v35 = vld [vmem:[#allocation18 + $0x40] sm:$0xff] }
 0x40d   :  { %4322 = vmatprep.mubr.f32.mxu0 %v1590_v32  ;;  %4327 = vmatprep.subr.mxu1 %v1824_v34 }
 0x40e   :  { %4328 = vmatpush3.msra.mxu1 %v1824_v34  ;;  %4364 = vmatpush3.msra.mxu0 %v1972_v54 }
 0x40f   :  { %4329 = vmatprep.subr.mxu1 %v1823_v36  ;;  %4285 = vmatmul.mubr.f32.gmra.mxu1 %v1591_v42 }
 0x410   :  { %4323 = vmatmul.mubr.f32.gmra.mxu0 %v1591_v42  ;;  %4330 = vmatpush3.msra.mxu1 %v1823_v36 }
 0x411   :  { %4331 = vmatprep.subr.mxu1 %v1822_v40  ;;  %4357 = vmatprep.mubr.f32.mxu1 %v1588_v24  ;;  %v1957_v24 = vld [vmem:[#allocation21] sm:$0xff] }
 0x412   :  { %4332 = vmatpush3.msra.mxu1 %v1822_v40  ;;  %4365 = vmatprep.subr.mxu0 %v1971_v37 }
 0x413   :  { %4333 = vmatprep.subr.mxu1 %v1821_v43  ;;  %4366 = vmatpush3.msra.mxu0 %v1971_v37 }
 0x414   :  { %4334 = vmatpush3.msra.mxu1 %v1821_v43  ;;  %4367 = vmatprep.subr.mxu0 %v1970_v58 }
 0x415   :  { %4335 = vmatprep.subr.mxu1 %v1820_v44  ;;  %4368 = vmatpush3.msra.mxu0 %v1970_v58 }
 0x416   :  { %4336 = vmatpush3.msra.mxu1 %v1820_v44  ;;  %4369 = vmatprep.subr.mxu0 %v1969_v61 }
 0x417   :  { %4337 = vmatprep.subr.mxu1 %v1819_v39  ;;  %4370 = vmatpush3.msra.mxu0 %v1969_v61 }
 0x418   :  { %4338 = vmatpush3.msra.mxu1 %v1819_v39  ;;  %4371 = vmatprep.subr.mxu0 %v1968_v63 }
 0x419   :  { %4339 = vmatprep.subr.mxu1 %v1818_v35  ;;  %4372 = vmatpush3.msra.mxu0 %v1968_v63 }
 0x41a   :  { %4340 = vmatpush3.msra.mxu1 %v1818_v35  ;;  %4373 = vmatprep.subr.mxu0 %v1967_v2 }
 0x41b   :  { %4341 = vmatprep.subr.mxu1 %v1817_v49  ;;  %4374 = vmatpush3.msra.mxu0 %v1967_v2  ;;  %v3476_v2 = vld [vmem:[%s6123_s16] ss:$0 sm:$0xff] }
 0x41c   :  { %4342 = vmatpush3.msra.mxu1 %v1817_v49  ;;  %4375 = vmatprep.subr.mxu0 %v1966_v4 }
 0x41d   :  { %4343 = vmatprep.subr.mxu1 %v1816_v50  ;;  %4376 = vmatpush3.msra.mxu0 %v1966_v4 }
 0x41e   :  { %4344 = vmatpush3.msra.mxu1 %v1816_v50  ;;  %4377 = vmatprep.subr.mxu0 %v1965_v6 }
 0x41f   :  { %4345 = vmatprep.subr.mxu1 %v1815_v41  ;;  %4378 = vmatpush3.msra.mxu0 %v1965_v6 }
 0x420   :  { %4346 = vmatpush3.msra.mxu1 %v1815_v41  ;;  %4379 = vmatprep.subr.mxu0 %v1964_v8 }
 0x421   :  { %4347 = vmatprep.subr.mxu1 %v1814_v51  ;;  %4380 = vmatpush3.msra.mxu0 %v1964_v8 }
 0x422   :  { %4348 = vmatpush3.msra.mxu1 %v1814_v51  ;;  %4381 = vmatprep.subr.mxu0 %v1963_v10 }
 0x423   :  { %4349 = vmatprep.subr.mxu1 %v1813_v60  ;;  %4382 = vmatpush3.msra.mxu0 %v1963_v10 }
 0x424   :  { %4350 = vmatpush3.msra.mxu1 %v1813_v60  ;;  %4383 = vmatprep.subr.mxu0 %v1962_v12 }
 0x425   :  { %4351 = vmatprep.subr.mxu1 %v1812_v38  ;;  %4384 = vmatpush3.msra.mxu0 %v1962_v12 }
 0x426   :  { %4352 = vmatpush3.msra.mxu1 %v1812_v38  ;;  %4385 = vmatprep.subr.mxu0 %v1961_v15 }
 0x427   :  { %4353 = vmatprep.subr.mxu1 %v1811_v52  ;;  %4386 = vmatpush3.msra.mxu0 %v1961_v15 }
 0x428   :  { %4354 = vmatpush3.msra.mxu1 %v1811_v52  ;;  %4387 = vmatprep.subr.mxu0 %v1960_v17 }
 0x429   :  { %4355 = vmatprep.subr.mxu1 %v1810_v53  ;;  %4388 = vmatpush3.msra.mxu0 %v1960_v17 }
 0x42a   :  { %4356 = vmatpush3.msra.mxu1 %v1810_v53  ;;  %4389 = vmatprep.subr.mxu0 %v1959_v19 }
 0x42b   :  { %4358 = vmatmul.mubr.f32.vlgmr.msra.gmra.mxu1 %v1589_v30  ;;  %4401 = vmatprep.subr.mxu1 %v2073_v55 }
 0x42c   :  { %4360 = vmatprep.mubr.f32.mxu1 %v1590_v32  ;;  %4402 = vmatpush3.msra.mxu1 %v2073_v55  ;;  %v3475_v55 = vld [vmem:[%s6122_s15] ss:$0 sm:$0xff] }
 0x42d   :  { %4403 = vmatprep.subr.mxu1 %v2072_v57  ;;  %4390 = vmatpush3.msra.mxu0 %v1959_v19 }
 0x42e   :  { %4404 = vmatpush3.msra.mxu1 %v2072_v57  ;;  %4391 = vmatprep.subr.mxu0 %v1958_v22 }
 0x42f   :  { %4361 = vmatmul.mubr.f32.gmra.mxu1 %v1591_v42  ;;  %4405 = vmatprep.subr.mxu1 %v2071_v59 }
 0x430   :  { %4406 = vmatpush3.msra.mxu1 %v2071_v59  ;;  %4392 = vmatpush3.msra.mxu0 %v1958_v22 }
 0x431   :  { %4407 = vmatprep.subr.mxu1 %v2070_v62  ;;  %4393 = vmatprep.subr.mxu0 %v1957_v24 }
 0x432   :  { %4408 = vmatpush3.msra.mxu1 %v2070_v62  ;;  %4394 = vmatpush3.msra.mxu0 %v1957_v24 }
 0x433   :  { %4409 = vmatprep.subr.mxu1 %v2069_v1  ;;  %4439 = vmatprep.subr.mxu0 %v5755_v26 }
 0x434   :  { %4410 = vmatpush3.msra.mxu1 %v2069_v1 }
 0x435   :  { %4411 = vmatprep.subr.mxu1 %v2068_v3 }
 0x436   :  { %4412 = vmatpush3.msra.mxu1 %v2068_v3 }
 0x437   :  { %4413 = vmatprep.subr.mxu1 %v2067_v5 }
 0x438   :  { %4414 = vmatpush3.msra.mxu1 %v2067_v5 }
 0x439   :  { %4415 = vmatprep.subr.mxu1 %v2066_v7 }
 0x43a   :  { %4416 = vmatpush3.msra.mxu1 %v2066_v7 }
 0x43b   :  { %4417 = vmatprep.subr.mxu1 %v2065_v9 }
 0x43c   :  { %4418 = vmatpush3.msra.mxu1 %v2065_v9 }
 0x43d   :  { %4419 = vmatprep.subr.mxu1 %v2064_v11 }
 0x43e   :  { %4420 = vmatpush3.msra.mxu1 %v2064_v11 }
 0x43f   :  { %4421 = vmatprep.subr.mxu1 %v2063_v14 }
 0x440   :  { %4422 = vmatpush3.msra.mxu1 %v2063_v14 }
 0x441   :  { %4423 = vmatprep.subr.mxu1 %v2062_v16 }
 0x442   :  { %4424 = vmatpush3.msra.mxu1 %v2062_v16 }
 0x443   :  { %4425 = vmatprep.subr.mxu1 %v2061_v18 }
 0x444   :  { %4426 = vmatpush3.msra.mxu1 %v2061_v18 }
 0x445   :  { %4427 = vmatprep.subr.mxu1 %v2060_v20 }
 0x446   :  { %4428 = vmatpush3.msra.mxu1 %v2060_v20 }
 0x447   :  { %4429 = vmatprep.subr.mxu1 %v2059_v23 }
 0x448   :  { %4430 = vmatpush3.msra.mxu1 %v2059_v23 }
 0x449   :  { %4431 = vmatprep.subr.mxu1 %v2058_v25 }
 0x44a   :  { %4432 = vmatpush3.msra.mxu1 %v2058_v25 }
 0x4cb   :  { %v4283_v27 = vpop.f32.mrf.mxu1  ;;  %v4321_v31 = vpop.f32.mrf.mxu0 }
 0x4cc   :  { %v1694_v43 = vrot.slane %v4283_v27, 7 }
 0x4cd   :  { %v1674_v28 = vpop.f32.mrf.mxu1  ;;  %v1787_v40 = vpop.f32.mrf.mxu0 }
 0x4ce   :  { %v1693_v34 = vrot.slane %v1674_v28, 7 }
 0x4cf   :  { %v4286_v29 = vpop.f32.mrf.mxu1 }
 0x4d0   :  { %v1696_v30 = vrot.slane %v4286_v29, 7  ;;  %v4324_v50 = vpop.f32.mrf.mxu0  ;;  %v1699_v57 = vsel %vm693_vm0, %v1693_v34, %v1694_v43 }
 0x4d1   :  { %v1684_v32 = vpop.f32.mrf.mxu1  ;;  %v1807_v6 = vadd.f32 %v4321_v31, %v1699_v57  ;;  %v2187_v31 = vld [vmem:[#allocation22 + $0x60] sm:$0xff]  ;;  %v2441_v57 = vld [vmem:[#allocation25 + $0x50] sm:$0xff] }
 0x4d2   :  { %v1700_v36 = vsel %vm693_vm0, %v1696_v30, %v1693_v34  ;;  %v1695_v42 = vrot.slane %v1684_v32, 7  ;;  %v1797_v62 = vpop.f32.mrf.mxu0  ;;  %v2184_v32 = vld [vmem:[#allocation22 + $0x48] sm:$0xff]  ;;  %v2182_v34 = vld [vmem:[#allocation22 + $0x38] sm:$0xff] }
 0x4d3   :  { %v1701_v39 = vsel %vm5623_vm1, %v1700_v36, 0.0  ;;  %v2181_v36 = vld [vmem:[#allocation22 + $0x30] sm:$0xff] }
 0x4d4   :  { %v1698_v35 = vsel %vm693_vm0, %v1694_v43, %v1695_v42  ;;  %v1806_v60 = vadd.f32 %v1787_v40, %v1701_v39  ;;  %v1697_v38 = vsel %vm693_vm0, %v1695_v42, %v1696_v30  ;;  %v2189_v30 = vld [vmem:[#allocation22 + $0x70] sm:$0xff]  ;;  %v2180_v42 = vld [vmem:[#allocation22 + $0x28] sm:$0xff]  ;;  %v2179_v40 = vld [vmem:[#allocation22 + $0x20] sm:$0xff] }
 0x4d5   :  { %v1703_v53 = vsel %vm5635_vm3, %v1698_v35, 0.0  ;;  %v1809_v61 = vadd.f32 %v4324_v50, %v1697_v38  ;;  %v2178_v43 = vld [vmem:[#allocation22 + $0x18] sm:$0xff]  ;;  %v2176_v39 = vld [vmem:[#allocation22 + $0x8] sm:$0xff]  ;;  %v2175_v35 = vld [vmem:[#allocation22] sm:$0xff] }
 0x4d6   :  { %v1808_v3 = vadd.f32 %v1797_v62, %v1703_v53  ;;  %v2446_v50 = vld [vmem:[#allocation25 + $0x78] sm:$0xff]  ;;  %v2444_v38 = vld [vmem:[#allocation25 + $0x68] sm:$0xff]  ;;  %v2443_v53 = vld [vmem:[#allocation25 + $0x60] sm:$0xff] }
 0x4d7   :  { %v2439_v62 = vld [vmem:[#allocation25 + $0x40] sm:$0xff] }
 0x4eb   :  { %v4359_v44 = vpop.f32.mrf.mxu1 }
 0x4ec   :  { %v1912_v41 = vrot.slane %v4359_v44, 1  ;;  %v2177_v44 = vld [vmem:[#allocation22 + $0x10] sm:$0xff] }
 0x4ed   :  { %v1892_v49 = vpop.f32.mrf.mxu1 }
 0x4ee   :  { %v1911_v51 = vrot.slane %v1892_v49, 1  ;;  %v2333_v49 = vld [vmem:[#allocation24 + $0x78] sm:$0xff] }
 0x4ef   :  { %v4362_v52 = vpop.f32.mrf.mxu1  ;;  %4477 = vmatprep.subr.mxu1 %v2333_v49 }
 0x4f0   :  { %v1917_v54 = vsel %vm819_vm2, %v1911_v51, %v1912_v41  ;;  %v1914_v37 = vrot.slane %v4362_v52, 1  ;;  %v2330_v52 = vld [vmem:[#allocation24 + $0x60] sm:$0xff] }
 0x4f1   :  { %v1923_v58 = vadd.f32 %v1917_v54, %v1806_v60  ;;  %v1902_v59 = vpop.f32.mrf.mxu1  ;;  %v2331_v60 = vld [vmem:[#allocation24 + $0x68] sm:$0xff]  ;;  %v2329_v54 = vld [vmem:[#allocation24 + $0x58] sm:$0xff] }
 0x4f2   :  { %v1918_v63 = vsel %vm819_vm2, %v1914_v37, %v1911_v51  ;;  %v1913_v1 = vrot.slane %v1902_v59, 1  ;;  %v2445_v51 = vld [vmem:[#allocation25 + $0x70] sm:$0xff]  ;;  %v2440_v59 = vld [vmem:[#allocation25 + $0x48] sm:$0xff] }
 0x4f3   :  { %v1934_v4 = vmul.f32 %v3475_v55, %v1923_v58  ;;  %v1922_v5 = vsel %vm5647_vm4, %v1918_v63, 0.0  ;;  %v2327_v58 = vld [vmem:[#allocation24 + $0x48] sm:$0xff]  ;;  %v2325_v63 = vld [vmem:[#allocation24 + $0x38] sm:$0xff] }
 0x4f4   :  { %v1926_v7 = vadd.f32 %v1922_v5, %v1809_v61  ;;  %v1915_v8 = vsel %vm819_vm2, %v1913_v1, %v1914_v37  ;;  %v1916_v9 = vsel %vm819_vm2, %v1912_v41, %v1913_v1  ;;  %v2332_v41 = vld [vmem:[#allocation24 + $0x70] sm:$0xff]  ;;  %v2326_v61 = vld [vmem:[#allocation24 + $0x40] sm:$0xff]  ;;  %v2438_v1 = vld [vmem:[#allocation25 + $0x38] sm:$0xff] }
 0x4f5   :  { %v1920_v10 = vsel %vm5656_vm5, %v1916_v9, 0.0  ;;  %v1925_v11 = vadd.f32 %v1915_v8, %v1808_v3  ;;  %v1945_v12 = vadd.f32 %v3476_v2, %v1934_v4  ;;  %v2328_v37 = vld [vmem:[#allocation24 + $0x50] sm:$0xff]  ;;  %v2323_v4 = vld [vmem:[#allocation24 + $0x28] sm:$0xff]  ;;  %v2321_v8 = vld [vmem:[#allocation24 + $0x18] sm:$0xff] }
 0x4f6   :  { %v1937_v14 = vmul.f32 %v3475_v55, %v1926_v7  ;;  %v1924_v15 = vadd.f32 %v1920_v10, %v1807_v6  ;;  %v2437_v3 = vld [vmem:[#allocation25 + $0x30] sm:$0xff]  ;;  %v2436_v5 = vld [vmem:[#allocation25 + $0x28] sm:$0xff]  ;;  %v2322_v6 = vld [vmem:[#allocation24 + $0x20] sm:$0xff] }
 0x4f7   :  { %v1936_v16 = vmul.f32 %v3475_v55, %v1925_v11  ;;  %v1949_v17 = vmax.f32 %v1945_v12, 0.0  ;;  %v2435_v7 = vld [vmem:[#allocation25 + $0x20] sm:$0xff]  ;;  %v2434_v9 = vld [vmem:[#allocation25 + $0x18] sm:$0xff]  ;;  %v2320_v10 = vld [vmem:[#allocation24 + $0x10] sm:$0xff] }
 0x4f8   :  { %v1935_v18 = vmul.f32 %v3475_v55, %v1924_v15  ;;  %v1948_v23 = vadd.f32 %v3476_v2, %v1937_v14  ;;  %v2442_v55 = vld [vmem:[#allocation25 + $0x58] sm:$0xff]  ;;  %v2433_v11 = vld [vmem:[#allocation25 + $0x10] sm:$0xff]  ;;  %v2319_v12 = vld [vmem:[#allocation24 + $0x8] sm:$0xff] }
 0x4f9   :  { %v5785_v19 = vadd.f32 %v1949_v17, %v5701_v33  ;;  %v1947_v20 = vadd.f32 %v3476_v2, %v1936_v16  ;;  %v2188_v33 = vld [vmem:[#allocation22 + $0x68] sm:$0xff]  ;;  %v2318_v15 = vld [vmem:[#allocation24] sm:$0xff]  ;;  %v5810_v17 = vld [vmem:[%s6124_s18 + $0x78] sm:$0xff] }
 0x4fa   :  { %v1946_v22 = vadd.f32 %v3476_v2, %v1935_v18  ;;  %v1952_v28 = vmax.f32 %v1948_v23, 0.0  ;;  %v2324_v2 = vld [vmem:[#allocation24 + $0x30] sm:$0xff]  ;;  %v2432_v14 = vld [vmem:[#allocation25 + $0x8] sm:$0xff]  ;;  %v2431_v16 = vld [vmem:[#allocation25] sm:$0xff] }
 0x4fb   :  { %4395 = vmatprep.mubr.f32.mxu0 %v5785_v19  ;;  %4433 = vmatprep.mubr.f32.mxu1 %v5785_v19  ;;  %v1951_v24 = vmax.f32 %v1947_v20, 0.0 }
 0x4fc   :  { %v1950_v25 = vmax.f32 %v1946_v22, 0.0 }
 0x4fd   :  { %v5793_v29 = vadd.f32 %v1951_v24, %v5709_v48  ;;  %v2186_v48 = vld [vmem:[#allocation22 + $0x58] sm:$0xff] }
 0x4fe   :  { %v5790_v27 = vadd.f32 %v1950_v25, %v5707_v45  ;;  %v5801_v45 = vadd.f32 %v1952_v28, %v5717_v47  ;;  %v2183_v47 = vld [vmem:[#allocation22 + $0x40] sm:$0xff] }
 0x500   :  { %4396 = vmatmul.mubr.f32.vlgmr.msra.gmra.mxu0 %v5790_v27  ;;  %4434 = vmatmul.mubr.f32.vlgmr.msra.gmra.mxu1 %v5790_v27 }
 0x501   :  { %4440 = vmatpush3.msra.mxu0 %v5755_v26  ;;  %4398 = vmatprep.mubr.f32.mxu0 %v5793_v29  ;;  %v2185_v26 = vld [vmem:[#allocation22 + $0x50] sm:$0xff] }
 0x502   :  { %4436 = vmatprep.mubr.f32.mxu1 %v5793_v29  ;;  %4441 = vmatprep.subr.mxu0 %v2189_v30 }
 0x503   :  { %4442 = vmatpush3.msra.mxu0 %v2189_v30  ;;  %4478 = vmatpush3.msra.mxu1 %v2333_v49 }
 0x504   :  { %4443 = vmatprep.subr.mxu0 %v2188_v33  ;;  %4399 = vmatmul.mubr.f32.gmra.mxu0 %v5801_v45 }
 0x505   :  { %4437 = vmatmul.mubr.f32.gmra.mxu1 %v5801_v45  ;;  %4444 = vmatpush3.msra.mxu0 %v2188_v33 }
 0x506   :  { %4445 = vmatprep.subr.mxu0 %v2187_v31  ;;  %4471 = vmatprep.mubr.f32.mxu0 %v5785_v19 }
 0x507   :  { %4446 = vmatpush3.msra.mxu0 %v2187_v31  ;;  %4479 = vmatprep.subr.mxu1 %v2332_v41 }
 0x508   :  { %4447 = vmatprep.subr.mxu0 %v2186_v48  ;;  %4480 = vmatpush3.msra.mxu1 %v2332_v41 }
 0x509   :  { %4448 = vmatpush3.msra.mxu0 %v2186_v48  ;;  %4481 = vmatprep.subr.mxu1 %v2331_v60 }
 0x50a   :  { %4449 = vmatprep.subr.mxu0 %v2185_v26  ;;  %4482 = vmatpush3.msra.mxu1 %v2331_v60 }
 0x50b   :  { %4450 = vmatpush3.msra.mxu0 %v2185_v26  ;;  %4483 = vmatprep.subr.mxu1 %v2330_v52 }
 0x50c   :  { %4451 = vmatprep.subr.mxu0 %v2184_v32  ;;  %4484 = vmatpush3.msra.mxu1 %v2330_v52 }
 0x50d   :  { %4452 = vmatpush3.msra.mxu0 %v2184_v32  ;;  %4485 = vmatprep.subr.mxu1 %v2329_v54 }
 0x50e   :  { %4453 = vmatprep.subr.mxu0 %v2183_v47  ;;  %4486 = vmatpush3.msra.mxu1 %v2329_v54 }
 0x50f   :  { %4454 = vmatpush3.msra.mxu0 %v2183_v47  ;;  %4487 = vmatprep.subr.mxu1 %v2328_v37 }
 0x510   :  { %4455 = vmatprep.subr.mxu0 %v2182_v34  ;;  %4488 = vmatpush3.msra.mxu1 %v2328_v37  ;;  %v3478_v37 = vld [vmem:[%s6126_s8] ss:$0 sm:$0xff] }
 0x511   :  { %4456 = vmatpush3.msra.mxu0 %v2182_v34  ;;  %4489 = vmatprep.subr.mxu1 %v2327_v58 }
 0x512   :  { %4457 = vmatprep.subr.mxu0 %v2181_v36  ;;  %4490 = vmatpush3.msra.mxu1 %v2327_v58 }
 0x513   :  { %4458 = vmatpush3.msra.mxu0 %v2181_v36  ;;  %4491 = vmatprep.subr.mxu1 %v2326_v61 }
 0x514   :  { %4459 = vmatprep.subr.mxu0 %v2180_v42  ;;  %4492 = vmatpush3.msra.mxu1 %v2326_v61 }
 0x515   :  { %4460 = vmatpush3.msra.mxu0 %v2180_v42  ;;  %4493 = vmatprep.subr.mxu1 %v2325_v63 }
 0x516   :  { %4461 = vmatprep.subr.mxu0 %v2179_v40  ;;  %4494 = vmatpush3.msra.mxu1 %v2325_v63 }
 0x517   :  { %4462 = vmatpush3.msra.mxu0 %v2179_v40  ;;  %4495 = vmatprep.subr.mxu1 %v2324_v2 }
 0x518   :  { %4463 = vmatprep.subr.mxu0 %v2178_v43  ;;  %4496 = vmatpush3.msra.mxu1 %v2324_v2 }
 0x519   :  { %4464 = vmatpush3.msra.mxu0 %v2178_v43  ;;  %4497 = vmatprep.subr.mxu1 %v2323_v4 }
 0x51a   :  { %4465 = vmatprep.subr.mxu0 %v2177_v44  ;;  %4498 = vmatpush3.msra.mxu1 %v2323_v4 }
 0x51b   :  { %4466 = vmatpush3.msra.mxu0 %v2177_v44  ;;  %4499 = vmatprep.subr.mxu1 %v2322_v6 }
 0x51c   :  { %4467 = vmatprep.subr.mxu0 %v2176_v39  ;;  %4500 = vmatpush3.msra.mxu1 %v2322_v6 }
 0x51d   :  { %4468 = vmatpush3.msra.mxu0 %v2176_v39  ;;  %4501 = vmatprep.subr.mxu1 %v2321_v8 }
 0x51e   :  { %4469 = vmatprep.subr.mxu0 %v2175_v35  ;;  %4502 = vmatpush3.msra.mxu1 %v2321_v8 }
 0x51f   :  { %4470 = vmatpush3.msra.mxu0 %v2175_v35  ;;  %4503 = vmatprep.subr.mxu1 %v2320_v10 }
 0x520   :  { %4472 = vmatmul.mubr.f32.vlgmr.msra.gmra.mxu0 %v5790_v27  ;;  %4515 = vmatprep.subr.mxu0 %v2446_v50 }
 0x521   :  { %4474 = vmatprep.mubr.f32.mxu0 %v5793_v29  ;;  %4516 = vmatpush3.msra.mxu0 %v2446_v50 }
 0x522   :  { %4517 = vmatprep.subr.mxu0 %v2445_v51  ;;  %4504 = vmatpush3.msra.mxu1 %v2320_v10 }
 0x523   :  { %4518 = vmatpush3.msra.mxu0 %v2445_v51  ;;  %4505 = vmatprep.subr.mxu1 %v2319_v12  ;;  %v3477_v51 = vld [vmem:[%s6125_s29] ss:$0 sm:$0xff] }
 0x524   :  { %4475 = vmatmul.mubr.f32.gmra.mxu0 %v5801_v45  ;;  %4519 = vmatprep.subr.mxu0 %v2444_v38 }
 0x525   :  { %4520 = vmatpush3.msra.mxu0 %v2444_v38  ;;  %4506 = vmatpush3.msra.mxu1 %v2319_v12 }
 0x526   :  { %4521 = vmatprep.subr.mxu0 %v2443_v53  ;;  %4507 = vmatprep.subr.mxu1 %v2318_v15 }
 0x527   :  { %4522 = vmatpush3.msra.mxu0 %v2443_v53  ;;  %4508 = vmatpush3.msra.mxu1 %v2318_v15 }
 0x528   :  { %4523 = vmatprep.subr.mxu0 %v2442_v55  ;;  %4553 = vmatprep.subr.mxu1 %v5810_v17 }
 0x529   :  { %4524 = vmatpush3.msra.mxu0 %v2442_v55 }
 0x52a   :  { %4525 = vmatprep.subr.mxu0 %v2441_v57 }
 0x52b   :  { %4526 = vmatpush3.msra.mxu0 %v2441_v57 }
 0x52c   :  { %4527 = vmatprep.subr.mxu0 %v2440_v59 }
 0x52d   :  { %4528 = vmatpush3.msra.mxu0 %v2440_v59 }
 0x52e   :  { %4529 = vmatprep.subr.mxu0 %v2439_v62 }
 0x52f   :  { %4530 = vmatpush3.msra.mxu0 %v2439_v62 }
 0x530   :  { %4531 = vmatprep.subr.mxu0 %v2438_v1 }
 0x531   :  { %4532 = vmatpush3.msra.mxu0 %v2438_v1 }
 0x532   :  { %4533 = vmatprep.subr.mxu0 %v2437_v3 }
 0x533   :  { %4534 = vmatpush3.msra.mxu0 %v2437_v3 }
 0x534   :  { %4535 = vmatprep.subr.mxu0 %v2436_v5 }
 0x535   :  { %4536 = vmatpush3.msra.mxu0 %v2436_v5 }
 0x536   :  { %4537 = vmatprep.subr.mxu0 %v2435_v7 }
 0x537   :  { %4538 = vmatpush3.msra.mxu0 %v2435_v7 }
 0x538   :  { %4539 = vmatprep.subr.mxu0 %v2434_v9 }
 0x539   :  { %4540 = vmatpush3.msra.mxu0 %v2434_v9 }
 0x53a   :  { %4541 = vmatprep.subr.mxu0 %v2433_v11 }
 0x53b   :  { %4542 = vmatpush3.msra.mxu0 %v2433_v11 }
 0x53c   :  { %4543 = vmatprep.subr.mxu0 %v2432_v14 }
 0x53d   :  { %4544 = vmatpush3.msra.mxu0 %v2432_v14 }
 0x53e   :  { %4545 = vmatprep.subr.mxu0 %v2431_v16 }
 0x53f   :  { %4546 = vmatpush3.msra.mxu0 %v2431_v16  ;;  %v2550_v16 = vld [vmem:[%s6124_s18 + $0x70] sm:$0xff] }
 0x5c0   :  { %v4435_v18 = vpop.f32.mrf.mxu1  ;;  %v4397_v20 = vpop.f32.mrf.mxu0 }
 0x5c1   :  { %v2160_v32 = vrot.slane %v4435_v18, 7  ;;  %v2549_v18 = vld [vmem:[%s6124_s18 + $0x68] sm:$0xff] }
 0x5c2   :  { %v2140_v22 = vpop.f32.mrf.mxu1  ;;  %v2039_v23 = vpop.f32.mrf.mxu0 }
 0x5c3   :  { %v2159_v33 = vrot.slane %v2140_v22, 7  ;;  %v2548_v22 = vld [vmem:[%s6124_s18 + $0x60] sm:$0xff] }
 0x5c4   :  { %v4400_v25 = vpop.f32.mrf.mxu0 }
 0x5c5   :  { %v4438_v24 = vpop.f32.mrf.mxu1  ;;  %v2165_v60 = vsel %vm693_vm0, %v2159_v33, %v2160_v32 }
 0x5c6   :  { %v2162_v28 = vrot.slane %v4438_v24, 7  ;;  %v2049_v48 = vpop.f32.mrf.mxu0  ;;  %v2172_v61 = vadd.f32 %v4397_v20, %v2165_v60  ;;  %v2545_v24 = vld [vmem:[%s6124_s18 + $0x48] sm:$0xff] }
 0x5c7   :  { %v2150_v30 = vpop.f32.mrf.mxu1  ;;  %v2692_v60 = vld [vmem:[%s6127_s22 + $0x48] sm:$0xff] }
 0x5c8   :  { %v2166_v31 = vsel %vm693_vm0, %v2162_v28, %v2159_v33  ;;  %v2161_v26 = vrot.slane %v2150_v30, 7  ;;  %v2542_v30 = vld [vmem:[%s6124_s18 + $0x30] sm:$0xff]  ;;  %v2541_v33 = vld [vmem:[%s6124_s18 + $0x28] sm:$0xff] }
 0x5c9   :  { %v2167_v34 = vsel %vm5623_vm1, %v2166_v31, 0.0  ;;  %v2540_v31 = vld [vmem:[%s6124_s18 + $0x20] sm:$0xff] }
 0x5ca   :  { %v2164_v36 = vsel %vm693_vm0, %v2160_v32, %v2161_v26  ;;  %v2171_v44 = vadd.f32 %v2167_v34, %v2039_v23  ;;  %v2163_v39 = vsel %vm693_vm0, %v2161_v26, %v2162_v28  ;;  %v2547_v23 = vld [vmem:[%s6124_s18 + $0x58] sm:$0xff]  ;;  %v2538_v26 = vld [vmem:[%s6124_s18 + $0x10] sm:$0xff]  ;;  %v2537_v32 = vld [vmem:[%s6124_s18 + $0x8] sm:$0xff] }
 0x5cb   :  { %v2169_v49 = vsel %vm5635_vm3, %v2164_v36, 0.0  ;;  %v2174_v53 = vadd.f32 %v4400_v25, %v2163_v39  ;;  %v2544_v25 = vld [vmem:[%s6124_s18 + $0x40] sm:$0xff]  ;;  %v2543_v28 = vld [vmem:[%s6124_s18 + $0x38] sm:$0xff] }
 0x5cc   :  { %v2173_v57 = vadd.f32 %v2169_v49, %v2049_v48  ;;  %v2539_v48 = vld [vmem:[%s6124_s18 + $0x18] sm:$0xff]  ;;  %v2695_v39 = vld [vmem:[%s6127_s22 + $0x60] sm:$0xff] }
 0x5cd   :  { %v2698_v34 = vld [vmem:[%s6127_s22 + $0x78] sm:$0xff] }
 0x5ce   :  { %v2799_v36 = vld [vmem:[%s6128_s30 + $0x78] sm:$0xff]  ;;  %4591 = vmatprep.subr.mxu0 %v2698_v34 }
 0x5cf   :  { %v2694_v49 = vld [vmem:[%s6127_s22 + $0x58] sm:$0xff] }
 0x5e0   :  { %v4473_v47 = vpop.f32.mrf.mxu0 }
 0x5e1   :  { %v2277_v40 = vrot.slane %v4473_v47, 1  ;;  %v2536_v47 = vld [vmem:[%s6124_s18] sm:$0xff] }
 0x5e2   :  { %v2257_v42 = vpop.f32.mrf.mxu0 }
 0x5e3   :  { %v2276_v43 = vrot.slane %v2257_v42, 1  ;;  %v2697_v42 = vld [vmem:[%s6127_s22 + $0x70] sm:$0xff] }
 0x5e4   :  { %v4476_v35 = vpop.f32.mrf.mxu0 }
 0x5e5   :  { %v2282_v50 = vsel %vm819_vm2, %v2276_v43, %v2277_v40  ;;  %v2279_v41 = vrot.slane %v4476_v35, 1  ;;  %v2796_v35 = vld [vmem:[%s6128_s30 + $0x60] sm:$0xff] }
 0x5e6   :  { %v2288_v38 = vadd.f32 %v2282_v50, %v2171_v44  ;;  %v2267_v52 = vpop.f32.mrf.mxu0  ;;  %v2797_v44 = vld [vmem:[%s6128_s30 + $0x68] sm:$0xff]  ;;  %v2795_v50 = vld [vmem:[%s6128_s30 + $0x58] sm:$0xff] }
 0x5e7   :  { %v2283_v54 = vsel %vm819_vm2, %v2279_v41, %v2276_v43  ;;  %v2278_v55 = vrot.slane %v2267_v52, 1  ;;  %v2696_v43 = vld [vmem:[%s6127_s22 + $0x68] sm:$0xff]  ;;  %v2691_v52 = vld [vmem:[%s6127_s22 + $0x40] sm:$0xff] }
 0x5e8   :  { %v2287_v58 = vsel %vm5647_vm4, %v2283_v54, 0.0  ;;  %v2299_v59 = vmul.f32 %v3477_v51, %v2288_v38  ;;  %v2793_v38 = vld [vmem:[%s6128_s30 + $0x48] sm:$0xff]  ;;  %v2690_v54 = vld [vmem:[%s6127_s22 + $0x38] sm:$0xff] }
 0x5e9   :  { %v2291_v62 = vadd.f32 %v2287_v58, %v2174_v53  ;;  %v2280_v63 = vsel %vm819_vm2, %v2278_v55, %v2279_v41  ;;  %v2281_v1 = vsel %vm819_vm2, %v2277_v40, %v2278_v55  ;;  %v2798_v40 = vld [vmem:[%s6128_s30 + $0x70] sm:$0xff]  ;;  %v2792_v53 = vld [vmem:[%s6128_s30 + $0x40] sm:$0xff]  ;;  %v2791_v55 = vld [vmem:[%s6128_s30 + $0x38] sm:$0xff] }
 0x5ea   :  { %v2285_v2 = vsel %vm5656_vm5, %v2281_v1, 0.0  ;;  %v2290_v3 = vadd.f32 %v2280_v63, %v2173_v57  ;;  %v2310_v4 = vadd.f32 %v3478_v37, %v2299_v59  ;;  %v2693_v41 = vld [vmem:[%s6127_s22 + $0x50] sm:$0xff]  ;;  %v2688_v58 = vld [vmem:[%s6127_s22 + $0x28] sm:$0xff]  ;;  %v2686_v63 = vld [vmem:[%s6127_s22 + $0x18] sm:$0xff] }
 0x5eb   :  { %v2289_v5 = vadd.f32 %v2285_v2, %v2172_v61  ;;  %v2302_v9 = vmul.f32 %v3477_v51, %v2291_v62  ;;  %v2790_v57 = vld [vmem:[%s6128_s30 + $0x30] sm:$0xff]  ;;  %v2789_v59 = vld [vmem:[%s6128_s30 + $0x28] sm:$0xff]  ;;  %v2687_v61 = vld [vmem:[%s6127_s22 + $0x20] sm:$0xff] }
 0x5ec   :  { %v2314_v6 = vmax.f32 %v2310_v4, 0.0  ;;  %v2301_v7 = vmul.f32 %v3477_v51, %v2290_v3  ;;  %v2788_v62 = vld [vmem:[%s6128_s30 + $0x20] sm:$0xff]  ;;  %v2787_v1 = vld [vmem:[%s6128_s30 + $0x18] sm:$0xff]  ;;  %v2685_v2 = vld [vmem:[%s6127_s22 + $0x10] sm:$0xff] }
 0x5ed   :  { %v2300_v8 = vmul.f32 %v3477_v51, %v2289_v5  ;;  %v2313_v14 = vadd.f32 %v3478_v37, %v2302_v9  ;;  %v2794_v51 = vld [vmem:[%s6128_s30 + $0x50] sm:$0xff]  ;;  %v2684_v4 = vld [vmem:[%s6127_s22 + $0x8] sm:$0xff] }
 0x5ee   :  { %4509 = vmatprep.mubr.f32.mxu1 %v2314_v6  ;;  %4547 = vmatprep.mubr.f32.mxu0 %v2314_v6  ;;  %v2312_v10 = vadd.f32 %v3478_v37, %v2301_v7  ;;  %v2786_v3 = vld [vmem:[%s6128_s30 + $0x10] sm:$0xff]  ;;  %v2785_v5 = vld [vmem:[%s6128_s30 + $0x8] sm:$0xff]  ;;  %v2784_v7 = vld [vmem:[%s6128_s30] sm:$0xff] }
 0x5ef   :  { %v2311_v11 = vadd.f32 %v3478_v37, %v2300_v8  ;;  %v2317_v20 = vmax.f32 %v2313_v14, 0.0  ;;  %v2689_v37 = vld [vmem:[%s6127_s22 + $0x30] sm:$0xff]  ;;  %v5888_v8 = vld [vmem:[%s6129_s12 + $0x78] sm:$0xff] }
 0x5f0   :  { %v2316_v15 = vmax.f32 %v2312_v10, 0.0 }
 0x5f1   :  { %v2315_v12 = vmax.f32 %v2311_v11, 0.0 }
 0x5f3   :  { %4510 = vmatmul.mubr.f32.vlgmr.msra.gmra.mxu1 %v2315_v12  ;;  %4548 = vmatmul.mubr.f32.vlgmr.msra.gmra.mxu0 %v2315_v12 }
 0x5f4   :  { %4554 = vmatpush3.msra.mxu1 %v5810_v17  ;;  %4512 = vmatprep.mubr.f32.mxu1 %v2316_v15  ;;  %v2546_v17 = vld [vmem:[%s6124_s18 + $0x50] sm:$0xff] }
 0x5f5   :  { %4550 = vmatprep.mubr.f32.mxu0 %v2316_v15  ;;  %4555 = vmatprep.subr.mxu1 %v2550_v16 }
 0x5f6   :  { %4556 = vmatpush3.msra.mxu1 %v2550_v16  ;;  %4592 = vmatpush3.msra.mxu0 %v2698_v34 }
 0x5f7   :  { %4557 = vmatprep.subr.mxu1 %v2549_v18  ;;  %4513 = vmatmul.mubr.f32.gmra.mxu1 %v2317_v20 }
 0x5f8   :  { %4551 = vmatmul.mubr.f32.gmra.mxu0 %v2317_v20  ;;  %4558 = vmatpush3.msra.mxu1 %v2549_v18 }
 0x5f9   :  { %4559 = vmatprep.subr.mxu1 %v2548_v22  ;;  %4585 = vmatprep.mubr.f32.mxu1 %v2314_v6  ;;  %v2683_v6 = vld [vmem:[%s6127_s22] sm:$0xff] }
 0x5fa   :  { %4560 = vmatpush3.msra.mxu1 %v2548_v22  ;;  %4593 = vmatprep.subr.mxu0 %v2697_v42 }
 0x5fb   :  { %4561 = vmatprep.subr.mxu1 %v2547_v23  ;;  %4594 = vmatpush3.msra.mxu0 %v2697_v42 }
 0x5fc   :  { %4562 = vmatpush3.msra.mxu1 %v2547_v23  ;;  %4595 = vmatprep.subr.mxu0 %v2696_v43 }
 0x5fd   :  { %4563 = vmatprep.subr.mxu1 %v2546_v17  ;;  %4596 = vmatpush3.msra.mxu0 %v2696_v43 }
 0x5fe   :  { %4564 = vmatpush3.msra.mxu1 %v2546_v17  ;;  %4597 = vmatprep.subr.mxu0 %v2695_v39 }
 0x5ff   :  { %4565 = vmatprep.subr.mxu1 %v2545_v24  ;;  %4598 = vmatpush3.msra.mxu0 %v2695_v39 }
 0x600   :  { %4566 = vmatpush3.msra.mxu1 %v2545_v24  ;;  %4599 = vmatprep.subr.mxu0 %v2694_v49 }
 0x601   :  { %4567 = vmatprep.subr.mxu1 %v2544_v25  ;;  %4600 = vmatpush3.msra.mxu0 %v2694_v49 }
 0x602   :  { %4568 = vmatpush3.msra.mxu1 %v2544_v25  ;;  %4601 = vmatprep.subr.mxu0 %v2693_v41 }
 0x603   :  { %4569 = vmatprep.subr.mxu1 %v2543_v28  ;;  %4602 = vmatpush3.msra.mxu0 %v2693_v41  ;;  %v3480_v41 = vld [vmem:[%s6131_s6] ss:$0 sm:$0xff] }
 0x604   :  { %4570 = vmatpush3.msra.mxu1 %v2543_v28  ;;  %4603 = vmatprep.subr.mxu0 %v2692_v60 }
 0x605   :  { %4571 = vmatprep.subr.mxu1 %v2542_v30  ;;  %4604 = vmatpush3.msra.mxu0 %v2692_v60 }
 0x606   :  { %4572 = vmatpush3.msra.mxu1 %v2542_v30  ;;  %4605 = vmatprep.subr.mxu0 %v2691_v52 }
 0x607   :  { %4573 = vmatprep.subr.mxu1 %v2541_v33  ;;  %4606 = vmatpush3.msra.mxu0 %v2691_v52 }
 0x608   :  { %4574 = vmatpush3.msra.mxu1 %v2541_v33  ;;  %4607 = vmatprep.subr.mxu0 %v2690_v54 }
 0x609   :  { %4575 = vmatprep.subr.mxu1 %v2540_v31  ;;  %4608 = vmatpush3.msra.mxu0 %v2690_v54 }
 0x60a   :  { %4576 = vmatpush3.msra.mxu1 %v2540_v31  ;;  %4609 = vmatprep.subr.mxu0 %v2689_v37 }
 0x60b   :  { %4577 = vmatprep.subr.mxu1 %v2539_v48  ;;  %4610 = vmatpush3.msra.mxu0 %v2689_v37 }
 0x60c   :  { %4578 = vmatpush3.msra.mxu1 %v2539_v48  ;;  %4611 = vmatprep.subr.mxu0 %v2688_v58 }
 0x60d   :  { %4579 = vmatprep.subr.mxu1 %v2538_v26  ;;  %4612 = vmatpush3.msra.mxu0 %v2688_v58 }
 0x60e   :  { %4580 = vmatpush3.msra.mxu1 %v2538_v26  ;;  %4613 = vmatprep.subr.mxu0 %v2687_v61 }
 0x60f   :  { %4581 = vmatprep.subr.mxu1 %v2537_v32  ;;  %4614 = vmatpush3.msra.mxu0 %v2687_v61 }
 0x610   :  { %4582 = vmatpush3.msra.mxu1 %v2537_v32  ;;  %4615 = vmatprep.subr.mxu0 %v2686_v63 }
 0x611   :  { %4583 = vmatprep.subr.mxu1 %v2536_v47  ;;  %4616 = vmatpush3.msra.mxu0 %v2686_v63 }
 0x612   :  { %4584 = vmatpush3.msra.mxu1 %v2536_v47  ;;  %4617 = vmatprep.subr.mxu0 %v2685_v2 }
 0x613   :  { %4586 = vmatmul.mubr.f32.vlgmr.msra.gmra.mxu1 %v2315_v12  ;;  %4629 = vmatprep.subr.mxu1 %v2799_v36 }
 0x614   :  { %4588 = vmatprep.mubr.f32.mxu1 %v2316_v15  ;;  %4630 = vmatpush3.msra.mxu1 %v2799_v36  ;;  %v3479_v36 = vld [vmem:[%s6130_s23] ss:$0 sm:$0xff] }
 0x615   :  { %4631 = vmatprep.subr.mxu1 %v2798_v40  ;;  %4618 = vmatpush3.msra.mxu0 %v2685_v2 }
 0x616   :  { %4632 = vmatpush3.msra.mxu1 %v2798_v40  ;;  %4619 = vmatprep.subr.mxu0 %v2684_v4 }
 0x617   :  { %4589 = vmatmul.mubr.f32.gmra.mxu1 %v2317_v20  ;;  %4633 = vmatprep.subr.mxu1 %v2797_v44 }
 0x618   :  { %4634 = vmatpush3.msra.mxu1 %v2797_v44  ;;  %4620 = vmatpush3.msra.mxu0 %v2684_v4 }
 0x619   :  { %4635 = vmatprep.subr.mxu1 %v2796_v35  ;;  %4621 = vmatprep.subr.mxu0 %v2683_v6 }
 0x61a   :  { %4636 = vmatpush3.msra.mxu1 %v2796_v35  ;;  %4622 = vmatpush3.msra.mxu0 %v2683_v6 }
 0x61b   :  { %4637 = vmatprep.subr.mxu1 %v2795_v50  ;;  %4667 = vmatprep.subr.mxu0 %v5888_v8 }
 0x61c   :  { %4638 = vmatpush3.msra.mxu1 %v2795_v50 }
 0x61d   :  { %4639 = vmatprep.subr.mxu1 %v2794_v51 }
 0x61e   :  { %4640 = vmatpush3.msra.mxu1 %v2794_v51 }
 0x61f   :  { %4641 = vmatprep.subr.mxu1 %v2793_v38 }
 0x620   :  { %4642 = vmatpush3.msra.mxu1 %v2793_v38 }
 0x621   :  { %4643 = vmatprep.subr.mxu1 %v2792_v53 }
 0x622   :  { %4644 = vmatpush3.msra.mxu1 %v2792_v53 }
 0x623   :  { %4645 = vmatprep.subr.mxu1 %v2791_v55 }
 0x624   :  { %4646 = vmatpush3.msra.mxu1 %v2791_v55 }
 0x625   :  { %4647 = vmatprep.subr.mxu1 %v2790_v57 }
 0x626   :  { %4648 = vmatpush3.msra.mxu1 %v2790_v57 }
 0x627   :  { %4649 = vmatprep.subr.mxu1 %v2789_v59 }
 0x628   :  { %4650 = vmatpush3.msra.mxu1 %v2789_v59 }
 0x629   :  { %4651 = vmatprep.subr.mxu1 %v2788_v62 }
 0x62a   :  { %4652 = vmatpush3.msra.mxu1 %v2788_v62 }
 0x62b   :  { %4653 = vmatprep.subr.mxu1 %v2787_v1 }
 0x62c   :  { %4654 = vmatpush3.msra.mxu1 %v2787_v1 }
 0x62d   :  { %4655 = vmatprep.subr.mxu1 %v2786_v3 }
 0x62e   :  { %4656 = vmatpush3.msra.mxu1 %v2786_v3 }
 0x62f   :  { %4657 = vmatprep.subr.mxu1 %v2785_v5 }
 0x630   :  { %4658 = vmatpush3.msra.mxu1 %v2785_v5 }
 0x631   :  { %4659 = vmatprep.subr.mxu1 %v2784_v7 }
 0x632   :  { %4660 = vmatpush3.msra.mxu1 %v2784_v7 }
 0x6b3   :  { %v4511_v9 = vpop.f32.mrf.mxu1  ;;  %v4549_v14 = vpop.f32.mrf.mxu0 }
 0x6b4   :  { %v2420_v23 = vrot.slane %v4511_v9, 7 }
 0x6b5   :  { %v2400_v10 = vpop.f32.mrf.mxu1  ;;  %v2513_v22 = vpop.f32.mrf.mxu0 }
 0x6b6   :  { %v2419_v16 = vrot.slane %v2400_v10, 7 }
 0x6b7   :  { %v4514_v11 = vpop.f32.mrf.mxu1 }
 0x6b8   :  { %v2422_v12 = vrot.slane %v4514_v11, 7  ;;  %v4552_v30 = vpop.f32.mrf.mxu0  ;;  %v2425_v40 = vsel %vm693_vm0, %v2419_v16, %v2420_v23 }
 0x6b9   :  { %v2410_v15 = vpop.f32.mrf.mxu1  ;;  %v2533_v52 = vadd.f32 %v4549_v14, %v2425_v40  ;;  %v2911_v14 = vld [vmem:[%s6129_s12 + $0x50] sm:$0xff] }
 0x6ba   :  { %v2426_v18 = vsel %vm693_vm0, %v2422_v12, %v2419_v16  ;;  %v2421_v20 = vrot.slane %v2410_v15, 7  ;;  %v2523_v35 = vpop.f32.mrf.mxu0  ;;  %v2909_v15 = vld [vmem:[%s6129_s12 + $0x40] sm:$0xff]  ;;  %v2908_v16 = vld [vmem:[%s6129_s12 + $0x38] sm:$0xff]  ;;  %v3167_v40 = vld [vmem:[%s6133_s28 + $0x50] sm:$0xff] }
 0x6bb   :  { %v2427_v24 = vsel %vm5623_vm1, %v2426_v18, 0.0  ;;  %v2907_v18 = vld [vmem:[%s6129_s12 + $0x30] sm:$0xff] }
 0x6bc   :  { %v2424_v25 = vsel %vm693_vm0, %v2420_v23, %v2421_v20  ;;  %v2532_v48 = vadd.f32 %v2513_v22, %v2427_v24  ;;  %v2423_v26 = vsel %vm693_vm0, %v2421_v20, %v2422_v12  ;;  %v2914_v12 = vld [vmem:[%s6129_s12 + $0x68] sm:$0xff]  ;;  %v2905_v22 = vld [vmem:[%s6129_s12 + $0x20] sm:$0xff]  ;;  %v2904_v23 = vld [vmem:[%s6129_s12 + $0x18] sm:$0xff] }
 0x6bd   :  { %v2429_v47 = vsel %vm5635_vm3, %v2424_v25, 0.0  ;;  %v2535_v39 = vadd.f32 %v4552_v30, %v2423_v26  ;;  %v2906_v20 = vld [vmem:[%s6129_s12 + $0x28] sm:$0xff]  ;;  %v2901_v25 = vld [vmem:[%s6129_s12] sm:$0xff]  ;;  %v3172_v30 = vld [vmem:[%s6133_s28 + $0x78] sm:$0xff] }
 0x6be   :  { %v2534_v51 = vadd.f32 %v2523_v35, %v2429_v47  ;;  %v2902_v24 = vld [vmem:[%s6129_s12 + $0x8] sm:$0xff]  ;;  %v3169_v47 = vld [vmem:[%s6133_s28 + $0x60] sm:$0xff] }
 0x6bf   :  { %v3170_v26 = vld [vmem:[%s6133_s28 + $0x68] sm:$0xff]  ;;  %v3165_v35 = vld [vmem:[%s6133_s28 + $0x40] sm:$0xff] }
 0x6d3   :  { %v4587_v17 = vpop.f32.mrf.mxu1 }
 0x6d4   :  { %v2638_v33 = vrot.slane %v4587_v17, 1  ;;  %v2903_v17 = vld [vmem:[%s6129_s12 + $0x10] sm:$0xff] }
 0x6d5   :  { %v2618_v28 = vpop.f32.mrf.mxu1 }
 0x6d6   :  { %v2637_v31 = vrot.slane %v2618_v28, 1  ;;  %v3059_v28 = vld [vmem:[%s6132_s4 + $0x78] sm:$0xff] }
 0x6d7   :  { %v4590_v32 = vpop.f32.mrf.mxu1  ;;  %4705 = vmatprep.subr.mxu1 %v3059_v28 }
 0x6d8   :  { %v2643_v34 = vsel %vm819_vm2, %v2637_v31, %v2638_v33  ;;  %v2640_v42 = vrot.slane %v4590_v32, 1  ;;  %v3056_v32 = vld [vmem:[%s6132_s4 + $0x60] sm:$0xff] }
 0x6d9   :  { %v2649_v43 = vadd.f32 %v2643_v34, %v2532_v48  ;;  %v2628_v44 = vpop.f32.mrf.mxu1  ;;  %v3057_v48 = vld [vmem:[%s6132_s4 + $0x68] sm:$0xff]  ;;  %v3055_v34 = vld [vmem:[%s6132_s4 + $0x58] sm:$0xff] }
 0x6da   :  { %v2644_v49 = vsel %vm819_vm2, %v2640_v42, %v2637_v31  ;;  %v2639_v50 = vrot.slane %v2628_v44, 1  ;;  %v3171_v31 = vld [vmem:[%s6133_s28 + $0x70] sm:$0xff]  ;;  %v3166_v44 = vld [vmem:[%s6133_s28 + $0x48] sm:$0xff] }
 0x6db   :  { %v2660_v60 = vmul.f32 %v3479_v36, %v2649_v43  ;;  %v2648_v38 = vsel %vm5647_vm4, %v2644_v49, 0.0  ;;  %v3053_v43 = vld [vmem:[%s6132_s4 + $0x48] sm:$0xff]  ;;  %v3051_v49 = vld [vmem:[%s6132_s4 + $0x38] sm:$0xff] }
 0x6dc   :  { %v2652_v53 = vadd.f32 %v2648_v38, %v2535_v39  ;;  %v2641_v54 = vsel %vm819_vm2, %v2639_v50, %v2640_v42  ;;  %v2642_v55 = vsel %vm819_vm2, %v2638_v33, %v2639_v50  ;;  %v3058_v33 = vld [vmem:[%s6132_s4 + $0x70] sm:$0xff]  ;;  %v3052_v39 = vld [vmem:[%s6132_s4 + $0x40] sm:$0xff]  ;;  %v3164_v50 = vld [vmem:[%s6133_s28 + $0x38] sm:$0xff] }
 0x6dd   :  { %v2646_v37 = vsel %vm5656_vm5, %v2642_v55, 0.0  ;;  %v2651_v57 = vadd.f32 %v2641_v54, %v2534_v51  ;;  %v2671_v58 = vadd.f32 %v3480_v41, %v2660_v60  ;;  %v3054_v42 = vld [vmem:[%s6132_s4 + $0x50] sm:$0xff]  ;;  %v3049_v60 = vld [vmem:[%s6132_s4 + $0x28] sm:$0xff]  ;;  %v3047_v54 = vld [vmem:[%s6132_s4 + $0x18] sm:$0xff] }
 0x6de   :  { %v2663_v59 = vmul.f32 %v3479_v36, %v2652_v53  ;;  %v2650_v61 = vadd.f32 %v2646_v37, %v2533_v52  ;;  %v3163_v51 = vld [vmem:[%s6133_s28 + $0x30] sm:$0xff]  ;;  %v3162_v38 = vld [vmem:[%s6133_s28 + $0x28] sm:$0xff]  ;;  %v3048_v52 = vld [vmem:[%s6132_s4 + $0x20] sm:$0xff] }
 0x6df   :  { %v2662_v62 = vmul.f32 %v3479_v36, %v2651_v57  ;;  %v2675_v63 = vmax.f32 %v2671_v58, 0.0  ;;  %v3161_v53 = vld [vmem:[%s6133_s28 + $0x20] sm:$0xff]  ;;  %v3160_v55 = vld [vmem:[%s6133_s28 + $0x18] sm:$0xff]  ;;  %v3046_v37 = vld [vmem:[%s6132_s4 + $0x10] sm:$0xff] }
 0x6e0   :  { %v2661_v1 = vmul.f32 %v3479_v36, %v2650_v61  ;;  %v2674_v5 = vadd.f32 %v3480_v41, %v2663_v59  ;;  %v3168_v36 = vld [vmem:[%s6133_s28 + $0x58] sm:$0xff]  ;;  %v3159_v57 = vld [vmem:[%s6133_s28 + $0x10] sm:$0xff]  ;;  %v3045_v58 = vld [vmem:[%s6132_s4 + $0x8] sm:$0xff] }
 0x6e1   :  { %v5918_v2 = vadd.f32 %v2675_v63, %v5785_v19  ;;  %v2673_v3 = vadd.f32 %v3480_v41, %v2662_v62  ;;  %v2915_v19 = vld [vmem:[%s6129_s12 + $0x70] sm:$0xff]  ;;  %v3158_v59 = vld [vmem:[%s6133_s28 + $0x8] sm:$0xff]  ;;  %v3044_v61 = vld [vmem:[%s6132_s4] sm:$0xff] }
 0x6e2   :  { %v2672_v4 = vadd.f32 %v3480_v41, %v2661_v1  ;;  %v2678_v10 = vmax.f32 %v2674_v5, 0.0  ;;  %v3050_v41 = vld [vmem:[%s6132_s4 + $0x30] sm:$0xff]  ;;  %v3157_v62 = vld [vmem:[%s6133_s28] sm:$0xff]  ;;  %v5990_v63 = vld [vmem:[%s5482_s5 + $0x78] sm:$0xff] }
 0x6e3   :  { %4623 = vmatprep.mubr.f32.mxu0 %v5918_v2  ;;  %4661 = vmatprep.mubr.f32.mxu1 %v5918_v2  ;;  %v2677_v6 = vmax.f32 %v2673_v3, 0.0 }
 0x6e4   :  { %v2676_v7 = vmax.f32 %v2672_v4, 0.0 }
 0x6e5   :  { %v5926_v11 = vadd.f32 %v2677_v6, %v5793_v29  ;;  %v2913_v29 = vld [vmem:[%s6129_s12 + $0x60] sm:$0xff] }
 0x6e6   :  { %v5923_v9 = vadd.f32 %v2676_v7, %v5790_v27  ;;  %v5936_v27 = vadd.f32 %v2678_v10, %v5801_v45  ;;  %v2910_v45 = vld [vmem:[%s6129_s12 + $0x48] sm:$0xff] }
 0x6e8   :  { %4624 = vmatmul.mubr.f32.vlgmr.msra.gmra.mxu0 %v5923_v9  ;;  %4662 = vmatmul.mubr.f32.vlgmr.msra.gmra.mxu1 %v5923_v9 }
 0x6e9   :  { %4668 = vmatpush3.msra.mxu0 %v5888_v8  ;;  %4626 = vmatprep.mubr.f32.mxu0 %v5926_v11  ;;  %v2912_v8 = vld [vmem:[%s6129_s12 + $0x58] sm:$0xff] }
 0x6ea   :  { %4664 = vmatprep.mubr.f32.mxu1 %v5926_v11  ;;  %4669 = vmatprep.subr.mxu0 %v2915_v19 }
 0x6eb   :  { %4670 = vmatpush3.msra.mxu0 %v2915_v19  ;;  %4706 = vmatpush3.msra.mxu1 %v3059_v28 }
 0x6ec   :  { %4671 = vmatprep.subr.mxu0 %v2914_v12  ;;  %4627 = vmatmul.mubr.f32.gmra.mxu0 %v5936_v27 }
 0x6ed   :  { %4665 = vmatmul.mubr.f32.gmra.mxu1 %v5936_v27  ;;  %4672 = vmatpush3.msra.mxu0 %v2914_v12 }
 0x6ee   :  { %4673 = vmatprep.subr.mxu0 %v2913_v29  ;;  %4699 = vmatprep.mubr.f32.mxu0 %v5918_v2 }
 0x6ef   :  { %4674 = vmatpush3.msra.mxu0 %v2913_v29  ;;  %4707 = vmatprep.subr.mxu1 %v3058_v33 }
 0x6f0   :  { %4675 = vmatprep.subr.mxu0 %v2912_v8  ;;  %4708 = vmatpush3.msra.mxu1 %v3058_v33 }
 0x6f1   :  { %4676 = vmatpush3.msra.mxu0 %v2912_v8  ;;  %4709 = vmatprep.subr.mxu1 %v3057_v48 }
 0x6f2   :  { %4677 = vmatprep.subr.mxu0 %v2911_v14  ;;  %4710 = vmatpush3.msra.mxu1 %v3057_v48 }
 0x6f3   :  { %4678 = vmatpush3.msra.mxu0 %v2911_v14  ;;  %4711 = vmatprep.subr.mxu1 %v3056_v32 }
 0x6f4   :  { %4679 = vmatprep.subr.mxu0 %v2910_v45  ;;  %4712 = vmatpush3.msra.mxu1 %v3056_v32 }
 0x6f5   :  { %4680 = vmatpush3.msra.mxu0 %v2910_v45  ;;  %4713 = vmatprep.subr.mxu1 %v3055_v34 }
 0x6f6   :  { %4681 = vmatprep.subr.mxu0 %v2909_v15  ;;  %4714 = vmatpush3.msra.mxu1 %v3055_v34 }
 0x6f7   :  { %4682 = vmatpush3.msra.mxu0 %v2909_v15  ;;  %4715 = vmatprep.subr.mxu1 %v3054_v42 }
 0x6f8   :  { %4683 = vmatprep.subr.mxu0 %v2908_v16  ;;  %4716 = vmatpush3.msra.mxu1 %v3054_v42  ;;  %v3482_v42 = vld [vmem:[%s6135_s2] ss:$0 sm:$0xff] }
 0x6f9   :  { %4684 = vmatpush3.msra.mxu0 %v2908_v16  ;;  %4717 = vmatprep.subr.mxu1 %v3053_v43 }
 0x6fa   :  { %4685 = vmatprep.subr.mxu0 %v2907_v18  ;;  %4718 = vmatpush3.msra.mxu1 %v3053_v43 }
 0x6fb   :  { %4686 = vmatpush3.msra.mxu0 %v2907_v18  ;;  %4719 = vmatprep.subr.mxu1 %v3052_v39 }
 0x6fc   :  { %4687 = vmatprep.subr.mxu0 %v2906_v20  ;;  %4720 = vmatpush3.msra.mxu1 %v3052_v39 }
 0x6fd   :  { %4688 = vmatpush3.msra.mxu0 %v2906_v20  ;;  %4721 = vmatprep.subr.mxu1 %v3051_v49 }
 0x6fe   :  { %4689 = vmatprep.subr.mxu0 %v2905_v22  ;;  %4722 = vmatpush3.msra.mxu1 %v3051_v49 }
 0x6ff   :  { %4690 = vmatpush3.msra.mxu0 %v2905_v22  ;;  %4723 = vmatprep.subr.mxu1 %v3050_v41 }
 0x700   :  { %4691 = vmatprep.subr.mxu0 %v2904_v23  ;;  %4724 = vmatpush3.msra.mxu1 %v3050_v41 }
 0x701   :  { %4692 = vmatpush3.msra.mxu0 %v2904_v23  ;;  %4725 = vmatprep.subr.mxu1 %v3049_v60 }
 0x702   :  { %4693 = vmatprep.subr.mxu0 %v2903_v17  ;;  %4726 = vmatpush3.msra.mxu1 %v3049_v60 }
 0x703   :  { %4694 = vmatpush3.msra.mxu0 %v2903_v17  ;;  %4727 = vmatprep.subr.mxu1 %v3048_v52 }
 0x704   :  { %4695 = vmatprep.subr.mxu0 %v2902_v24  ;;  %4728 = vmatpush3.msra.mxu1 %v3048_v52 }
 0x705   :  { %4696 = vmatpush3.msra.mxu0 %v2902_v24  ;;  %4729 = vmatprep.subr.mxu1 %v3047_v54 }
 0x706   :  { %4697 = vmatprep.subr.mxu0 %v2901_v25  ;;  %4730 = vmatpush3.msra.mxu1 %v3047_v54 }
 0x707   :  { %4698 = vmatpush3.msra.mxu0 %v2901_v25  ;;  %4731 = vmatprep.subr.mxu1 %v3046_v37 }
 0x708   :  { %4700 = vmatmul.mubr.f32.vlgmr.msra.gmra.mxu0 %v5923_v9  ;;  %4743 = vmatprep.subr.mxu0 %v3172_v30 }
 0x709   :  { %4702 = vmatprep.mubr.f32.mxu0 %v5926_v11  ;;  %4744 = vmatpush3.msra.mxu0 %v3172_v30 }
 0x70a   :  { %4745 = vmatprep.subr.mxu0 %v3171_v31  ;;  %4732 = vmatpush3.msra.mxu1 %v3046_v37 }
 0x70b   :  { %4746 = vmatpush3.msra.mxu0 %v3171_v31  ;;  %4733 = vmatprep.subr.mxu1 %v3045_v58  ;;  %v3481_v31 = vld [vmem:[%s6134_s1] ss:$0 sm:$0xff] }
 0x70c   :  { %4703 = vmatmul.mubr.f32.gmra.mxu0 %v5936_v27  ;;  %4747 = vmatprep.subr.mxu0 %v3170_v26 }
 0x70d   :  { %4748 = vmatpush3.msra.mxu0 %v3170_v26  ;;  %4734 = vmatpush3.msra.mxu1 %v3045_v58 }
 0x70e   :  { %4749 = vmatprep.subr.mxu0 %v3169_v47  ;;  %4735 = vmatprep.subr.mxu1 %v3044_v61 }
 0x70f   :  { %4750 = vmatpush3.msra.mxu0 %v3169_v47  ;;  %4736 = vmatpush3.msra.mxu1 %v3044_v61 }
 0x710   :  { %4751 = vmatprep.subr.mxu0 %v3168_v36  ;;  %4781 = vmatprep.subr.mxu1 %v5990_v63 }
 0x711   :  { %4752 = vmatpush3.msra.mxu0 %v3168_v36 }
 0x712   :  { %4753 = vmatprep.subr.mxu0 %v3167_v40 }
 0x713   :  { %4754 = vmatpush3.msra.mxu0 %v3167_v40 }
 0x714   :  { %4755 = vmatprep.subr.mxu0 %v3166_v44 }
 0x715   :  { %4756 = vmatpush3.msra.mxu0 %v3166_v44 }
 0x716   :  { %4757 = vmatprep.subr.mxu0 %v3165_v35 }
 0x717   :  { %4758 = vmatpush3.msra.mxu0 %v3165_v35 }
 0x718   :  { %4759 = vmatprep.subr.mxu0 %v3164_v50 }
 0x719   :  { %4760 = vmatpush3.msra.mxu0 %v3164_v50 }
 0x71a   :  { %4761 = vmatprep.subr.mxu0 %v3163_v51 }
 0x71b   :  { %4762 = vmatpush3.msra.mxu0 %v3163_v51 }
 0x71c   :  { %4763 = vmatprep.subr.mxu0 %v3162_v38 }
 0x71d   :  { %4764 = vmatpush3.msra.mxu0 %v3162_v38 }
 0x71e   :  { %4765 = vmatprep.subr.mxu0 %v3161_v53 }
 0x71f   :  { %4766 = vmatpush3.msra.mxu0 %v3161_v53 }
 0x720   :  { %4767 = vmatprep.subr.mxu0 %v3160_v55 }
 0x721   :  { %4768 = vmatpush3.msra.mxu0 %v3160_v55 }
 0x722   :  { %4769 = vmatprep.subr.mxu0 %v3159_v57 }
 0x723   :  { %4770 = vmatpush3.msra.mxu0 %v3159_v57 }
 0x724   :  { %4771 = vmatprep.subr.mxu0 %v3158_v59 }
 0x725   :  { %4772 = vmatpush3.msra.mxu0 %v3158_v59 }
 0x726   :  { %4773 = vmatprep.subr.mxu0 %v3157_v62 }
 0x727   :  { %4774 = vmatpush3.msra.mxu0 %v3157_v62  ;;  %v3276_v62 = vld [vmem:[%s5482_s5 + $0x70] sm:$0xff] }
 0x7a8   :  { %v4663_v1 = vpop.f32.mrf.mxu1  ;;  %v4625_v3 = vpop.f32.mrf.mxu0 }
 0x7a9   :  { %v2886_v45 = vrot.slane %v4663_v1, 7  ;;  %v3275_v1 = vld [vmem:[%s5482_s5 + $0x68] sm:$0xff] }
 0x7aa   :  { %v2866_v4 = vpop.f32.mrf.mxu1  ;;  %v2765_v5 = vpop.f32.mrf.mxu0 }
 0x7ab   :  { %v2885_v12 = vrot.slane %v2866_v4, 7  ;;  %v3274_v4 = vld [vmem:[%s5482_s5 + $0x60] sm:$0xff] }
 0x7ac   :  { %v4628_v7 = vpop.f32.mrf.mxu0 }
 0x7ad   :  { %v4666_v6 = vpop.f32.mrf.mxu1  ;;  %v2891_v48 = vsel %vm693_vm0, %v2885_v12, %v2886_v45 }
 0x7ae   :  { %v2888_v10 = vrot.slane %v4666_v6, 7  ;;  %v2775_v8 = vpop.f32.mrf.mxu0  ;;  %v2898_v39 = vadd.f32 %v4625_v3, %v2891_v48  ;;  %v3271_v6 = vld [vmem:[%s5482_s5 + $0x48] sm:$0xff] }
 0x7af   :  { %v2876_v19 = vpop.f32.mrf.mxu1 }
 0x7b0   :  { %v2892_v29 = vsel %vm693_vm0, %v2888_v10, %v2885_v12  ;;  %v2887_v14 = vrot.slane %v2876_v19, 7  ;;  %v3268_v19 = vld [vmem:[%s5482_s5 + $0x30] sm:$0xff]  ;;  %v3267_v12 = vld [vmem:[%s5482_s5 + $0x28] sm:$0xff] }
 0x7b1   :  { %v2893_v16 = vsel %vm5623_vm1, %v2892_v29, 0.0  ;;  %v3266_v29 = vld [vmem:[%s5482_s5 + $0x20] sm:$0xff] }
 0x7b2   :  { %v2890_v18 = vsel %vm693_vm0, %v2886_v45, %v2887_v14  ;;  %v2897_v17 = vadd.f32 %v2893_v16, %v2765_v5  ;;  %v2889_v24 = vsel %vm693_vm0, %v2887_v14, %v2888_v10  ;;  %v3273_v5 = vld [vmem:[%s5482_s5 + $0x58] sm:$0xff]  ;;  %v3264_v14 = vld [vmem:[%s5482_s5 + $0x10] sm:$0xff]  ;;  %v3263_v45 = vld [vmem:[%s5482_s5 + $0x8] sm:$0xff] }
 0x7b3   :  { %v2895_v28 = vsel %vm5635_vm3, %v2890_v18, 0.0  ;;  %v2900_v47 = vadd.f32 %v4628_v7, %v2889_v24  ;;  %v3270_v7 = vld [vmem:[%s5482_s5 + $0x40] sm:$0xff]  ;;  %v3269_v10 = vld [vmem:[%s5482_s5 + $0x38] sm:$0xff] }
 0x7b4   :  { %v2899_v40 = vadd.f32 %v2895_v28, %v2775_v8  ;;  %v3265_v8 = vld [vmem:[%s5482_s5 + $0x18] sm:$0xff] }
 0x7c8   :  { %v4701_v15 = vpop.f32.mrf.mxu0 }
 0x7c9   :  { %v3003_v22 = vrot.slane %v4701_v15, 1  ;;  %v3262_v15 = vld [vmem:[%s5482_s5] sm:$0xff] }
 0x7ca   :  { %v2983_v20 = vpop.f32.mrf.mxu0 }
 0x7cb   :  { %v3002_v23 = vrot.slane %v2983_v20, 1 }
 0x7cc   :  { %v4704_v25 = vpop.f32.mrf.mxu0 }
 0x7cd   :  { %v3008_v30 = vsel %vm819_vm2, %v3002_v23, %v3003_v22  ;;  %v3005_v33 = vrot.slane %v4704_v25, 1 }
 0x7ce   :  { %v3014_v26 = vadd.f32 %v3008_v30, %v2897_v17  ;;  %v2993_v32 = vpop.f32.mrf.mxu0 }
 0x7cf   :  { %v3009_v34 = vsel %vm819_vm2, %v3005_v33, %v3002_v23  ;;  %v3004_v36 = vrot.slane %v2993_v32, 1 }
 0x7d0   :  { %v3013_v43 = vsel %vm5647_vm4, %v3009_v34, 0.0  ;;  %v3025_v44 = vmul.f32 %v3481_v31, %v3014_v26 }
 0x7d1   :  { %v3017_v35 = vadd.f32 %v3013_v43, %v2900_v47  ;;  %v3006_v49 = vsel %vm819_vm2, %v3004_v36, %v3005_v33  ;;  %v3007_v50 = vsel %vm819_vm2, %v3003_v22, %v3004_v36 }
 0x7d2   :  { %v3011_v41 = vsel %vm5656_vm5, %v3007_v50, 0.0  ;;  %v3016_v51 = vadd.f32 %v3006_v49, %v2899_v40  ;;  %v3036_v60 = vadd.f32 %v3482_v42, %v3025_v44 }
 0x7d3   :  { %v3015_v38 = vadd.f32 %v3011_v41, %v2898_v39  ;;  %v3028_v55 = vmul.f32 %v3481_v31, %v3017_v35  ;;  %v3483_v39 = vld [vmem:[%s5487_s13] ss:$0 sm:$0xff] }
 0x7d4   :  { %v3040_v52 = vmax.f32 %v3036_v60, 0.0  ;;  %v3027_v53 = vmul.f32 %v3481_v31, %v3016_v51 }
 0x7d5   :  { %v3026_v54 = vmul.f32 %v3481_v31, %v3015_v38  ;;  %v3039_v59 = vadd.f32 %v3482_v42, %v3028_v55  ;;  %v3484_v38 = vld [vmem:[%s5492_s19] ss:$0 sm:$0xff] }
 0x7d6   :  { %4737 = vmatprep.mubr.f32.mxu1 %v3040_v52  ;;  %4775 = vmatprep.mubr.f32.mxu0 %v3040_v52  ;;  %v3038_v37 = vadd.f32 %v3482_v42, %v3027_v53 }
 0x7d7   :  { %v3037_v57 = vadd.f32 %v3482_v42, %v3026_v54  ;;  %v3043_v3 = vmax.f32 %v3039_v59, 0.0 }
 0x7d8   :  { %v3042_v61 = vmax.f32 %v3038_v37, 0.0 }
 0x7d9   :  { %v3041_v58 = vmax.f32 %v3037_v57, 0.0 }
 0x7db   :  { %4738 = vmatmul.mubr.f32.vlgmr.msra.gmra.mxu1 %v3041_v58  ;;  %4776 = vmatmul.mubr.f32.vlgmr.msra.gmra.mxu0 %v3041_v58 }
 0x7dc   :  { %4782 = vmatpush3.msra.mxu1 %v5990_v63  ;;  %4740 = vmatprep.mubr.f32.mxu1 %v3042_v61  ;;  %v3272_v63 = vld [vmem:[%s5482_s5 + $0x50] sm:$0xff] }
 0x7dd   :  { %4778 = vmatprep.mubr.f32.mxu0 %v3042_v61  ;;  %4783 = vmatprep.subr.mxu1 %v3276_v62 }
 0x7de   :  { %4784 = vmatpush3.msra.mxu1 %v3276_v62 }
 0x7df   :  { %4785 = vmatprep.subr.mxu1 %v3275_v1  ;;  %4741 = vmatmul.mubr.f32.gmra.mxu1 %v3043_v3 }
 0x7e0   :  { %4779 = vmatmul.mubr.f32.gmra.mxu0 %v3043_v3  ;;  %4786 = vmatpush3.msra.mxu1 %v3275_v1 }
 0x7e1   :  { %4787 = vmatprep.subr.mxu1 %v3274_v4  ;;  %4813 = vmatprep.mubr.f32.mxu1 %v3040_v52 }
 0x7e2   :  { %4788 = vmatpush3.msra.mxu1 %v3274_v4 }
 0x7e3   :  { %4789 = vmatprep.subr.mxu1 %v3273_v5 }
 0x7e4   :  { %4790 = vmatpush3.msra.mxu1 %v3273_v5 }
 0x7e5   :  { %4791 = vmatprep.subr.mxu1 %v3272_v63 }
 0x7e6   :  { %4792 = vmatpush3.msra.mxu1 %v3272_v63 }
 0x7e7   :  { %4793 = vmatprep.subr.mxu1 %v3271_v6 }
 0x7e8   :  { %4794 = vmatpush3.msra.mxu1 %v3271_v6 }
 0x7e9   :  { %4795 = vmatprep.subr.mxu1 %v3270_v7 }
 0x7ea   :  { %4796 = vmatpush3.msra.mxu1 %v3270_v7 }
 0x7eb   :  { %4797 = vmatprep.subr.mxu1 %v3269_v10 }
 0x7ec   :  { %4798 = vmatpush3.msra.mxu1 %v3269_v10 }
 0x7ed   :  { %4799 = vmatprep.subr.mxu1 %v3268_v19 }
 0x7ee   :  { %4800 = vmatpush3.msra.mxu1 %v3268_v19 }
 0x7ef   :  { %4801 = vmatprep.subr.mxu1 %v3267_v12 }
 0x7f0   :  { %4802 = vmatpush3.msra.mxu1 %v3267_v12 }
 0x7f1   :  { %4803 = vmatprep.subr.mxu1 %v3266_v29 }
 0x7f2   :  { %4804 = vmatpush3.msra.mxu1 %v3266_v29 }
 0x7f3   :  { %4805 = vmatprep.subr.mxu1 %v3265_v8 }
 0x7f4   :  { %4806 = vmatpush3.msra.mxu1 %v3265_v8 }
 0x7f5   :  { %4807 = vmatprep.subr.mxu1 %v3264_v14 }
 0x7f6   :  { %4808 = vmatpush3.msra.mxu1 %v3264_v14 }
 0x7f7   :  { %4809 = vmatprep.subr.mxu1 %v3263_v45 }
 0x7f8   :  { %4810 = vmatpush3.msra.mxu1 %v3263_v45 }
 0x7f9   :  { %4811 = vmatprep.subr.mxu1 %v3262_v15 }
 0x7fa   :  { %4812 = vmatpush3.msra.mxu1 %v3262_v15 }
 0x7fb   :  { %4814 = vmatmul.mubr.f32.vlgmr.msra.gmra.mxu1 %v3041_v58 }
 0x7fc   :  { %4816 = vmatprep.mubr.f32.mxu1 %v3042_v61 }
 0x7ff   :  { %4817 = vmatmul.mubr.f32.gmra.mxu1 %v3043_v3 }
 0x89b   :  { %v4739_v16 = vpop.f32.mrf.mxu1  ;;  %v4777_v23 = vpop.f32.mrf.mxu0 }
 0x89c   :  { %v3146_v33 = vrot.slane %v4739_v16, 7 }
 0x89d   :  { %v3126_v18 = vpop.f32.mrf.mxu1  ;;  %v3239_v30 = vpop.f32.mrf.mxu0 }
 0x89e   :  { %v3145_v24 = vrot.slane %v3126_v18, 7 }
 0x89f   :  { %v4742_v20 = vpop.f32.mrf.mxu1 }
 0x8a0   :  { %v3148_v22 = vrot.slane %v4742_v20, 7  ;;  %v4780_v47 = vpop.f32.mrf.mxu0  ;;  %v3151_v49 = vsel %vm693_vm0, %v3145_v24, %v3146_v33 }
 0x8a1   :  { %v3136_v17 = vpop.f32.mrf.mxu1  ;;  %v3259_v37 = vadd.f32 %v4777_v23, %v3151_v49 }
 0x8a2   :  { %v3152_v25 = vsel %vm693_vm0, %v3148_v22, %v3145_v24  ;;  %v3147_v28 = vrot.slane %v3136_v17, 7  ;;  %v3249_v60 = vpop.f32.mrf.mxu0 }
 0x8a3   :  { %v3153_v48 = vsel %vm5623_vm1, %v3152_v25, 0.0 }
 0x8a4   :  { %v3150_v26 = vsel %vm693_vm0, %v3146_v33, %v3147_v28  ;;  %v3258_v42 = vadd.f32 %v3239_v30, %v3153_v48  ;;  %v3149_v40 = vsel %vm693_vm0, %v3147_v28, %v3148_v22 }
 0x8a5   :  { %v3155_v44 = vsel %vm5635_vm3, %v3150_v26, 0.0  ;;  %v3261_v51 = vadd.f32 %v4780_v47, %v3149_v40 }
 0x8a6   :  { %v3260_v54 = vadd.f32 %v3249_v60, %v3155_v44 }
 0x8bb   :  { %v4815_v31 = vpop.f32.mrf.mxu1 }
 0x8bc   :  { %v3364_v34 = vrot.slane %v4815_v31, 1 }
 0x8bd   :  { %v3344_v32 = vpop.f32.mrf.mxu1 }
 0x8be   :  { %v3363_v36 = vrot.slane %v3344_v32, 1 }
 0x8bf   :  { %v4818_v43 = vpop.f32.mrf.mxu1 }
 0x8c0   :  { %v3369_v56 = vsel %vm819_vm2, %v3363_v36, %v3364_v34  ;;  %v3366_v35 = vrot.slane %v4818_v43, 1 }
 0x8c1   :  { %v3375_v50 = vadd.f32 %v3369_v56, %v3258_v42  ;;  %v3354_v41 = vpop.f32.mrf.mxu1 }
 0x8c2   :  { %v3370_v52 = vsel %vm819_vm2, %v3366_v35, %v3363_v36  ;;  %v3365_v53 = vrot.slane %v3354_v41, 1 }
 0x8c3   :  { %v3386_v0 = vmul.f32 %v3483_v39, %v3375_v50  ;;  %v3374_v55 = vsel %vm5647_vm4, %v3370_v52, 0.0 }
 0x8c4   :  { %v3378_v57 = vadd.f32 %v3374_v55, %v3261_v51  ;;  %v3367_v58 = vsel %vm819_vm2, %v3365_v53, %v3366_v35  ;;  %v3368_v59 = vsel %vm819_vm2, %v3364_v34, %v3365_v53 }
 0x8c5   :  { %v3397_v61 = vadd.f32 %v3484_v38, %v3386_v0  ;;  %v3372_v62 = vsel %vm5656_vm5, %v3368_v59, 0.0  ;;  %v3377_v1 = vadd.f32 %v3367_v58, %v3260_v54 }
 0x8c6   :  { %v3389_v3 = vmul.f32 %v3483_v39, %v3378_v57  ;;  %v3376_v4 = vadd.f32 %v3372_v62, %v3259_v37 }
 0x8c7   :  { %v3401_v13 = vmax.f32 %v3397_v61, 0.0  ;;  %v3388_v5 = vmul.f32 %v3483_v39, %v3377_v1 }
 0x8c8   :  { %v3400_v63 = vadd.f32 %v3484_v38, %v3389_v3  ;;  %v3387_v6 = vmul.f32 %v3483_v39, %v3376_v4 }
 0x8c9   :  { %v3405_v7 = vadd.f32 %v3401_v13, %v5918_v2  ;;  %v3399_v10 = vadd.f32 %v3484_v38, %v3388_v5 }
 0x8ca   :  { %v3404_v19 = vmax.f32 %v3400_v63, 0.0  ;;  %v3398_v46 = vadd.f32 %v3484_v38, %v3387_v6 }
 0x8cb   :  { %3409 = vst [vmem:[%s5497_s21] sm:$0xff] %v3405_v7  ;;  %v3403_v12 = vmax.f32 %v3399_v10, 0.0 }
 0x8cc   :  { %v3408_v21 = vadd.f32 %v3404_v19, %v5936_v27  ;;  %v3402_v29 = vmax.f32 %v3398_v46, 0.0 }
 0x8cd   :  { %v3407_v8 = vadd.f32 %v3403_v12, %v5926_v11 }
 0x8ce   :  { %3412 = vst [vmem:[%s5497_s21 + $0x18] sm:$0xff] %v3408_v21  ;;  %v3406_v14 = vadd.f32 %v3402_v29, %v5923_v9 }
 0x8cf   :  { %3411 = vst [vmem:[%s5497_s21 + $0x10] sm:$0xff] %v3407_v8 }
 0x8d0   :  { %3410 = vst [vmem:[%s5497_s21 + $0x8] sm:$0xff] %v3406_v14 }
 0x8d1   :  { %3417 = vsyncpa [#allocation3], 1 }
 0x8d2   :  { %3418 = vsyncpa [#allocation5], 1 }
 0x8d3   :  { %3419 = vsyncpa [#allocation8], 1 }
 0x8d4   :  { %3420 = vsyncpa [#allocation11], 1 }
 0x8d5   :  { %3421 = vsyncpa [#allocation14], 1 }
 0x8d6   :  { %3422 = vsyncpa [#allocation17], 1 }
 0x8d7   :  { %3423 = vsyncpa [#allocation20], 1 }
 0x8d8   :  { %3424 = vsyncpa [#allocation23], 1 }
 0x8d9   :  { %3425 = vsyncpa [#allocation26], 1 }

</bundles_post_ra>
